<compile_context>
chip_gen: v5e
topology: v5e:2x2
jax: 0.10.0
libtpu: 0.0.40
codegen_flags: <defaults>
</compile_context>

<pallas_src>
import functools

import jax
import jax.numpy as jnp
from jax import lax
from jax.experimental import pallas as pl
from jax.experimental.pallas import tpu as pltpu

_VMEM = pl.BlockSpec(memory_space=pltpu.MemorySpace.VMEM)
_ANY = pl.BlockSpec(memory_space=pl.ANY)


def _round_up(x, m):
    return (x + m - 1) // m * m


# ------------------------- fused whole-network kernel -----------------------

def _build_fused_kernel(plan):
    H, W, k, CP = plan['H'], plan['W'], plan['k'], plan['CP']
    HW = H * W
    pad = (k - 1) // 2
    conv_ops = plan['conv_ops']
    c_last = plan['c_last']
    fc0 = plan['fc0']
    enc_rest = plan['enc_rest']
    net0 = plan['net0']
    net_rest = plan['net_rest']
    entries = plan['entries']            # idx -> (row_off, rows, cols)

    taps = []
    for di in range(-pad, pad + 1):
        for dj in range(-pad, pad + 1):
            taps.append(di * W + dj)

    def kernel(x_ref, feat_ref, mask_ref, small_ref, fc0w_hbm,
               o_ref, patch_ref, fc0w_vmem, fc0_sem):
        # Kick off the big FC0-weight DMA immediately; it is hidden behind the
        # conv trunk and awaited right before the encoder FC head.
        fc0_dma = pltpu.make_async_copy(fc0w_hbm, fc0w_vmem, fc0_sem)
        fc0_dma.start()

        def wload(idx):
            off, rows, cols = entries[idx]
            return small_ref[pl.ds(off, rows), pl.ds(0, cols)]

        # ---- conv trunk; activation stays lane-dense (CP, H*W) in vregs ----
        x = x_ref[...]
        residual = x
        for op in conv_ops:
            if op['save']:
                residual = x
            # Build the im2col patch matrix in VMEM scratch; only one shifted
            # tap is live in vregs at a time, masks streamed from VMEM.
            for t, d in enumerate(taps):
                shifted = x if d == 0 else pltpu.roll(x, (-d) % HW, axis=1)
                patch_ref[pl.ds(t * CP, CP), :] = (
                    shifted * mask_ref[pl.ds(t, 1), :])
            y = jnp.dot(wload(op['w']), patch_ref[...],
                        preferred_element_type=jnp.float32)     # (CP, HW)
            y = y + wload(op['b'])                              # bias (CP, 1)
            if op['residual']:
                y = y + residual
            x = jnp.maximum(y, 0.0)                             # conv ReLU

        # ---- encoder FC head; (C,H,W) flatten == row-major (C, HW) order ----
        fc0_dma.wait()
        # Independent per-channel partials (no serial matmul-accumulate chain),
        # then a log-depth tree sum.
        parts = [jnp.dot(x[c:c + 1, :], fc0w_vmem[pl.ds(c * HW, HW), :],
                         preferred_element_type=jnp.float32)
                 for c in range(c_last)]
        while len(parts) > 1:
            nxt = [parts[i] + parts[i + 1] for i in range(0, len(parts) - 1, 2)]
            if len(parts) % 2:
                nxt.append(parts[-1])
            parts = nxt
        h = parts[0] + wload(fc0['b'])
        if fc0['relu']:
            h = jnp.maximum(h, 0.0)
        for op in enc_rest:
            h = jnp.dot(h, wload(op['w']),
                        preferred_element_type=jnp.float32) + wload(op['b'])
            if op['relu']:
                h = jnp.maximum(h, 0.0)

        # ---- [features ; encoder] -> 3-layer MLP (concat folded into split W) --
        z = (jnp.dot(feat_ref[...], wload(net0['wf']),
                     preferred_element_type=jnp.float32)
             + jnp.dot(h, wload(net0['wh']),
                       preferred_element_type=jnp.float32)
             + wload(net0['b']))
        z = jnp.maximum(z, 0.0)
        for op in net_rest:
            z = jnp.dot(z, wload(op['w']),
                        preferred_element_type=jnp.float32) + wload(op['b'])
            if op['relu']:
                z = jnp.maximum(z, 0.0)
        o_ref[...] = z                    # (1, out_pad): lane-padded store

    return kernel


# ------------------- one-time parameter preparation (no jit) ----------------

def prepare_params(params, *, kernel_size, conv_stack, fc_stack, img_size,
                   features_size, output_size):
    """Pre-transpose / pad / pack all weights once, outside the jitted forward."""
    k = kernel_size
    pad = (k - 1) // 2
    H, W = img_size[-2], img_size[-1]
    HW = H * W
    # Flat vertical-bounds mask requires pad < H, W (true for k=3 on 16x16).
    assert pad < H and pad < W, "kernel too large for flat bounds masking"
    CP = _round_up(max(conv_stack), 8)       # sublane-aligned channel count

    items = []                               # small weights to pack

    def add(a):
        a = jnp.asarray(a, jnp.float32)
        if a.ndim == 1:
            a = a.reshape(1, -1)
        items.append(a)
        return len(items) - 1

    def prep_conv(p, cin, cout):
        # (cout, cin, k, k) -> (CP, k*k*CP) im2col weight, tap-major then channel.
        w = jnp.transpose(jnp.asarray(p['w'], jnp.float32), (0, 2, 3, 1))
        w = jnp.pad(w, ((0, CP - cout), (0, 0), (0, 0), (0, CP - cin)))
        w = w.reshape(CP, k * k * CP)
        b = jnp.pad(jnp.asarray(p['b'], jnp.float32), (0, CP - cout)).reshape(CP, 1)
        return add(w), add(b)

    conv_ops = []
    for blk_i, blk in enumerate(params['conv_blocks']):
        cin = conv_stack[blk_i]
        for j in range(3):                                    # ResBlock convs
            wi, bi = prep_conv(blk['res'][j], cin, cin)
            conv_ops.append({'w': wi, 'b': bi, 'save': j == 0, 'residual': j == 2})
        if 'trans' in blk:                                    # channel-changing conv
            wi, bi = prep_conv(blk['trans'], cin, conv_stack[blk_i + 1])
            conv_ops.append({'w': wi, 'b': bi, 'save': False, 'residual': False})

    enc = params['enc_fc']
    n_enc = len(enc)
    w0, b0 = enc[0]
    fc0_w = jnp.asarray(jnp.transpose(w0), jnp.float32)       # (c_last*HW, d0)
    fc0 = {'b': add(b0), 'relu': n_enc > 1}
    enc_rest = []
    for i in range(1, n_enc):
        w, b = enc[i]
        enc_rest.append({'w': add(jnp.transpose(w)), 'b': add(b),
                         'relu': i < n_enc - 1})

    net = params['net']
    w, b = net[0]
    wt = jnp.transpose(w)                                     # (features+fc_last, 128)
    net0 = {'wf': add(wt[:features_size, :]),
            'wh': add(wt[features_size:, :]),
            'b': add(b)}
    out_pad = _round_up(output_size, 128)
    net_rest = []
    for i in range(1, len(net)):
        w, b = net[i]
        wt = jnp.transpose(w)
        bb = jnp.asarray(b, jnp.float32)
        if i == len(net) - 1:                                 # pad final layer to 128 lanes
            wt = jnp.pad(wt, ((0, 0), (0, out_pad - output_size)))
            bb = jnp.pad(bb, (0, out_pad - output_size))
        net_rest.append({'w': add(wt), 'b': add(bb), 'relu': i < len(net) - 1})

    # ---- pack all small params into one (rows, lanes) buffer, 8-row aligned ----
    lanes = _round_up(max(a.shape[1] for a in items), 128)
    rows, entries, off = [], [], 0
    for a in items:
        r, c = a.shape
        rows.append(jnp.pad(a, ((0, 0), (0, lanes - c))))
        entries.append((off, r, c))
        pr = (-r) % 8
        if pr:
            rows.append(jnp.zeros((pr, lanes), jnp.float32))
        off += r + pr
    small = jnp.concatenate(rows, axis=0)

    # ---- precomputed 0/1 edge-validity masks, one row per tap: (k*k, HW) ----
    pos = jnp.arange(HW, dtype=jnp.int32)[None, :]
    col = pos % W
    mrows = []
    for di in range(-pad, pad + 1):
        for dj in range(-pad, pad + 1):
            d = di * W + dj
            valid = ((pos + d >= 0) & (pos + d < HW)
                     & (col + dj >= 0) & (col + dj < W))
            mrows.append(valid.astype(jnp.float32))
    masks = jnp.concatenate(mrows, axis=0)
    mpad = (-masks.shape[0]) % 8
    if mpad:
        masks = jnp.pad(masks, ((0, mpad), (0, 0)))

    plan = {'H': H, 'W': W, 'k': k, 'CP': CP, 'c_last': conv_stack[-1],
            'conv_ops': conv_ops, 'fc0': fc0, 'enc_rest': enc_rest,
            'net0': net0, 'net_rest': net_rest, 'entries': tuple(entries),
            'out_size': output_size, 'out_pad': out_pad, 'd0': fc_stack[0]}
    consts = {'small': small, 'masks': masks, 'fc0_w': fc0_w}
    return consts, plan


# ------------------------------ fused forward -------------------------------

def fused_forward(consts, features, symworld, *, plan):
    H, W, CP = plan['H'], plan['W'], plan['CP']
    HW = H * W
    c0 = symworld.shape[1]
    # (1, C, H, W) -> (C, H*W): channels-first flatten, free reshape.
    x0 = symworld.reshape(c0, HW).astype(jnp.float32)
    x0 = jnp.pad(x0, ((0, CP - c0), (0, 0)))      # zero rows for padded channels
    feat = features.reshape(1, -1).astype(jnp.float32)

    kernel = _build_fused_kernel(plan)
    out = pl.pallas_call(
        kernel,
        out_shape=jax.ShapeDtypeStruct((1, plan['out_pad']), jnp.float32),
        in_specs=[_VMEM, _VMEM, _VMEM, _VMEM, _ANY],
        out_specs=_VMEM,
        scratch_shapes=[
            pltpu.VMEM((plan['k'] * plan['k'] * CP, HW), jnp.float32),  # im2col patches
            pltpu.VMEM((plan['c_last'] * HW, plan['d0']), jnp.float32),  # fc0 weight dst
            pltpu.SemaphoreType.DMA,                                     # fc0 DMA sem
        ],
    )(x0, feat, consts['masks'], consts['small'], consts['fc0_w'])
    return out[0, :plan['out_size']]


# ------------------------- params & pure-JAX reference ----------------------

def init_params(key, kernel_size, conv_stack, fc_stack, img_size,
                features_size, output_size):
    keys = iter(jax.random.split(key, 128))

    def conv_p(cin, cout):
        fan_in = cin * kernel_size * kernel_size
        w = jax.random.normal(next(keys), (cout, cin, kernel_size, kernel_size),
                              jnp.float32) / jnp.sqrt(float(fan_in))
        b = 0.05 * jax.random.normal(next(keys), (cout,), jnp.float32)
        return {'w': w, 'b': b}

    def lin_p(din, dout):
        w = jax.random.normal(next(keys), (dout, din), jnp.float32) / jnp.sqrt(float(din))
        b = 0.05 * jax.random.normal(next(keys), (dout,), jnp.float32)
        return (w, b)

    blocks = []
    for i in range(1, len(conv_stack)):
        blk = {'res': [conv_p(conv_stack[i - 1], conv_stack[i - 1]) for _ in range(3)]}
        if conv_stack[i - 1] != conv_stack[i]:
            blk['trans'] = conv_p(conv_stack[i - 1], conv_stack[i])
        blocks.append(blk)

    H, W = img_size[-2], img_size[-1]
    dims = [conv_stack[-1] * H * W] + list(fc_stack)
    enc_fc = [lin_p(dims[i - 1], dims[i]) for i in range(1, len(dims))]
    net = [lin_p(fc_stack[-1] + features_size, 128),
           lin_p(128, 64),
           lin_p(64, output_size)]
    return {'conv_blocks': blocks, 'enc_fc': enc_fc, 'net': net}


def reference_forward(params, features, symworld, *, k):
    pad = (k - 1) // 2

    def conv(x, p):
        y = lax.conv_general_dilated(
            x, p['w'], window_strides=(1, 1), padding=[(pad, pad), (pad, pad)],
            dimension_numbers=('NCHW', 'OIHW', 'NCHW'))
        return y + p['b'].reshape(1, -1, 1, 1)

    x = symworld
    for blk in params['conv_blocks']:
        r = x
        h = jax.nn.relu(conv(x, blk['res'][0]))
        h = jax.nn.relu(conv(h, blk['res'][1]))
        x = jax.nn.relu(conv(h, blk['res'][2]) + r)
        if 'trans' in blk:
            x = jax.nn.relu(conv(x, blk['trans']))
    v = x.reshape(-1)
    n_fc = len(params['enc_fc'])
    for i, (wt, bs) in enumerate(params['enc_fc']):
        v = v @ wt.T + bs
        if i < n_fc - 1:
            v = jax.nn.relu(v)
    cat = jnp.concatenate([features, v], axis=0)
    for i, (wt, bs) in enumerate(params['net']):
        cat = cat @ wt.T + bs
        if i < 2:
            cat = jax.nn.relu(cat)
    return cat


# ----------------------------------- main -----------------------------------

if __name__ == "__main__":
    kernel_size = 3
    conv_stack = (4, 8, 8)
    fc_stack = (64, 32)
    img_size = (16, 16)
    features_size = 16
    output_size = 10

    key = jax.random.PRNGKey(0)
    pkey, fkey, skey = jax.random.split(key, 3)
    params = init_params(pkey, kernel_size, conv_stack, fc_stack, img_size,
                         features_size, output_size)
    features = jax.random.normal(fkey, (features_size,), jnp.float32)
    symworld = jax.random.normal(
        skey, (1, conv_stack[0], img_size[-2], img_size[-1]), jnp.float32)

    # One-time weight prep (transposes / padding / im2col layout / packing).
    consts, plan = prepare_params(
        params, kernel_size=kernel_size, conv_stack=conv_stack,
        fc_stack=fc_stack, img_size=img_size, features_size=features_size,
        output_size=output_size)

    fwd = jax.jit(functools.partial(fused_forward, plan=plan))
    out = jax.block_until_ready(fwd(consts, features, symworld))
    assert out.shape == (output_size,)

    ref = reference_forward(params, features, symworld, k=kernel_size)
    assert jnp.allclose(out, ref, atol=1e-3, rtol=1e-3), (out, ref)

    print("KERNEL_OK")
</pallas_src>

<mosaic_0001>
module attributes {stable_mosaic.version = 11 : i64} {
  func.func @kernel(%arg0: memref<8x256xf32, #tpu.memory_space<vmem>>, %arg1: memref<1x16xf32, #tpu.memory_space<vmem>>, %arg2: memref<16x256xf32, #tpu.memory_space<vmem>>, %arg3: memref<456x128xf32, #tpu.memory_space<vmem>>, %arg4: memref<2048x64xf32, #tpu.memory_space<any>>, %arg5: memref<1x128xf32, #tpu.memory_space<vmem>>, %arg6: memref<72x256xf32, #tpu.memory_space<vmem>>, %arg7: memref<2048x64xf32, #tpu.memory_space<vmem>>, %arg8: memref<!tpu.dma_semaphore, #tpu.memory_space<semaphore_mem>>) attributes {dimension_semantics = [], scalar_prefetch = 0 : i64, scratch_operands = 3 : i64, tpu.core_type = #tpu.core_type<tc>} {
    tpu.enqueue_dma source(%arg4 : memref<2048x64xf32, #tpu.memory_space<any>>) target(%arg7 : memref<2048x64xf32, #tpu.memory_space<vmem>>) target_semaphore(%arg8 : memref<!tpu.dma_semaphore, #tpu.memory_space<semaphore_mem>>)
    %c0 = arith.constant 0 : index
    %c0_0 = arith.constant 0 : index
    %0 = vector.load %arg0[%c0, %c0_0] : memref<8x256xf32, #tpu.memory_space<vmem>>, vector<8x256xf32>
    %c17_i32 = arith.constant 17 : i32
    %1 = tpu.dynamic_rotate %0 by %c17_i32 dim 1 : vector<8x256xf32>, i32 -> vector<8x256xf32>
    %c0_1 = arith.constant 0 : index
    %c0_2 = arith.constant 0 : index
    %2 = vector.load %arg2[%c0_1, %c0_2] : memref<16x256xf32, #tpu.memory_space<vmem>>, vector<1x256xf32>
    %3 = vector.broadcast %2 : vector<1x256xf32> to vector<8x256xf32>
    %4 = arith.mulf %1, %3 : vector<8x256xf32>
    %c0_3 = arith.constant 0 : index
    %c0_4 = arith.constant 0 : index
    %5 = vector.load %arg6[%c0_3, %c0_4] : memref<72x256xf32, #tpu.memory_space<vmem>>, vector<8x256xf32>
    tpu.vector_store %arg6[%c0_3, %c0_4], %4 {strides = array<i32>} : memref<72x256xf32, #tpu.memory_space<vmem>>, vector<8x256xf32>,
    %c16_i32 = arith.constant 16 : i32
    %6 = tpu.dynamic_rotate %0 by %c16_i32 dim 1 : vector<8x256xf32>, i32 -> vector<8x256xf32>
    %c1 = arith.constant 1 : index
    %c0_5 = arith.constant 0 : index
    %7 = vector.load %arg2[%c1, %c0_5] : memref<16x256xf32, #tpu.memory_space<vmem>>, vector<1x256xf32>
    %8 = vector.broadcast %7 : vector<1x256xf32> to vector<8x256xf32>
    %9 = arith.mulf %6, %8 : vector<8x256xf32>
    %c8 = arith.constant 8 : index
    %c0_6 = arith.constant 0 : index
    %10 = vector.load %arg6[%c8, %c0_6] : memref<72x256xf32, #tpu.memory_space<vmem>>, vector<8x256xf32>
    tpu.vector_store %arg6[%c8, %c0_6], %9 {strides = array<i32>} : memref<72x256xf32, #tpu.memory_space<vmem>>, vector<8x256xf32>,
    %c15_i32 = arith.constant 15 : i32
    %11 = tpu.dynamic_rotate %0 by %c15_i32 dim 1 : vector<8x256xf32>, i32 -> vector<8x256xf32>
    %c2 = arith.constant 2 : index
    %c0_7 = arith.constant 0 : index
    %12 = vector.load %arg2[%c2, %c0_7] : memref<16x256xf32, #tpu.memory_space<vmem>>, vector<1x256xf32>
    %13 = vector.broadcast %12 : vector<1x256xf32> to vector<8x256xf32>
    %14 = arith.mulf %11, %13 : vector<8x256xf32>
    %c16 = arith.constant 16 : index
    %c0_8 = arith.constant 0 : index
    %15 = vector.load %arg6[%c16, %c0_8] : memref<72x256xf32, #tpu.memory_space<vmem>>, vector<8x256xf32>
    tpu.vector_store %arg6[%c16, %c0_8], %14 {strides = array<i32>} : memref<72x256xf32, #tpu.memory_space<vmem>>, vector<8x256xf32>,
    %c1_i32 = arith.constant 1 : i32
    %16 = tpu.dynamic_rotate %0 by %c1_i32 dim 1 : vector<8x256xf32>, i32 -> vector<8x256xf32>
    %c3 = arith.constant 3 : index
    %c0_9 = arith.constant 0 : index
    %17 = vector.load %arg2[%c3, %c0_9] : memref<16x256xf32, #tpu.memory_space<vmem>>, vector<1x256xf32>
    %18 = vector.broadcast %17 : vector<1x256xf32> to vector<8x256xf32>
    %19 = arith.mulf %16, %18 : vector<8x256xf32>
    %c24 = arith.constant 24 : index
    %c0_10 = arith.constant 0 : index
    %20 = vector.load %arg6[%c24, %c0_10] : memref<72x256xf32, #tpu.memory_space<vmem>>, vector<8x256xf32>
    tpu.vector_store %arg6[%c24, %c0_10], %19 {strides = array<i32>} : memref<72x256xf32, #tpu.memory_space<vmem>>, vector<8x256xf32>,
    %c4 = arith.constant 4 : index
    %c0_11 = arith.constant 0 : index
    %21 = vector.load %arg2[%c4, %c0_11] : memref<16x256xf32, #tpu.memory_space<vmem>>, vector<1x256xf32>
    %22 = vector.broadcast %21 : vector<1x256xf32> to vector<8x256xf32>
    %23 = arith.mulf %0, %22 : vector<8x256xf32>
    %c32 = arith.constant 32 : index
    %c0_12 = arith.constant 0 : index
    %24 = vector.load %arg6[%c32, %c0_12] : memref<72x256xf32, #tpu.memory_space<vmem>>, vector<8x256xf32>
    tpu.vector_store %arg6[%c32, %c0_12], %23 {strides = array<i32>} : memref<72x256xf32, #tpu.memory_space<vmem>>, vector<8x256xf32>,
    %c255_i32 = arith.constant 255 : i32
    %25 = tpu.dynamic_rotate %0 by %c255_i32 dim 1 : vector<8x256xf32>, i32 -> vector<8x256xf32>
    %c5 = arith.constant 5 : index
    %c0_13 = arith.constant 0 : index
    %26 = vector.load %arg2[%c5, %c0_13] : memref<16x256xf32, #tpu.memory_space<vmem>>, vector<1x256xf32>
    %27 = vector.broadcast %26 : vector<1x256xf32> to vector<8x256xf32>
    %28 = arith.mulf %25, %27 : vector<8x256xf32>
    %c40 = arith.constant 40 : index
    %c0_14 = arith.constant 0 : index
    %29 = vector.load %arg6[%c40, %c0_14] : memref<72x256xf32, #tpu.memory_space<vmem>>, vector<8x256xf32>
    tpu.vector_store %arg6[%c40, %c0_14], %28 {strides = array<i32>} : memref<72x256xf32, #tpu.memory_space<vmem>>, vector<8x256xf32>,
    %c241_i32 = arith.constant 241 : i32
    %30 = tpu.dynamic_rotate %0 by %c241_i32 dim 1 : vector<8x256xf32>, i32 -> vector<8x256xf32>
    %c6 = arith.constant 6 : index
    %c0_15 = arith.constant 0 : index
    %31 = vector.load %arg2[%c6, %c0_15] : memref<16x256xf32, #tpu.memory_space<vmem>>, vector<1x256xf32>
    %32 = vector.broadcast %31 : vector<1x256xf32> to vector<8x256xf32>
    %33 = arith.mulf %30, %32 : vector<8x256xf32>
    %c48 = arith.constant 48 : index
    %c0_16 = arith.constant 0 : index
    %34 = vector.load %arg6[%c48, %c0_16] : memref<72x256xf32, #tpu.memory_space<vmem>>, vector<8x256xf32>
    tpu.vector_store %arg6[%c48, %c0_16], %33 {strides = array<i32>} : memref<72x256xf32, #tpu.memory_space<vmem>>, vector<8x256xf32>,
    %c240_i32 = arith.constant 240 : i32
    %35 = tpu.dynamic_rotate %0 by %c240_i32 dim 1 : vector<8x256xf32>, i32 -> vector<8x256xf32>
    %c7 = arith.constant 7 : index
    %c0_17 = arith.constant 0 : index
    %36 = vector.load %arg2[%c7, %c0_17] : memref<16x256xf32, #tpu.memory_space<vmem>>, vector<1x256xf32>
    %37 = vector.broadcast %36 : vector<1x256xf32> to vector<8x256xf32>
    %38 = arith.mulf %35, %37 : vector<8x256xf32>
    %c56 = arith.constant 56 : index
    %c0_18 = arith.constant 0 : index
    %39 = vector.load %arg6[%c56, %c0_18] : memref<72x256xf32, #tpu.memory_space<vmem>>, vector<8x256xf32>
    tpu.vector_store %arg6[%c56, %c0_18], %38 {strides = array<i32>} : memref<72x256xf32, #tpu.memory_space<vmem>>, vector<8x256xf32>,
    %c239_i32 = arith.constant 239 : i32
    %40 = tpu.dynamic_rotate %0 by %c239_i32 dim 1 : vector<8x256xf32>, i32 -> vector<8x256xf32>
    %c8_19 = arith.constant 8 : index
    %c0_20 = arith.constant 0 : index
    %41 = vector.load %arg2[%c8_19, %c0_20] : memref<16x256xf32, #tpu.memory_space<vmem>>, vector<1x256xf32>
    %42 = vector.broadcast %41 : vector<1x256xf32> to vector<8x256xf32>
    %43 = arith.mulf %40, %42 : vector<8x256xf32>
    %c64 = arith.constant 64 : index
    %c0_21 = arith.constant 0 : index
    %44 = vector.load %arg6[%c64, %c0_21] : memref<72x256xf32, #tpu.memory_space<vmem>>, vector<8x256xf32>
    tpu.vector_store %arg6[%c64, %c0_21], %43 {strides = array<i32>} : memref<72x256xf32, #tpu.memory_space<vmem>>, vector<8x256xf32>,
    %c0_22 = arith.constant 0 : index
    %c0_23 = arith.constant 0 : index
    %45 = vector.load %arg3[%c0_22, %c0_23] : memref<456x128xf32, #tpu.memory_space<vmem>>, vector<8x72xf32>
    %c0_24 = arith.constant 0 : index
    %c0_25 = arith.constant 0 : index
    %46 = vector.load %arg6[%c0_24, %c0_25] : memref<72x256xf32, #tpu.memory_space<vmem>>, vector<72x256xf32>
    %cst = arith.constant dense<0.000000e+00> : vector<8x256xf32>
    %47 = tpu.matmul %45, %46, %cst {dimension_numbers = #tpu.dot_dimension_numbers<[1], [0], [0], [1], [0, 0, 1, 1], [], []>} : vector<8x72xf32>, vector<72x256xf32>, vector<8x256xf32> -> vector<8x256xf32>
    %c8_26 = arith.constant 8 : index
    %c0_27 = arith.constant 0 : index
    %48 = vector.load %arg3[%c8_26, %c0_27] : memref<456x128xf32, #tpu.memory_space<vmem>>, vector<8x1xf32>
    %49 = vector.broadcast %48 : vector<8x1xf32> to vector<8x256xf32>
    %50 = arith.addf %47, %49 : vector<8x256xf32>
    %cst_28 = arith.constant 0.000000e+00 : f32
    %51 = vector.broadcast %cst_28 : f32 to vector<8x256xf32>
    %52 = arith.maximumf %50, %51 : vector<8x256xf32>
    %c17_i32_29 = arith.constant 17 : i32
    %53 = tpu.dynamic_rotate %52 by %c17_i32_29 dim 1 : vector<8x256xf32>, i32 -> vector<8x256xf32>
    %c0_30 = arith.constant 0 : index
    %c0_31 = arith.constant 0 : index
    %54 = vector.load %arg2[%c0_30, %c0_31] : memref<16x256xf32, #tpu.memory_space<vmem>>, vector<1x256xf32>
    %55 = vector.broadcast %54 : vector<1x256xf32> to vector<8x256xf32>
    %56 = arith.mulf %53, %55 : vector<8x256xf32>
    %c0_32 = arith.constant 0 : index
    %c0_33 = arith.constant 0 : index
    %57 = vector.load %arg6[%c0_32, %c0_33] : memref<72x256xf32, #tpu.memory_space<vmem>>, vector<8x256xf32>
    tpu.vector_store %arg6[%c0_32, %c0_33], %56 {strides = array<i32>} : memref<72x256xf32, #tpu.memory_space<vmem>>, vector<8x256xf32>,
    %c16_i32_34 = arith.constant 16 : i32
    %58 = tpu.dynamic_rotate %52 by %c16_i32_34 dim 1 : vector<8x256xf32>, i32 -> vector<8x256xf32>
    %c1_35 = arith.constant 1 : index
    %c0_36 = arith.constant 0 : index
    %59 = vector.load %arg2[%c1_35, %c0_36] : memref<16x256xf32, #tpu.memory_space<vmem>>, vector<1x256xf32>
    %60 = vector.broadcast %59 : vector<1x256xf32> to vector<8x256xf32>
    %61 = arith.mulf %58, %60 : vector<8x256xf32>
    %c8_37 = arith.constant 8 : index
    %c0_38 = arith.constant 0 : index
    %62 = vector.load %arg6[%c8_37, %c0_38] : memref<72x256xf32, #tpu.memory_space<vmem>>, vector<8x256xf32>
    tpu.vector_store %arg6[%c8_37, %c0_38], %61 {strides = array<i32>} : memref<72x256xf32, #tpu.memory_space<vmem>>, vector<8x256xf32>,
    %c15_i32_39 = arith.constant 15 : i32
    %63 = tpu.dynamic_rotate %52 by %c15_i32_39 dim 1 : vector<8x256xf32>, i32 -> vector<8x256xf32>
    %c2_40 = arith.constant 2 : index
    %c0_41 = arith.constant 0 : index
    %64 = vector.load %arg2[%c2_40, %c0_41] : memref<16x256xf32, #tpu.memory_space<vmem>>, vector<1x256xf32>
    %65 = vector.broadcast %64 : vector<1x256xf32> to vector<8x256xf32>
    %66 = arith.mulf %63, %65 : vector<8x256xf32>
    %c16_42 = arith.constant 16 : index
    %c0_43 = arith.constant 0 : index
    %67 = vector.load %arg6[%c16_42, %c0_43] : memref<72x256xf32, #tpu.memory_space<vmem>>, vector<8x256xf32>
    tpu.vector_store %arg6[%c16_42, %c0_43], %66 {strides = array<i32>} : memref<72x256xf32, #tpu.memory_space<vmem>>, vector<8x256xf32>,
    %c1_i32_44 = arith.constant 1 : i32
    %68 = tpu.dynamic_rotate %52 by %c1_i32_44 dim 1 : vector<8x256xf32>, i32 -> vector<8x256xf32>
    %c3_45 = arith.constant 3 : index
    %c0_46 = arith.constant 0 : index
    %69 = vector.load %arg2[%c3_45, %c0_46] : memref<16x256xf32, #tpu.memory_space<vmem>>, vector<1x256xf32>
    %70 = vector.broadcast %69 : vector<1x256xf32> to vector<8x256xf32>
    %71 = arith.mulf %68, %70 : vector<8x256xf32>
    %c24_47 = arith.constant 24 : index
    %c0_48 = arith.constant 0 : index
    %72 = vector.load %arg6[%c24_47, %c0_48] : memref<72x256xf32, #tpu.memory_space<vmem>>, vector<8x256xf32>
    tpu.vector_store %arg6[%c24_47, %c0_48], %71 {strides = array<i32>} : memref<72x256xf32, #tpu.memory_space<vmem>>, vector<8x256xf32>,
    %c4_49 = arith.constant 4 : index
    %c0_50 = arith.constant 0 : index
    %73 = vector.load %arg2[%c4_49, %c0_50] : memref<16x256xf32, #tpu.memory_space<vmem>>, vector<1x256xf32>
    %74 = vector.broadcast %73 : vector<1x256xf32> to vector<8x256xf32>
    %75 = arith.mulf %52, %74 : vector<8x256xf32>
    %c32_51 = arith.constant 32 : index
    %c0_52 = arith.constant 0 : index
    %76 = vector.load %arg6[%c32_51, %c0_52] : memref<72x256xf32, #tpu.memory_space<vmem>>, vector<8x256xf32>
    tpu.vector_store %arg6[%c32_51, %c0_52], %75 {strides = array<i32>} : memref<72x256xf32, #tpu.memory_space<vmem>>, vector<8x256xf32>,
    %c255_i32_53 = arith.constant 255 : i32
    %77 = tpu.dynamic_rotate %52 by %c255_i32_53 dim 1 : vector<8x256xf32>, i32 -> vector<8x256xf32>
    %c5_54 = arith.constant 5 : index
    %c0_55 = arith.constant 0 : index
    %78 = vector.load %arg2[%c5_54, %c0_55] : memref<16x256xf32, #tpu.memory_space<vmem>>, vector<1x256xf32>
    %79 = vector.broadcast %78 : vector<1x256xf32> to vector<8x256xf32>
    %80 = arith.mulf %77, %79 : vector<8x256xf32>
    %c40_56 = arith.constant 40 : index
    %c0_57 = arith.constant 0 : index
    %81 = vector.load %arg6[%c40_56, %c0_57] : memref<72x256xf32, #tpu.memory_space<vmem>>, vector<8x256xf32>
    tpu.vector_store %arg6[%c40_56, %c0_57], %80 {strides = array<i32>} : memref<72x256xf32, #tpu.memory_space<vmem>>, vector<8x256xf32>,
    %c241_i32_58 = arith.constant 241 : i32
    %82 = tpu.dynamic_rotate %52 by %c241_i32_58 dim 1 : vector<8x256xf32>, i32 -> vector<8x256xf32>
    %c6_59 = arith.constant 6 : index
    %c0_60 = arith.constant 0 : index
    %83 = vector.load %arg2[%c6_59, %c0_60] : memref<16x256xf32, #tpu.memory_space<vmem>>, vector<1x256xf32>
    %84 = vector.broadcast %83 : vector<1x256xf32> to vector<8x256xf32>
    %85 = arith.mulf %82, %84 : vector<8x256xf32>
    %c48_61 = arith.constant 48 : index
    %c0_62 = arith.constant 0 : index
    %86 = vector.load %arg6[%c48_61, %c0_62] : memref<72x256xf32, #tpu.memory_space<vmem>>, vector<8x256xf32>
    tpu.vector_store %arg6[%c48_61, %c0_62], %85 {strides = array<i32>} : memref<72x256xf32, #tpu.memory_space<vmem>>, vector<8x256xf32>,
    %c240_i32_63 = arith.constant 240 : i32
    %87 = tpu.dynamic_rotate %52 by %c240_i32_63 dim 1 : vector<8x256xf32>, i32 -> vector<8x256xf32>
    %c7_64 = arith.constant 7 : index
    %c0_65 = arith.constant 0 : index
    %88 = vector.load %arg2[%c7_64, %c0_65] : memref<16x256xf32, #tpu.memory_space<vmem>>, vector<1x256xf32>
    %89 = vector.broadcast %88 : vector<1x256xf32> to vector<8x256xf32>
    %90 = arith.mulf %87, %89 : vector<8x256xf32>
    %c56_66 = arith.constant 56 : index
    %c0_67 = arith.constant 0 : index
    %91 = vector.load %arg6[%c56_66, %c0_67] : memref<72x256xf32, #tpu.memory_space<vmem>>, vector<8x256xf32>
    tpu.vector_store %arg6[%c56_66, %c0_67], %90 {strides = array<i32>} : memref<72x256xf32, #tpu.memory_space<vmem>>, vector<8x256xf32>,
    %c239_i32_68 = arith.constant 239 : i32
    %92 = tpu.dynamic_rotate %52 by %c239_i32_68 dim 1 : vector<8x256xf32>, i32 -> vector<8x256xf32>
    %c8_69 = arith.constant 8 : index
    %c0_70 = arith.constant 0 : index
    %93 = vector.load %arg2[%c8_69, %c0_70] : memref<16x256xf32, #tpu.memory_space<vmem>>, vector<1x256xf32>
    %94 = vector.broadcast %93 : vector<1x256xf32> to vector<8x256xf32>
    %95 = arith.mulf %92, %94 : vector<8x256xf32>
    %c64_71 = arith.constant 64 : index
    %c0_72 = arith.constant 0 : index
    %96 = vector.load %arg6[%c64_71, %c0_72] : memref<72x256xf32, #tpu.memory_space<vmem>>, vector<8x256xf32>
    tpu.vector_store %arg6[%c64_71, %c0_72], %95 {strides = array<i32>} : memref<72x256xf32, #tpu.memory_space<vmem>>, vector<8x256xf32>,
    %c16_73 = arith.constant 16 : index
    %c0_74 = arith.constant 0 : index
    %97 = vector.load %arg3[%c16_73, %c0_74] : memref<456x128xf32, #tpu.memory_space<vmem>>, vector<8x72xf32>
    %c0_75 = arith.constant 0 : index
    %c0_76 = arith.constant 0 : index
    %98 = vector.load %arg6[%c0_75, %c0_76] : memref<72x256xf32, #tpu.memory_space<vmem>>, vector<72x256xf32>
    %cst_77 = arith.constant dense<0.000000e+00> : vector<8x256xf32>
    %99 = tpu.matmul %97, %98, %cst_77 {dimension_numbers = #tpu.dot_dimension_numbers<[1], [0], [0], [1], [0, 0, 1, 1], [], []>} : vector<8x72xf32>, vector<72x256xf32>, vector<8x256xf32> -> vector<8x256xf32>
    %c24_78 = arith.constant 24 : index
    %c0_79 = arith.constant 0 : index
    %100 = vector.load %arg3[%c24_78, %c0_79] : memref<456x128xf32, #tpu.memory_space<vmem>>, vector<8x1xf32>
    %101 = vector.broadcast %100 : vector<8x1xf32> to vector<8x256xf32>
    %102 = arith.addf %99, %101 : vector<8x256xf32>
    %cst_80 = arith.constant 0.000000e+00 : f32
    %103 = vector.broadcast %cst_80 : f32 to vector<8x256xf32>
    %104 = arith.maximumf %102, %103 : vector<8x256xf32>
    %c17_i32_81 = arith.constant 17 : i32
    %105 = tpu.dynamic_rotate %104 by %c17_i32_81 dim 1 : vector<8x256xf32>, i32 -> vector<8x256xf32>
    %c0_82 = arith.constant 0 : index
    %c0_83 = arith.constant 0 : index
    %106 = vector.load %arg2[%c0_82, %c0_83] : memref<16x256xf32, #tpu.memory_space<vmem>>, vector<1x256xf32>
    %107 = vector.broadcast %106 : vector<1x256xf32> to vector<8x256xf32>
    %108 = arith.mulf %105, %107 : vector<8x256xf32>
    %c0_84 = arith.constant 0 : index
    %c0_85 = arith.constant 0 : index
    %109 = vector.load %arg6[%c0_84, %c0_85] : memref<72x256xf32, #tpu.memory_space<vmem>>, vector<8x256xf32>
    tpu.vector_store %arg6[%c0_84, %c0_85], %108 {strides = array<i32>} : memref<72x256xf32, #tpu.memory_space<vmem>>, vector<8x256xf32>,
    %c16_i32_86 = arith.constant 16 : i32
    %110 = tpu.dynamic_rotate %104 by %c16_i32_86 dim 1 : vector<8x256xf32>, i32 -> vector<8x256xf32>
    %c1_87 = arith.constant 1 : index
    %c0_88 = arith.constant 0 : index
    %111 = vector.load %arg2[%c1_87, %c0_88] : memref<16x256xf32, #tpu.memory_space<vmem>>, vector<1x256xf32>
    %112 = vector.broadcast %111 : vector<1x256xf32> to vector<8x256xf32>
    %113 = arith.mulf %110, %112 : vector<8x256xf32>
    %c8_89 = arith.constant 8 : index
    %c0_90 = arith.constant 0 : index
    %114 = vector.load %arg6[%c8_89, %c0_90] : memref<72x256xf32, #tpu.memory_space<vmem>>, vector<8x256xf32>
    tpu.vector_store %arg6[%c8_89, %c0_90], %113 {strides = array<i32>} : memref<72x256xf32, #tpu.memory_space<vmem>>, vector<8x256xf32>,
    %c15_i32_91 = arith.constant 15 : i32
    %115 = tpu.dynamic_rotate %104 by %c15_i32_91 dim 1 : vector<8x256xf32>, i32 -> vector<8x256xf32>
    %c2_92 = arith.constant 2 : index
    %c0_93 = arith.constant 0 : index
    %116 = vector.load %arg2[%c2_92, %c0_93] : memref<16x256xf32, #tpu.memory_space<vmem>>, vector<1x256xf32>
    %117 = vector.broadcast %116 : vector<1x256xf32> to vector<8x256xf32>
    %118 = arith.mulf %115, %117 : vector<8x256xf32>
    %c16_94 = arith.constant 16 : index
    %c0_95 = arith.constant 0 : index
    %119 = vector.load %arg6[%c16_94, %c0_95] : memref<72x256xf32, #tpu.memory_space<vmem>>, vector<8x256xf32>
    tpu.vector_store %arg6[%c16_94, %c0_95], %118 {strides = array<i32>} : memref<72x256xf32, #tpu.memory_space<vmem>>, vector<8x256xf32>,
    %c1_i32_96 = arith.constant 1 : i32
    %120 = tpu.dynamic_rotate %104 by %c1_i32_96 dim 1 : vector<8x256xf32>, i32 -> vector<8x256xf32>
    %c3_97 = arith.constant 3 : index
    %c0_98 = arith.constant 0 : index
    %121 = vector.load %arg2[%c3_97, %c0_98] : memref<16x256xf32, #tpu.memory_space<vmem>>, vector<1x256xf32>
    %122 = vector.broadcast %121 : vector<1x256xf32> to vector<8x256xf32>
    %123 = arith.mulf %120, %122 : vector<8x256xf32>
    %c24_99 = arith.constant 24 : index
    %c0_100 = arith.constant 0 : index
    %124 = vector.load %arg6[%c24_99, %c0_100] : memref<72x256xf32, #tpu.memory_space<vmem>>, vector<8x256xf32>
    tpu.vector_store %arg6[%c24_99, %c0_100], %123 {strides = array<i32>} : memref<72x256xf32, #tpu.memory_space<vmem>>, vector<8x256xf32>,
    %c4_101 = arith.constant 4 : index
    %c0_102 = arith.constant 0 : index
    %125 = vector.load %arg2[%c4_101, %c0_102] : memref<16x256xf32, #tpu.memory_space<vmem>>, vector<1x256xf32>
    %126 = vector.broadcast %125 : vector<1x256xf32> to vector<8x256xf32>
    %127 = arith.mulf %104, %126 : vector<8x256xf32>
    %c32_103 = arith.constant 32 : index
    %c0_104 = arith.constant 0 : index
    %128 = vector.load %arg6[%c32_103, %c0_104] : memref<72x256xf32, #tpu.memory_space<vmem>>, vector<8x256xf32>
    tpu.vector_store %arg6[%c32_103, %c0_104], %127 {strides = array<i32>} : memref<72x256xf32, #tpu.memory_space<vmem>>, vector<8x256xf32>,
    %c255_i32_105 = arith.constant 255 : i32
    %129 = tpu.dynamic_rotate %104 by %c255_i32_105 dim 1 : vector<8x256xf32>, i32 -> vector<8x256xf32>
    %c5_106 = arith.constant 5 : index
    %c0_107 = arith.constant 0 : index
    %130 = vector.load %arg2[%c5_106, %c0_107] : memref<16x256xf32, #tpu.memory_space<vmem>>, vector<1x256xf32>
    %131 = vector.broadcast %130 : vector<1x256xf32> to vector<8x256xf32>
    %132 = arith.mulf %129, %131 : vector<8x256xf32>
    %c40_108 = arith.constant 40 : index
    %c0_109 = arith.constant 0 : index
    %133 = vector.load %arg6[%c40_108, %c0_109] : memref<72x256xf32, #tpu.memory_space<vmem>>, vector<8x256xf32>
    tpu.vector_store %arg6[%c40_108, %c0_109], %132 {strides = array<i32>} : memref<72x256xf32, #tpu.memory_space<vmem>>, vector<8x256xf32>,
    %c241_i32_110 = arith.constant 241 : i32
    %134 = tpu.dynamic_rotate %104 by %c241_i32_110 dim 1 : vector<8x256xf32>, i32 -> vector<8x256xf32>
    %c6_111 = arith.constant 6 : index
    %c0_112 = arith.constant 0 : index
    %135 = vector.load %arg2[%c6_111, %c0_112] : memref<16x256xf32, #tpu.memory_space<vmem>>, vector<1x256xf32>
    %136 = vector.broadcast %135 : vector<1x256xf32> to vector<8x256xf32>
    %137 = arith.mulf %134, %136 : vector<8x256xf32>
    %c48_113 = arith.constant 48 : index
    %c0_114 = arith.constant 0 : index
    %138 = vector.load %arg6[%c48_113, %c0_114] : memref<72x256xf32, #tpu.memory_space<vmem>>, vector<8x256xf32>
    tpu.vector_store %arg6[%c48_113, %c0_114], %137 {strides = array<i32>} : memref<72x256xf32, #tpu.memory_space<vmem>>, vector<8x256xf32>,
    %c240_i32_115 = arith.constant 240 : i32
    %139 = tpu.dynamic_rotate %104 by %c240_i32_115 dim 1 : vector<8x256xf32>, i32 -> vector<8x256xf32>
    %c7_116 = arith.constant 7 : index
    %c0_117 = arith.constant 0 : index
    %140 = vector.load %arg2[%c7_116, %c0_117] : memref<16x256xf32, #tpu.memory_space<vmem>>, vector<1x256xf32>
    %141 = vector.broadcast %140 : vector<1x256xf32> to vector<8x256xf32>
    %142 = arith.mulf %139, %141 : vector<8x256xf32>
    %c56_118 = arith.constant 56 : index
    %c0_119 = arith.constant 0 : index
    %143 = vector.load %arg6[%c56_118, %c0_119] : memref<72x256xf32, #tpu.memory_space<vmem>>, vector<8x256xf32>
    tpu.vector_store %arg6[%c56_118, %c0_119], %142 {strides = array<i32>} : memref<72x256xf32, #tpu.memory_space<vmem>>, vector<8x256xf32>,
    %c239_i32_120 = arith.constant 239 : i32
    %144 = tpu.dynamic_rotate %104 by %c239_i32_120 dim 1 : vector<8x256xf32>, i32 -> vector<8x256xf32>
    %c8_121 = arith.constant 8 : index
    %c0_122 = arith.constant 0 : index
    %145 = vector.load %arg2[%c8_121, %c0_122] : memref<16x256xf32, #tpu.memory_space<vmem>>, vector<1x256xf32>
    %146 = vector.broadcast %145 : vector<1x256xf32> to vector<8x256xf32>
    %147 = arith.mulf %144, %146 : vector<8x256xf32>
    %c64_123 = arith.constant 64 : index
    %c0_124 = arith.constant 0 : index
    %148 = vector.load %arg6[%c64_123, %c0_124] : memref<72x256xf32, #tpu.memory_space<vmem>>, vector<8x256xf32>
    tpu.vector_store %arg6[%c64_123, %c0_124], %147 {strides = array<i32>} : memref<72x256xf32, #tpu.memory_space<vmem>>, vector<8x256xf32>,
    %c32_125 = arith.constant 32 : index
    %c0_126 = arith.constant 0 : index
    %149 = vector.load %arg3[%c32_125, %c0_126] : memref<456x128xf32, #tpu.memory_space<vmem>>, vector<8x72xf32>
    %c0_127 = arith.constant 0 : index
    %c0_128 = arith.constant 0 : index
    %150 = vector.load %arg6[%c0_127, %c0_128] : memref<72x256xf32, #tpu.memory_space<vmem>>, vector<72x256xf32>
    %cst_129 = arith.constant dense<0.000000e+00> : vector<8x256xf32>
    %151 = tpu.matmul %149, %150, %cst_129 {dimension_numbers = #tpu.dot_dimension_numbers<[1], [0], [0], [1], [0, 0, 1, 1], [], []>} : vector<8x72xf32>, vector<72x256xf32>, vector<8x256xf32> -> vector<8x256xf32>
    %c40_130 = arith.constant 40 : index
    %c0_131 = arith.constant 0 : index
    %152 = vector.load %arg3[%c40_130, %c0_131] : memref<456x128xf32, #tpu.memory_space<vmem>>, vector<8x1xf32>
    %153 = vector.broadcast %152 : vector<8x1xf32> to vector<8x256xf32>
    %154 = arith.addf %151, %153 : vector<8x256xf32>
    %155 = arith.addf %154, %0 : vector<8x256xf32>
    %cst_132 = arith.constant 0.000000e+00 : f32
    %156 = vector.broadcast %cst_132 : f32 to vector<8x256xf32>
    %157 = arith.maximumf %155, %156 : vector<8x256xf32>
    %c17_i32_133 = arith.constant 17 : i32
    %158 = tpu.dynamic_rotate %157 by %c17_i32_133 dim 1 : vector<8x256xf32>, i32 -> vector<8x256xf32>
    %c0_134 = arith.constant 0 : index
    %c0_135 = arith.constant 0 : index
    %159 = vector.load %arg2[%c0_134, %c0_135] : memref<16x256xf32, #tpu.memory_space<vmem>>, vector<1x256xf32>
    %160 = vector.broadcast %159 : vector<1x256xf32> to vector<8x256xf32>
    %161 = arith.mulf %158, %160 : vector<8x256xf32>
    %c0_136 = arith.constant 0 : index
    %c0_137 = arith.constant 0 : index
    %162 = vector.load %arg6[%c0_136, %c0_137] : memref<72x256xf32, #tpu.memory_space<vmem>>, vector<8x256xf32>
    tpu.vector_store %arg6[%c0_136, %c0_137], %161 {strides = array<i32>} : memref<72x256xf32, #tpu.memory_space<vmem>>, vector<8x256xf32>,
    %c16_i32_138 = arith.constant 16 : i32
    %163 = tpu.dynamic_rotate %157 by %c16_i32_138 dim 1 : vector<8x256xf32>, i32 -> vector<8x256xf32>
    %c1_139 = arith.constant 1 : index
    %c0_140 = arith.constant 0 : index
    %164 = vector.load %arg2[%c1_139, %c0_140] : memref<16x256xf32, #tpu.memory_space<vmem>>, vector<1x256xf32>
    %165 = vector.broadcast %164 : vector<1x256xf32> to vector<8x256xf32>
    %166 = arith.mulf %163, %165 : vector<8x256xf32>
    %c8_141 = arith.constant 8 : index
    %c0_142 = arith.constant 0 : index
    %167 = vector.load %arg6[%c8_141, %c0_142] : memref<72x256xf32, #tpu.memory_space<vmem>>, vector<8x256xf32>
    tpu.vector_store %arg6[%c8_141, %c0_142], %166 {strides = array<i32>} : memref<72x256xf32, #tpu.memory_space<vmem>>, vector<8x256xf32>,
    %c15_i32_143 = arith.constant 15 : i32
    %168 = tpu.dynamic_rotate %157 by %c15_i32_143 dim 1 : vector<8x256xf32>, i32 -> vector<8x256xf32>
    %c2_144 = arith.constant 2 : index
    %c0_145 = arith.constant 0 : index
    %169 = vector.load %arg2[%c2_144, %c0_145] : memref<16x256xf32, #tpu.memory_space<vmem>>, vector<1x256xf32>
    %170 = vector.broadcast %169 : vector<1x256xf32> to vector<8x256xf32>
    %171 = arith.mulf %168, %170 : vector<8x256xf32>
    %c16_146 = arith.constant 16 : index
    %c0_147 = arith.constant 0 : index
    %172 = vector.load %arg6[%c16_146, %c0_147] : memref<72x256xf32, #tpu.memory_space<vmem>>, vector<8x256xf32>
    tpu.vector_store %arg6[%c16_146, %c0_147], %171 {strides = array<i32>} : memref<72x256xf32, #tpu.memory_space<vmem>>, vector<8x256xf32>,
    %c1_i32_148 = arith.constant 1 : i32
    %173 = tpu.dynamic_rotate %157 by %c1_i32_148 dim 1 : vector<8x256xf32>, i32 -> vector<8x256xf32>
    %c3_149 = arith.constant 3 : index
    %c0_150 = arith.constant 0 : index
    %174 = vector.load %arg2[%c3_149, %c0_150] : memref<16x256xf32, #tpu.memory_space<vmem>>, vector<1x256xf32>
    %175 = vector.broadcast %174 : vector<1x256xf32> to vector<8x256xf32>
    %176 = arith.mulf %173, %175 : vector<8x256xf32>
    %c24_151 = arith.constant 24 : index
    %c0_152 = arith.constant 0 : index
    %177 = vector.load %arg6[%c24_151, %c0_152] : memref<72x256xf32, #tpu.memory_space<vmem>>, vector<8x256xf32>
    tpu.vector_store %arg6[%c24_151, %c0_152], %176 {strides = array<i32>} : memref<72x256xf32, #tpu.memory_space<vmem>>, vector<8x256xf32>,
    %c4_153 = arith.constant 4 : index
    %c0_154 = arith.constant 0 : index
    %178 = vector.load %arg2[%c4_153, %c0_154] : memref<16x256xf32, #tpu.memory_space<vmem>>, vector<1x256xf32>
    %179 = vector.broadcast %178 : vector<1x256xf32> to vector<8x256xf32>
    %180 = arith.mulf %157, %179 : vector<8x256xf32>
    %c32_155 = arith.constant 32 : index
    %c0_156 = arith.constant 0 : index
    %181 = vector.load %arg6[%c32_155, %c0_156] : memref<72x256xf32, #tpu.memory_space<vmem>>, vector<8x256xf32>
    tpu.vector_store %arg6[%c32_155, %c0_156], %180 {strides = array<i32>} : memref<72x256xf32, #tpu.memory_space<vmem>>, vector<8x256xf32>,
    %c255_i32_157 = arith.constant 255 : i32
    %182 = tpu.dynamic_rotate %157 by %c255_i32_157 dim 1 : vector<8x256xf32>, i32 -> vector<8x256xf32>
    %c5_158 = arith.constant 5 : index
    %c0_159 = arith.constant 0 : index
    %183 = vector.load %arg2[%c5_158, %c0_159] : memref<16x256xf32, #tpu.memory_space<vmem>>, vector<1x256xf32>
    %184 = vector.broadcast %183 : vector<1x256xf32> to vector<8x256xf32>
    %185 = arith.mulf %182, %184 : vector<8x256xf32>
    %c40_160 = arith.constant 40 : index
    %c0_161 = arith.constant 0 : index
    %186 = vector.load %arg6[%c40_160, %c0_161] : memref<72x256xf32, #tpu.memory_space<vmem>>, vector<8x256xf32>
    tpu.vector_store %arg6[%c40_160, %c0_161], %185 {strides = array<i32>} : memref<72x256xf32, #tpu.memory_space<vmem>>, vector<8x256xf32>,
    %c241_i32_162 = arith.constant 241 : i32
    %187 = tpu.dynamic_rotate %157 by %c241_i32_162 dim 1 : vector<8x256xf32>, i32 -> vector<8x256xf32>
    %c6_163 = arith.constant 6 : index
    %c0_164 = arith.constant 0 : index
    %188 = vector.load %arg2[%c6_163, %c0_164] : memref<16x256xf32, #tpu.memory_space<vmem>>, vector<1x256xf32>
    %189 = vector.broadcast %188 : vector<1x256xf32> to vector<8x256xf32>
    %190 = arith.mulf %187, %189 : vector<8x256xf32>
    %c48_165 = arith.constant 48 : index
    %c0_166 = arith.constant 0 : index
    %191 = vector.load %arg6[%c48_165, %c0_166] : memref<72x256xf32, #tpu.memory_space<vmem>>, vector<8x256xf32>
    tpu.vector_store %arg6[%c48_165, %c0_166], %190 {strides = array<i32>} : memref<72x256xf32, #tpu.memory_space<vmem>>, vector<8x256xf32>,
    %c240_i32_167 = arith.constant 240 : i32
    %192 = tpu.dynamic_rotate %157 by %c240_i32_167 dim 1 : vector<8x256xf32>, i32 -> vector<8x256xf32>
    %c7_168 = arith.constant 7 : index
    %c0_169 = arith.constant 0 : index
    %193 = vector.load %arg2[%c7_168, %c0_169] : memref<16x256xf32, #tpu.memory_space<vmem>>, vector<1x256xf32>
    %194 = vector.broadcast %193 : vector<1x256xf32> to vector<8x256xf32>
    %195 = arith.mulf %192, %194 : vector<8x256xf32>
    %c56_170 = arith.constant 56 : index
    %c0_171 = arith.constant 0 : index
    %196 = vector.load %arg6[%c56_170, %c0_171] : memref<72x256xf32, #tpu.memory_space<vmem>>, vector<8x256xf32>
    tpu.vector_store %arg6[%c56_170, %c0_171], %195 {strides = array<i32>} : memref<72x256xf32, #tpu.memory_space<vmem>>, vector<8x256xf32>,
    %c239_i32_172 = arith.constant 239 : i32
    %197 = tpu.dynamic_rotate %157 by %c239_i32_172 dim 1 : vector<8x256xf32>, i32 -> vector<8x256xf32>
    %c8_173 = arith.constant 8 : index
    %c0_174 = arith.constant 0 : index
    %198 = vector.load %arg2[%c8_173, %c0_174] : memref<16x256xf32, #tpu.memory_space<vmem>>, vector<1x256xf32>
    %199 = vector.broadcast %198 : vector<1x256xf32> to vector<8x256xf32>
    %200 = arith.mulf %197, %199 : vector<8x256xf32>
    %c64_175 = arith.constant 64 : index
    %c0_176 = arith.constant 0 : index
    %201 = vector.load %arg6[%c64_175, %c0_176] : memref<72x256xf32, #tpu.memory_space<vmem>>, vector<8x256xf32>
    tpu.vector_store %arg6[%c64_175, %c0_176], %200 {strides = array<i32>} : memref<72x256xf32, #tpu.memory_space<vmem>>, vector<8x256xf32>,
    %c48_177 = arith.constant 48 : index
    %c0_178 = arith.constant 0 : index
    %202 = vector.load %arg3[%c48_177, %c0_178] : memref<456x128xf32, #tpu.memory_space<vmem>>, vector<8x72xf32>
    %c0_179 = arith.constant 0 : index
    %c0_180 = arith.constant 0 : index
    %203 = vector.load %arg6[%c0_179, %c0_180] : memref<72x256xf32, #tpu.memory_space<vmem>>, vector<72x256xf32>
    %cst_181 = arith.constant dense<0.000000e+00> : vector<8x256xf32>
    %204 = tpu.matmul %202, %203, %cst_181 {dimension_numbers = #tpu.dot_dimension_numbers<[1], [0], [0], [1], [0, 0, 1, 1], [], []>} : vector<8x72xf32>, vector<72x256xf32>, vector<8x256xf32> -> vector<8x256xf32>
    %c56_182 = arith.constant 56 : index
    %c0_183 = arith.constant 0 : index
    %205 = vector.load %arg3[%c56_182, %c0_183] : memref<456x128xf32, #tpu.memory_space<vmem>>, vector<8x1xf32>
    %206 = vector.broadcast %205 : vector<8x1xf32> to vector<8x256xf32>
    %207 = arith.addf %204, %206 : vector<8x256xf32>
    %cst_184 = arith.constant 0.000000e+00 : f32
    %208 = vector.broadcast %cst_184 : f32 to vector<8x256xf32>
    %209 = arith.maximumf %207, %208 : vector<8x256xf32>
    %c17_i32_185 = arith.constant 17 : i32
    %210 = tpu.dynamic_rotate %209 by %c17_i32_185 dim 1 : vector<8x256xf32>, i32 -> vector<8x256xf32>
    %c0_186 = arith.constant 0 : index
    %c0_187 = arith.constant 0 : index
    %211 = vector.load %arg2[%c0_186, %c0_187] : memref<16x256xf32, #tpu.memory_space<vmem>>, vector<1x256xf32>
    %212 = vector.broadcast %211 : vector<1x256xf32> to vector<8x256xf32>
    %213 = arith.mulf %210, %212 : vector<8x256xf32>
    %c0_188 = arith.constant 0 : index
    %c0_189 = arith.constant 0 : index
    %214 = vector.load %arg6[%c0_188, %c0_189] : memref<72x256xf32, #tpu.memory_space<vmem>>, vector<8x256xf32>
    tpu.vector_store %arg6[%c0_188, %c0_189], %213 {strides = array<i32>} : memref<72x256xf32, #tpu.memory_space<vmem>>, vector<8x256xf32>,
    %c16_i32_190 = arith.constant 16 : i32
    %215 = tpu.dynamic_rotate %209 by %c16_i32_190 dim 1 : vector<8x256xf32>, i32 -> vector<8x256xf32>
    %c1_191 = arith.constant 1 : index
    %c0_192 = arith.constant 0 : index
    %216 = vector.load %arg2[%c1_191, %c0_192] : memref<16x256xf32, #tpu.memory_space<vmem>>, vector<1x256xf32>
    %217 = vector.broadcast %216 : vector<1x256xf32> to vector<8x256xf32>
    %218 = arith.mulf %215, %217 : vector<8x256xf32>
    %c8_193 = arith.constant 8 : index
    %c0_194 = arith.constant 0 : index
    %219 = vector.load %arg6[%c8_193, %c0_194] : memref<72x256xf32, #tpu.memory_space<vmem>>, vector<8x256xf32>
    tpu.vector_store %arg6[%c8_193, %c0_194], %218 {strides = array<i32>} : memref<72x256xf32, #tpu.memory_space<vmem>>, vector<8x256xf32>,
    %c15_i32_195 = arith.constant 15 : i32
    %220 = tpu.dynamic_rotate %209 by %c15_i32_195 dim 1 : vector<8x256xf32>, i32 -> vector<8x256xf32>
    %c2_196 = arith.constant 2 : index
    %c0_197 = arith.constant 0 : index
    %221 = vector.load %arg2[%c2_196, %c0_197] : memref<16x256xf32, #tpu.memory_space<vmem>>, vector<1x256xf32>
    %222 = vector.broadcast %221 : vector<1x256xf32> to vector<8x256xf32>
    %223 = arith.mulf %220, %222 : vector<8x256xf32>
    %c16_198 = arith.constant 16 : index
    %c0_199 = arith.constant 0 : index
    %224 = vector.load %arg6[%c16_198, %c0_199] : memref<72x256xf32, #tpu.memory_space<vmem>>, vector<8x256xf32>
    tpu.vector_store %arg6[%c16_198, %c0_199], %223 {strides = array<i32>} : memref<72x256xf32, #tpu.memory_space<vmem>>, vector<8x256xf32>,
    %c1_i32_200 = arith.constant 1 : i32
    %225 = tpu.dynamic_rotate %209 by %c1_i32_200 dim 1 : vector<8x256xf32>, i32 -> vector<8x256xf32>
    %c3_201 = arith.constant 3 : index
    %c0_202 = arith.constant 0 : index
    %226 = vector.load %arg2[%c3_201, %c0_202] : memref<16x256xf32, #tpu.memory_space<vmem>>, vector<1x256xf32>
    %227 = vector.broadcast %226 : vector<1x256xf32> to vector<8x256xf32>
    %228 = arith.mulf %225, %227 : vector<8x256xf32>
    %c24_203 = arith.constant 24 : index
    %c0_204 = arith.constant 0 : index
    %229 = vector.load %arg6[%c24_203, %c0_204] : memref<72x256xf32, #tpu.memory_space<vmem>>, vector<8x256xf32>
    tpu.vector_store %arg6[%c24_203, %c0_204], %228 {strides = array<i32>} : memref<72x256xf32, #tpu.memory_space<vmem>>, vector<8x256xf32>,
    %c4_205 = arith.constant 4 : index
    %c0_206 = arith.constant 0 : index
    %230 = vector.load %arg2[%c4_205, %c0_206] : memref<16x256xf32, #tpu.memory_space<vmem>>, vector<1x256xf32>
    %231 = vector.broadcast %230 : vector<1x256xf32> to vector<8x256xf32>
    %232 = arith.mulf %209, %231 : vector<8x256xf32>
    %c32_207 = arith.constant 32 : index
    %c0_208 = arith.constant 0 : index
    %233 = vector.load %arg6[%c32_207, %c0_208] : memref<72x256xf32, #tpu.memory_space<vmem>>, vector<8x256xf32>
    tpu.vector_store %arg6[%c32_207, %c0_208], %232 {strides = array<i32>} : memref<72x256xf32, #tpu.memory_space<vmem>>, vector<8x256xf32>,
    %c255_i32_209 = arith.constant 255 : i32
    %234 = tpu.dynamic_rotate %209 by %c255_i32_209 dim 1 : vector<8x256xf32>, i32 -> vector<8x256xf32>
    %c5_210 = arith.constant 5 : index
    %c0_211 = arith.constant 0 : index
    %235 = vector.load %arg2[%c5_210, %c0_211] : memref<16x256xf32, #tpu.memory_space<vmem>>, vector<1x256xf32>
    %236 = vector.broadcast %235 : vector<1x256xf32> to vector<8x256xf32>
    %237 = arith.mulf %234, %236 : vector<8x256xf32>
    %c40_212 = arith.constant 40 : index
    %c0_213 = arith.constant 0 : index
    %238 = vector.load %arg6[%c40_212, %c0_213] : memref<72x256xf32, #tpu.memory_space<vmem>>, vector<8x256xf32>
    tpu.vector_store %arg6[%c40_212, %c0_213], %237 {strides = array<i32>} : memref<72x256xf32, #tpu.memory_space<vmem>>, vector<8x256xf32>,
    %c241_i32_214 = arith.constant 241 : i32
    %239 = tpu.dynamic_rotate %209 by %c241_i32_214 dim 1 : vector<8x256xf32>, i32 -> vector<8x256xf32>
    %c6_215 = arith.constant 6 : index
    %c0_216 = arith.constant 0 : index
    %240 = vector.load %arg2[%c6_215, %c0_216] : memref<16x256xf32, #tpu.memory_space<vmem>>, vector<1x256xf32>
    %241 = vector.broadcast %240 : vector<1x256xf32> to vector<8x256xf32>
    %242 = arith.mulf %239, %241 : vector<8x256xf32>
    %c48_217 = arith.constant 48 : index
    %c0_218 = arith.constant 0 : index
    %243 = vector.load %arg6[%c48_217, %c0_218] : memref<72x256xf32, #tpu.memory_space<vmem>>, vector<8x256xf32>
    tpu.vector_store %arg6[%c48_217, %c0_218], %242 {strides = array<i32>} : memref<72x256xf32, #tpu.memory_space<vmem>>, vector<8x256xf32>,
    %c240_i32_219 = arith.constant 240 : i32
    %244 = tpu.dynamic_rotate %209 by %c240_i32_219 dim 1 : vector<8x256xf32>, i32 -> vector<8x256xf32>
    %c7_220 = arith.constant 7 : index
    %c0_221 = arith.constant 0 : index
    %245 = vector.load %arg2[%c7_220, %c0_221] : memref<16x256xf32, #tpu.memory_space<vmem>>, vector<1x256xf32>
    %246 = vector.broadcast %245 : vector<1x256xf32> to vector<8x256xf32>
    %247 = arith.mulf %244, %246 : vector<8x256xf32>
    %c56_222 = arith.constant 56 : index
    %c0_223 = arith.constant 0 : index
    %248 = vector.load %arg6[%c56_222, %c0_223] : memref<72x256xf32, #tpu.memory_space<vmem>>, vector<8x256xf32>
    tpu.vector_store %arg6[%c56_222, %c0_223], %247 {strides = array<i32>} : memref<72x256xf32, #tpu.memory_space<vmem>>, vector<8x256xf32>,
    %c239_i32_224 = arith.constant 239 : i32
    %249 = tpu.dynamic_rotate %209 by %c239_i32_224 dim 1 : vector<8x256xf32>, i32 -> vector<8x256xf32>
    %c8_225 = arith.constant 8 : index
    %c0_226 = arith.constant 0 : index
    %250 = vector.load %arg2[%c8_225, %c0_226] : memref<16x256xf32, #tpu.memory_space<vmem>>, vector<1x256xf32>
    %251 = vector.broadcast %250 : vector<1x256xf32> to vector<8x256xf32>
    %252 = arith.mulf %249, %251 : vector<8x256xf32>
    %c64_227 = arith.constant 64 : index
    %c0_228 = arith.constant 0 : index
    %253 = vector.load %arg6[%c64_227, %c0_228] : memref<72x256xf32, #tpu.memory_space<vmem>>, vector<8x256xf32>
    tpu.vector_store %arg6[%c64_227, %c0_228], %252 {strides = array<i32>} : memref<72x256xf32, #tpu.memory_space<vmem>>, vector<8x256xf32>,
    %c64_229 = arith.constant 64 : index
    %c0_230 = arith.constant 0 : index
    %254 = vector.load %arg3[%c64_229, %c0_230] : memref<456x128xf32, #tpu.memory_space<vmem>>, vector<8x72xf32>
    %c0_231 = arith.constant 0 : index
    %c0_232 = arith.constant 0 : index
    %255 = vector.load %arg6[%c0_231, %c0_232] : memref<72x256xf32, #tpu.memory_space<vmem>>, vector<72x256xf32>
    %cst_233 = arith.constant dense<0.000000e+00> : vector<8x256xf32>
    %256 = tpu.matmul %254, %255, %cst_233 {dimension_numbers = #tpu.dot_dimension_numbers<[1], [0], [0], [1], [0, 0, 1, 1], [], []>} : vector<8x72xf32>, vector<72x256xf32>, vector<8x256xf32> -> vector<8x256xf32>
    %c72 = arith.constant 72 : index
    %c0_234 = arith.constant 0 : index
    %257 = vector.load %arg3[%c72, %c0_234] : memref<456x128xf32, #tpu.memory_space<vmem>>, vector<8x1xf32>
    %258 = vector.broadcast %257 : vector<8x1xf32> to vector<8x256xf32>
    %259 = arith.addf %256, %258 : vector<8x256xf32>
    %cst_235 = arith.constant 0.000000e+00 : f32
    %260 = vector.broadcast %cst_235 : f32 to vector<8x256xf32>
    %261 = arith.maximumf %259, %260 : vector<8x256xf32>
    %c17_i32_236 = arith.constant 17 : i32
    %262 = tpu.dynamic_rotate %261 by %c17_i32_236 dim 1 : vector<8x256xf32>, i32 -> vector<8x256xf32>
    %c0_237 = arith.constant 0 : index
    %c0_238 = arith.constant 0 : index
    %263 = vector.load %arg2[%c0_237, %c0_238] : memref<16x256xf32, #tpu.memory_space<vmem>>, vector<1x256xf32>
    %264 = vector.broadcast %263 : vector<1x256xf32> to vector<8x256xf32>
    %265 = arith.mulf %262, %264 : vector<8x256xf32>
    %c0_239 = arith.constant 0 : index
    %c0_240 = arith.constant 0 : index
    %266 = vector.load %arg6[%c0_239, %c0_240] : memref<72x256xf32, #tpu.memory_space<vmem>>, vector<8x256xf32>
    tpu.vector_store %arg6[%c0_239, %c0_240], %265 {strides = array<i32>} : memref<72x256xf32, #tpu.memory_space<vmem>>, vector<8x256xf32>,
    %c16_i32_241 = arith.constant 16 : i32
    %267 = tpu.dynamic_rotate %261 by %c16_i32_241 dim 1 : vector<8x256xf32>, i32 -> vector<8x256xf32>
    %c1_242 = arith.constant 1 : index
    %c0_243 = arith.constant 0 : index
    %268 = vector.load %arg2[%c1_242, %c0_243] : memref<16x256xf32, #tpu.memory_space<vmem>>, vector<1x256xf32>
    %269 = vector.broadcast %268 : vector<1x256xf32> to vector<8x256xf32>
    %270 = arith.mulf %267, %269 : vector<8x256xf32>
    %c8_244 = arith.constant 8 : index
    %c0_245 = arith.constant 0 : index
    %271 = vector.load %arg6[%c8_244, %c0_245] : memref<72x256xf32, #tpu.memory_space<vmem>>, vector<8x256xf32>
    tpu.vector_store %arg6[%c8_244, %c0_245], %270 {strides = array<i32>} : memref<72x256xf32, #tpu.memory_space<vmem>>, vector<8x256xf32>,
    %c15_i32_246 = arith.constant 15 : i32
    %272 = tpu.dynamic_rotate %261 by %c15_i32_246 dim 1 : vector<8x256xf32>, i32 -> vector<8x256xf32>
    %c2_247 = arith.constant 2 : index
    %c0_248 = arith.constant 0 : index
    %273 = vector.load %arg2[%c2_247, %c0_248] : memref<16x256xf32, #tpu.memory_space<vmem>>, vector<1x256xf32>
    %274 = vector.broadcast %273 : vector<1x256xf32> to vector<8x256xf32>
    %275 = arith.mulf %272, %274 : vector<8x256xf32>
    %c16_249 = arith.constant 16 : index
    %c0_250 = arith.constant 0 : index
    %276 = vector.load %arg6[%c16_249, %c0_250] : memref<72x256xf32, #tpu.memory_space<vmem>>, vector<8x256xf32>
    tpu.vector_store %arg6[%c16_249, %c0_250], %275 {strides = array<i32>} : memref<72x256xf32, #tpu.memory_space<vmem>>, vector<8x256xf32>,
    %c1_i32_251 = arith.constant 1 : i32
    %277 = tpu.dynamic_rotate %261 by %c1_i32_251 dim 1 : vector<8x256xf32>, i32 -> vector<8x256xf32>
    %c3_252 = arith.constant 3 : index
    %c0_253 = arith.constant 0 : index
    %278 = vector.load %arg2[%c3_252, %c0_253] : memref<16x256xf32, #tpu.memory_space<vmem>>, vector<1x256xf32>
    %279 = vector.broadcast %278 : vector<1x256xf32> to vector<8x256xf32>
    %280 = arith.mulf %277, %279 : vector<8x256xf32>
    %c24_254 = arith.constant 24 : index
    %c0_255 = arith.constant 0 : index
    %281 = vector.load %arg6[%c24_254, %c0_255] : memref<72x256xf32, #tpu.memory_space<vmem>>, vector<8x256xf32>
    tpu.vector_store %arg6[%c24_254, %c0_255], %280 {strides = array<i32>} : memref<72x256xf32, #tpu.memory_space<vmem>>, vector<8x256xf32>,
    %c4_256 = arith.constant 4 : index
    %c0_257 = arith.constant 0 : index
    %282 = vector.load %arg2[%c4_256, %c0_257] : memref<16x256xf32, #tpu.memory_space<vmem>>, vector<1x256xf32>
    %283 = vector.broadcast %282 : vector<1x256xf32> to vector<8x256xf32>
    %284 = arith.mulf %261, %283 : vector<8x256xf32>
    %c32_258 = arith.constant 32 : index
    %c0_259 = arith.constant 0 : index
    %285 = vector.load %arg6[%c32_258, %c0_259] : memref<72x256xf32, #tpu.memory_space<vmem>>, vector<8x256xf32>
    tpu.vector_store %arg6[%c32_258, %c0_259], %284 {strides = array<i32>} : memref<72x256xf32, #tpu.memory_space<vmem>>, vector<8x256xf32>,
    %c255_i32_260 = arith.constant 255 : i32
    %286 = tpu.dynamic_rotate %261 by %c255_i32_260 dim 1 : vector<8x256xf32>, i32 -> vector<8x256xf32>
    %c5_261 = arith.constant 5 : index
    %c0_262 = arith.constant 0 : index
    %287 = vector.load %arg2[%c5_261, %c0_262] : memref<16x256xf32, #tpu.memory_space<vmem>>, vector<1x256xf32>
    %288 = vector.broadcast %287 : vector<1x256xf32> to vector<8x256xf32>
    %289 = arith.mulf %286, %288 : vector<8x256xf32>
    %c40_263 = arith.constant 40 : index
    %c0_264 = arith.constant 0 : index
    %290 = vector.load %arg6[%c40_263, %c0_264] : memref<72x256xf32, #tpu.memory_space<vmem>>, vector<8x256xf32>
    tpu.vector_store %arg6[%c40_263, %c0_264], %289 {strides = array<i32>} : memref<72x256xf32, #tpu.memory_space<vmem>>, vector<8x256xf32>,
    %c241_i32_265 = arith.constant 241 : i32
    %291 = tpu.dynamic_rotate %261 by %c241_i32_265 dim 1 : vector<8x256xf32>, i32 -> vector<8x256xf32>
    %c6_266 = arith.constant 6 : index
    %c0_267 = arith.constant 0 : index
    %292 = vector.load %arg2[%c6_266, %c0_267] : memref<16x256xf32, #tpu.memory_space<vmem>>, vector<1x256xf32>
    %293 = vector.broadcast %292 : vector<1x256xf32> to vector<8x256xf32>
    %294 = arith.mulf %291, %293 : vector<8x256xf32>
    %c48_268 = arith.constant 48 : index
    %c0_269 = arith.constant 0 : index
    %295 = vector.load %arg6[%c48_268, %c0_269] : memref<72x256xf32, #tpu.memory_space<vmem>>, vector<8x256xf32>
    tpu.vector_store %arg6[%c48_268, %c0_269], %294 {strides = array<i32>} : memref<72x256xf32, #tpu.memory_space<vmem>>, vector<8x256xf32>,
    %c240_i32_270 = arith.constant 240 : i32
    %296 = tpu.dynamic_rotate %261 by %c240_i32_270 dim 1 : vector<8x256xf32>, i32 -> vector<8x256xf32>
    %c7_271 = arith.constant 7 : index
    %c0_272 = arith.constant 0 : index
    %297 = vector.load %arg2[%c7_271, %c0_272] : memref<16x256xf32, #tpu.memory_space<vmem>>, vector<1x256xf32>
    %298 = vector.broadcast %297 : vector<1x256xf32> to vector<8x256xf32>
    %299 = arith.mulf %296, %298 : vector<8x256xf32>
    %c56_273 = arith.constant 56 : index
    %c0_274 = arith.constant 0 : index
    %300 = vector.load %arg6[%c56_273, %c0_274] : memref<72x256xf32, #tpu.memory_space<vmem>>, vector<8x256xf32>
    tpu.vector_store %arg6[%c56_273, %c0_274], %299 {strides = array<i32>} : memref<72x256xf32, #tpu.memory_space<vmem>>, vector<8x256xf32>,
    %c239_i32_275 = arith.constant 239 : i32
    %301 = tpu.dynamic_rotate %261 by %c239_i32_275 dim 1 : vector<8x256xf32>, i32 -> vector<8x256xf32>
    %c8_276 = arith.constant 8 : index
    %c0_277 = arith.constant 0 : index
    %302 = vector.load %arg2[%c8_276, %c0_277] : memref<16x256xf32, #tpu.memory_space<vmem>>, vector<1x256xf32>
    %303 = vector.broadcast %302 : vector<1x256xf32> to vector<8x256xf32>
    %304 = arith.mulf %301, %303 : vector<8x256xf32>
    %c64_278 = arith.constant 64 : index
    %c0_279 = arith.constant 0 : index
    %305 = vector.load %arg6[%c64_278, %c0_279] : memref<72x256xf32, #tpu.memory_space<vmem>>, vector<8x256xf32>
    tpu.vector_store %arg6[%c64_278, %c0_279], %304 {strides = array<i32>} : memref<72x256xf32, #tpu.memory_space<vmem>>, vector<8x256xf32>,
    %c80 = arith.constant 80 : index
    %c0_280 = arith.constant 0 : index
    %306 = vector.load %arg3[%c80, %c0_280] : memref<456x128xf32, #tpu.memory_space<vmem>>, vector<8x72xf32>
    %c0_281 = arith.constant 0 : index
    %c0_282 = arith.constant 0 : index
    %307 = vector.load %arg6[%c0_281, %c0_282] : memref<72x256xf32, #tpu.memory_space<vmem>>, vector<72x256xf32>
    %cst_283 = arith.constant dense<0.000000e+00> : vector<8x256xf32>
    %308 = tpu.matmul %306, %307, %cst_283 {dimension_numbers = #tpu.dot_dimension_numbers<[1], [0], [0], [1], [0, 0, 1, 1], [], []>} : vector<8x72xf32>, vector<72x256xf32>, vector<8x256xf32> -> vector<8x256xf32>
    %c88 = arith.constant 88 : index
    %c0_284 = arith.constant 0 : index
    %309 = vector.load %arg3[%c88, %c0_284] : memref<456x128xf32, #tpu.memory_space<vmem>>, vector<8x1xf32>
    %310 = vector.broadcast %309 : vector<8x1xf32> to vector<8x256xf32>
    %311 = arith.addf %308, %310 : vector<8x256xf32>
    %cst_285 = arith.constant 0.000000e+00 : f32
    %312 = vector.broadcast %cst_285 : f32 to vector<8x256xf32>
    %313 = arith.maximumf %311, %312 : vector<8x256xf32>
    %c17_i32_286 = arith.constant 17 : i32
    %314 = tpu.dynamic_rotate %313 by %c17_i32_286 dim 1 : vector<8x256xf32>, i32 -> vector<8x256xf32>
    %c0_287 = arith.constant 0 : index
    %c0_288 = arith.constant 0 : index
    %315 = vector.load %arg2[%c0_287, %c0_288] : memref<16x256xf32, #tpu.memory_space<vmem>>, vector<1x256xf32>
    %316 = vector.broadcast %315 : vector<1x256xf32> to vector<8x256xf32>
    %317 = arith.mulf %314, %316 : vector<8x256xf32>
    %c0_289 = arith.constant 0 : index
    %c0_290 = arith.constant 0 : index
    %318 = vector.load %arg6[%c0_289, %c0_290] : memref<72x256xf32, #tpu.memory_space<vmem>>, vector<8x256xf32>
    tpu.vector_store %arg6[%c0_289, %c0_290], %317 {strides = array<i32>} : memref<72x256xf32, #tpu.memory_space<vmem>>, vector<8x256xf32>,
    %c16_i32_291 = arith.constant 16 : i32
    %319 = tpu.dynamic_rotate %313 by %c16_i32_291 dim 1 : vector<8x256xf32>, i32 -> vector<8x256xf32>
    %c1_292 = arith.constant 1 : index
    %c0_293 = arith.constant 0 : index
    %320 = vector.load %arg2[%c1_292, %c0_293] : memref<16x256xf32, #tpu.memory_space<vmem>>, vector<1x256xf32>
    %321 = vector.broadcast %320 : vector<1x256xf32> to vector<8x256xf32>
    %322 = arith.mulf %319, %321 : vector<8x256xf32>
    %c8_294 = arith.constant 8 : index
    %c0_295 = arith.constant 0 : index
    %323 = vector.load %arg6[%c8_294, %c0_295] : memref<72x256xf32, #tpu.memory_space<vmem>>, vector<8x256xf32>
    tpu.vector_store %arg6[%c8_294, %c0_295], %322 {strides = array<i32>} : memref<72x256xf32, #tpu.memory_space<vmem>>, vector<8x256xf32>,
    %c15_i32_296 = arith.constant 15 : i32
    %324 = tpu.dynamic_rotate %313 by %c15_i32_296 dim 1 : vector<8x256xf32>, i32 -> vector<8x256xf32>
    %c2_297 = arith.constant 2 : index
    %c0_298 = arith.constant 0 : index
    %325 = vector.load %arg2[%c2_297, %c0_298] : memref<16x256xf32, #tpu.memory_space<vmem>>, vector<1x256xf32>
    %326 = vector.broadcast %325 : vector<1x256xf32> to vector<8x256xf32>
    %327 = arith.mulf %324, %326 : vector<8x256xf32>
    %c16_299 = arith.constant 16 : index
    %c0_300 = arith.constant 0 : index
    %328 = vector.load %arg6[%c16_299, %c0_300] : memref<72x256xf32, #tpu.memory_space<vmem>>, vector<8x256xf32>
    tpu.vector_store %arg6[%c16_299, %c0_300], %327 {strides = array<i32>} : memref<72x256xf32, #tpu.memory_space<vmem>>, vector<8x256xf32>,
    %c1_i32_301 = arith.constant 1 : i32
    %329 = tpu.dynamic_rotate %313 by %c1_i32_301 dim 1 : vector<8x256xf32>, i32 -> vector<8x256xf32>
    %c3_302 = arith.constant 3 : index
    %c0_303 = arith.constant 0 : index
    %330 = vector.load %arg2[%c3_302, %c0_303] : memref<16x256xf32, #tpu.memory_space<vmem>>, vector<1x256xf32>
    %331 = vector.broadcast %330 : vector<1x256xf32> to vector<8x256xf32>
    %332 = arith.mulf %329, %331 : vector<8x256xf32>
    %c24_304 = arith.constant 24 : index
    %c0_305 = arith.constant 0 : index
    %333 = vector.load %arg6[%c24_304, %c0_305] : memref<72x256xf32, #tpu.memory_space<vmem>>, vector<8x256xf32>
    tpu.vector_store %arg6[%c24_304, %c0_305], %332 {strides = array<i32>} : memref<72x256xf32, #tpu.memory_space<vmem>>, vector<8x256xf32>,
    %c4_306 = arith.constant 4 : index
    %c0_307 = arith.constant 0 : index
    %334 = vector.load %arg2[%c4_306, %c0_307] : memref<16x256xf32, #tpu.memory_space<vmem>>, vector<1x256xf32>
    %335 = vector.broadcast %334 : vector<1x256xf32> to vector<8x256xf32>
    %336 = arith.mulf %313, %335 : vector<8x256xf32>
    %c32_308 = arith.constant 32 : index
    %c0_309 = arith.constant 0 : index
    %337 = vector.load %arg6[%c32_308, %c0_309] : memref<72x256xf32, #tpu.memory_space<vmem>>, vector<8x256xf32>
    tpu.vector_store %arg6[%c32_308, %c0_309], %336 {strides = array<i32>} : memref<72x256xf32, #tpu.memory_space<vmem>>, vector<8x256xf32>,
    %c255_i32_310 = arith.constant 255 : i32
    %338 = tpu.dynamic_rotate %313 by %c255_i32_310 dim 1 : vector<8x256xf32>, i32 -> vector<8x256xf32>
    %c5_311 = arith.constant 5 : index
    %c0_312 = arith.constant 0 : index
    %339 = vector.load %arg2[%c5_311, %c0_312] : memref<16x256xf32, #tpu.memory_space<vmem>>, vector<1x256xf32>
    %340 = vector.broadcast %339 : vector<1x256xf32> to vector<8x256xf32>
    %341 = arith.mulf %338, %340 : vector<8x256xf32>
    %c40_313 = arith.constant 40 : index
    %c0_314 = arith.constant 0 : index
    %342 = vector.load %arg6[%c40_313, %c0_314] : memref<72x256xf32, #tpu.memory_space<vmem>>, vector<8x256xf32>
    tpu.vector_store %arg6[%c40_313, %c0_314], %341 {strides = array<i32>} : memref<72x256xf32, #tpu.memory_space<vmem>>, vector<8x256xf32>,
    %c241_i32_315 = arith.constant 241 : i32
    %343 = tpu.dynamic_rotate %313 by %c241_i32_315 dim 1 : vector<8x256xf32>, i32 -> vector<8x256xf32>
    %c6_316 = arith.constant 6 : index
    %c0_317 = arith.constant 0 : index
    %344 = vector.load %arg2[%c6_316, %c0_317] : memref<16x256xf32, #tpu.memory_space<vmem>>, vector<1x256xf32>
    %345 = vector.broadcast %344 : vector<1x256xf32> to vector<8x256xf32>
    %346 = arith.mulf %343, %345 : vector<8x256xf32>
    %c48_318 = arith.constant 48 : index
    %c0_319 = arith.constant 0 : index
    %347 = vector.load %arg6[%c48_318, %c0_319] : memref<72x256xf32, #tpu.memory_space<vmem>>, vector<8x256xf32>
    tpu.vector_store %arg6[%c48_318, %c0_319], %346 {strides = array<i32>} : memref<72x256xf32, #tpu.memory_space<vmem>>, vector<8x256xf32>,
    %c240_i32_320 = arith.constant 240 : i32
    %348 = tpu.dynamic_rotate %313 by %c240_i32_320 dim 1 : vector<8x256xf32>, i32 -> vector<8x256xf32>
    %c7_321 = arith.constant 7 : index
    %c0_322 = arith.constant 0 : index
    %349 = vector.load %arg2[%c7_321, %c0_322] : memref<16x256xf32, #tpu.memory_space<vmem>>, vector<1x256xf32>
    %350 = vector.broadcast %349 : vector<1x256xf32> to vector<8x256xf32>
    %351 = arith.mulf %348, %350 : vector<8x256xf32>
    %c56_323 = arith.constant 56 : index
    %c0_324 = arith.constant 0 : index
    %352 = vector.load %arg6[%c56_323, %c0_324] : memref<72x256xf32, #tpu.memory_space<vmem>>, vector<8x256xf32>
    tpu.vector_store %arg6[%c56_323, %c0_324], %351 {strides = array<i32>} : memref<72x256xf32, #tpu.memory_space<vmem>>, vector<8x256xf32>,
    %c239_i32_325 = arith.constant 239 : i32
    %353 = tpu.dynamic_rotate %313 by %c239_i32_325 dim 1 : vector<8x256xf32>, i32 -> vector<8x256xf32>
    %c8_326 = arith.constant 8 : index
    %c0_327 = arith.constant 0 : index
    %354 = vector.load %arg2[%c8_326, %c0_327] : memref<16x256xf32, #tpu.memory_space<vmem>>, vector<1x256xf32>
    %355 = vector.broadcast %354 : vector<1x256xf32> to vector<8x256xf32>
    %356 = arith.mulf %353, %355 : vector<8x256xf32>
    %c64_328 = arith.constant 64 : index
    %c0_329 = arith.constant 0 : index
    %357 = vector.load %arg6[%c64_328, %c0_329] : memref<72x256xf32, #tpu.memory_space<vmem>>, vector<8x256xf32>
    tpu.vector_store %arg6[%c64_328, %c0_329], %356 {strides = array<i32>} : memref<72x256xf32, #tpu.memory_space<vmem>>, vector<8x256xf32>,
    %c96 = arith.constant 96 : index
    %c0_330 = arith.constant 0 : index
    %358 = vector.load %arg3[%c96, %c0_330] : memref<456x128xf32, #tpu.memory_space<vmem>>, vector<8x72xf32>
    %c0_331 = arith.constant 0 : index
    %c0_332 = arith.constant 0 : index
    %359 = vector.load %arg6[%c0_331, %c0_332] : memref<72x256xf32, #tpu.memory_space<vmem>>, vector<72x256xf32>
    %cst_333 = arith.constant dense<0.000000e+00> : vector<8x256xf32>
    %360 = tpu.matmul %358, %359, %cst_333 {dimension_numbers = #tpu.dot_dimension_numbers<[1], [0], [0], [1], [0, 0, 1, 1], [], []>} : vector<8x72xf32>, vector<72x256xf32>, vector<8x256xf32> -> vector<8x256xf32>
    %c104 = arith.constant 104 : index
    %c0_334 = arith.constant 0 : index
    %361 = vector.load %arg3[%c104, %c0_334] : memref<456x128xf32, #tpu.memory_space<vmem>>, vector<8x1xf32>
    %362 = vector.broadcast %361 : vector<8x1xf32> to vector<8x256xf32>
    %363 = arith.addf %360, %362 : vector<8x256xf32>
    %364 = arith.addf %363, %209 : vector<8x256xf32>
    %cst_335 = arith.constant 0.000000e+00 : f32
    %365 = vector.broadcast %cst_335 : f32 to vector<8x256xf32>
    %366 = arith.maximumf %364, %365 : vector<8x256xf32>
    tpu.wait_dma2 semaphore(%arg8 : memref<!tpu.dma_semaphore, #tpu.memory_space<semaphore_mem>>) src(%arg4 : memref<2048x64xf32, #tpu.memory_space<any>>) dst(%arg7 : memref<2048x64xf32, #tpu.memory_space<vmem>>)
    %367 = vector.extract_strided_slice %366 {offsets = [0, 0], sizes = [1, 256], strides = [1, 1]} : vector<8x256xf32> to vector<1x256xf32>
    %c0_336 = arith.constant 0 : index
    %c0_337 = arith.constant 0 : index
    %368 = vector.load %arg7[%c0_336, %c0_337] : memref<2048x64xf32, #tpu.memory_space<vmem>>, vector<256x64xf32>
    %cst_338 = arith.constant dense<0.000000e+00> : vector<1x64xf32>
    %369 = tpu.matmul %367, %368, %cst_338 {dimension_numbers = #tpu.dot_dimension_numbers<[1], [0], [0], [1], [0, 0, 1, 1], [], []>} : vector<1x256xf32>, vector<256x64xf32>, vector<1x64xf32> -> vector<1x64xf32>
    %370 = vector.extract_strided_slice %366 {offsets = [1, 0], sizes = [1, 256], strides = [1, 1]} : vector<8x256xf32> to vector<1x256xf32>
    %c256 = arith.constant 256 : index
    %c0_339 = arith.constant 0 : index
    %371 = vector.load %arg7[%c256, %c0_339] : memref<2048x64xf32, #tpu.memory_space<vmem>>, vector<256x64xf32>
    %cst_340 = arith.constant dense<0.000000e+00> : vector<1x64xf32>
    %372 = tpu.matmul %370, %371, %cst_340 {dimension_numbers = #tpu.dot_dimension_numbers<[1], [0], [0], [1], [0, 0, 1, 1], [], []>} : vector<1x256xf32>, vector<256x64xf32>, vector<1x64xf32> -> vector<1x64xf32>
    %373 = vector.extract_strided_slice %366 {offsets = [2, 0], sizes = [1, 256], strides = [1, 1]} : vector<8x256xf32> to vector<1x256xf32>
    %c512 = arith.constant 512 : index
    %c0_341 = arith.constant 0 : index
    %374 = vector.load %arg7[%c512, %c0_341] : memref<2048x64xf32, #tpu.memory_space<vmem>>, vector<256x64xf32>
    %cst_342 = arith.constant dense<0.000000e+00> : vector<1x64xf32>
    %375 = tpu.matmul %373, %374, %cst_342 {dimension_numbers = #tpu.dot_dimension_numbers<[1], [0], [0], [1], [0, 0, 1, 1], [], []>} : vector<1x256xf32>, vector<256x64xf32>, vector<1x64xf32> -> vector<1x64xf32>
    %376 = vector.extract_strided_slice %366 {offsets = [3, 0], sizes = [1, 256], strides = [1, 1]} : vector<8x256xf32> to vector<1x256xf32>
    %c768 = arith.constant 768 : index
    %c0_343 = arith.constant 0 : index
    %377 = vector.load %arg7[%c768, %c0_343] : memref<2048x64xf32, #tpu.memory_space<vmem>>, vector<256x64xf32>
    %cst_344 = arith.constant dense<0.000000e+00> : vector<1x64xf32>
    %378 = tpu.matmul %376, %377, %cst_344 {dimension_numbers = #tpu.dot_dimension_numbers<[1], [0], [0], [1], [0, 0, 1, 1], [], []>} : vector<1x256xf32>, vector<256x64xf32>, vector<1x64xf32> -> vector<1x64xf32>
    %379 = vector.extract_strided_slice %366 {offsets = [4, 0], sizes = [1, 256], strides = [1, 1]} : vector<8x256xf32> to vector<1x256xf32>
    %c1024 = arith.constant 1024 : index
    %c0_345 = arith.constant 0 : index
    %380 = vector.load %arg7[%c1024, %c0_345] : memref<2048x64xf32, #tpu.memory_space<vmem>>, vector<256x64xf32>
    %cst_346 = arith.constant dense<0.000000e+00> : vector<1x64xf32>
    %381 = tpu.matmul %379, %380, %cst_346 {dimension_numbers = #tpu.dot_dimension_numbers<[1], [0], [0], [1], [0, 0, 1, 1], [], []>} : vector<1x256xf32>, vector<256x64xf32>, vector<1x64xf32> -> vector<1x64xf32>
    %382 = vector.extract_strided_slice %366 {offsets = [5, 0], sizes = [1, 256], strides = [1, 1]} : vector<8x256xf32> to vector<1x256xf32>
    %c1280 = arith.constant 1280 : index
    %c0_347 = arith.constant 0 : index
    %383 = vector.load %arg7[%c1280, %c0_347] : memref<2048x64xf32, #tpu.memory_space<vmem>>, vector<256x64xf32>
    %cst_348 = arith.constant dense<0.000000e+00> : vector<1x64xf32>
    %384 = tpu.matmul %382, %383, %cst_348 {dimension_numbers = #tpu.dot_dimension_numbers<[1], [0], [0], [1], [0, 0, 1, 1], [], []>} : vector<1x256xf32>, vector<256x64xf32>, vector<1x64xf32> -> vector<1x64xf32>
    %385 = vector.extract_strided_slice %366 {offsets = [6, 0], sizes = [1, 256], strides = [1, 1]} : vector<8x256xf32> to vector<1x256xf32>
    %c1536 = arith.constant 1536 : index
    %c0_349 = arith.constant 0 : index
    %386 = vector.load %arg7[%c1536, %c0_349] : memref<2048x64xf32, #tpu.memory_space<vmem>>, vector<256x64xf32>
    %cst_350 = arith.constant dense<0.000000e+00> : vector<1x64xf32>
    %387 = tpu.matmul %385, %386, %cst_350 {dimension_numbers = #tpu.dot_dimension_numbers<[1], [0], [0], [1], [0, 0, 1, 1], [], []>} : vector<1x256xf32>, vector<256x64xf32>, vector<1x64xf32> -> vector<1x64xf32>
    %388 = vector.extract_strided_slice %366 {offsets = [7, 0], sizes = [1, 256], strides = [1, 1]} : vector<8x256xf32> to vector<1x256xf32>
    %c1792 = arith.constant 1792 : index
    %c0_351 = arith.constant 0 : index
    %389 = vector.load %arg7[%c1792, %c0_351] : memref<2048x64xf32, #tpu.memory_space<vmem>>, vector<256x64xf32>
    %cst_352 = arith.constant dense<0.000000e+00> : vector<1x64xf32>
    %390 = tpu.matmul %388, %389, %cst_352 {dimension_numbers = #tpu.dot_dimension_numbers<[1], [0], [0], [1], [0, 0, 1, 1], [], []>} : vector<1x256xf32>, vector<256x64xf32>, vector<1x64xf32> -> vector<1x64xf32>
    %391 = arith.addf %369, %372 : vector<1x64xf32>
    %392 = arith.addf %375, %378 : vector<1x64xf32>
    %393 = arith.addf %381, %384 : vector<1x64xf32>
    %394 = arith.addf %387, %390 : vector<1x64xf32>
    %395 = arith.addf %391, %392 : vector<1x64xf32>
    %396 = arith.addf %393, %394 : vector<1x64xf32>
    %397 = arith.addf %395, %396 : vector<1x64xf32>
    %c112 = arith.constant 112 : index
    %c0_353 = arith.constant 0 : index
    %398 = vector.load %arg3[%c112, %c0_353] : memref<456x128xf32, #tpu.memory_space<vmem>>, vector<1x64xf32>
    %399 = arith.addf %397, %398 : vector<1x64xf32>
    %cst_354 = arith.constant 0.000000e+00 : f32
    %400 = vector.broadcast %cst_354 : f32 to vector<1x64xf32>
    %401 = arith.maximumf %399, %400 : vector<1x64xf32>
    %c120 = arith.constant 120 : index
    %c0_355 = arith.constant 0 : index
    %402 = vector.load %arg3[%c120, %c0_355] : memref<456x128xf32, #tpu.memory_space<vmem>>, vector<64x32xf32>
    %cst_356 = arith.constant dense<0.000000e+00> : vector<1x32xf32>
    %403 = tpu.matmul %401, %402, %cst_356 {dimension_numbers = #tpu.dot_dimension_numbers<[1], [0], [0], [1], [0, 0, 1, 1], [], []>} : vector<1x64xf32>, vector<64x32xf32>, vector<1x32xf32> -> vector<1x32xf32>
    %c184 = arith.constant 184 : index
    %c0_357 = arith.constant 0 : index
    %404 = vector.load %arg3[%c184, %c0_357] : memref<456x128xf32, #tpu.memory_space<vmem>>, vector<1x32xf32>
    %405 = arith.addf %403, %404 : vector<1x32xf32>
    %c0_358 = arith.constant 0 : index
    %c0_359 = arith.constant 0 : index
    %406 = vector.load %arg1[%c0_358, %c0_359] : memref<1x16xf32, #tpu.memory_space<vmem>>, vector<1x16xf32>
    %c192 = arith.constant 192 : index
    %c0_360 = arith.constant 0 : index
    %407 = vector.load %arg3[%c192, %c0_360] : memref<456x128xf32, #tpu.memory_space<vmem>>, vector<16x128xf32>
    %cst_361 = arith.constant dense<0.000000e+00> : vector<1x128xf32>
    %408 = tpu.matmul %406, %407, %cst_361 {dimension_numbers = #tpu.dot_dimension_numbers<[1], [0], [0], [1], [0, 0, 1, 1], [], []>} : vector<1x16xf32>, vector<16x128xf32>, vector<1x128xf32> -> vector<1x128xf32>
    %c208 = arith.constant 208 : index
    %c0_362 = arith.constant 0 : index
    %409 = vector.load %arg3[%c208, %c0_362] : memref<456x128xf32, #tpu.memory_space<vmem>>, vector<32x128xf32>
    %cst_363 = arith.constant dense<0.000000e+00> : vector<1x128xf32>
    %410 = tpu.matmul %405, %409, %cst_363 {dimension_numbers = #tpu.dot_dimension_numbers<[1], [0], [0], [1], [0, 0, 1, 1], [], []>} : vector<1x32xf32>, vector<32x128xf32>, vector<1x128xf32> -> vector<1x128xf32>
    %411 = arith.addf %408, %410 : vector<1x128xf32>
    %c240 = arith.constant 240 : index
    %c0_364 = arith.constant 0 : index
    %412 = vector.load %arg3[%c240, %c0_364] : memref<456x128xf32, #tpu.memory_space<vmem>>, vector<1x128xf32>
    %413 = arith.addf %411, %412 : vector<1x128xf32>
    %cst_365 = arith.constant 0.000000e+00 : f32
    %414 = vector.broadcast %cst_365 : f32 to vector<1x128xf32>
    %415 = arith.maximumf %413, %414 : vector<1x128xf32>
    %c248 = arith.constant 248 : index
    %c0_366 = arith.constant 0 : index
    %416 = vector.load %arg3[%c248, %c0_366] : memref<456x128xf32, #tpu.memory_space<vmem>>, vector<128x64xf32>
    %cst_367 = arith.constant dense<0.000000e+00> : vector<1x64xf32>
    %417 = tpu.matmul %415, %416, %cst_367 {dimension_numbers = #tpu.dot_dimension_numbers<[1], [0], [0], [1], [0, 0, 1, 1], [], []>} : vector<1x128xf32>, vector<128x64xf32>, vector<1x64xf32> -> vector<1x64xf32>
    %c376 = arith.constant 376 : index
    %c0_368 = arith.constant 0 : index
    %418 = vector.load %arg3[%c376, %c0_368] : memref<456x128xf32, #tpu.memory_space<vmem>>, vector<1x64xf32>
    %419 = arith.addf %417, %418 : vector<1x64xf32>
    %cst_369 = arith.constant 0.000000e+00 : f32
    %420 = vector.broadcast %cst_369 : f32 to vector<1x64xf32>
    %421 = arith.maximumf %419, %420 : vector<1x64xf32>
    %c384 = arith.constant 384 : index
    %c0_370 = arith.constant 0 : index
    %422 = vector.load %arg3[%c384, %c0_370] : memref<456x128xf32, #tpu.memory_space<vmem>>, vector<64x128xf32>
    %cst_371 = arith.constant dense<0.000000e+00> : vector<1x128xf32>
    %423 = tpu.matmul %421, %422, %cst_371 {dimension_numbers = #tpu.dot_dimension_numbers<[1], [0], [0], [1], [0, 0, 1, 1], [], []>} : vector<1x64xf32>, vector<64x128xf32>, vector<1x128xf32> -> vector<1x128xf32>
    %c448 = arith.constant 448 : index
    %c0_372 = arith.constant 0 : index
    %424 = vector.load %arg3[%c448, %c0_372] : memref<456x128xf32, #tpu.memory_space<vmem>>, vector<1x128xf32>
    %425 = arith.addf %423, %424 : vector<1x128xf32>
    %c0_373 = arith.constant 0 : index
    %c0_374 = arith.constant 0 : index
    %426 = vector.load %arg5[%c0_373, %c0_374] : memref<1x128xf32, #tpu.memory_space<vmem>>, vector<1x128xf32>
    tpu.vector_store %arg5[%c0_373, %c0_374], %425 {strides = array<i32>} : memref<1x128xf32, #tpu.memory_space<vmem>>, vector<1x128xf32>,
    return
  }
}

</mosaic_0001>

<bundles_post_ra>
// kernel: fused_forward.1
= control target key start
LH: loop header
LB: loop body
LE: loop exit
PB: predicated region body
PF: predicated region fallthrough
CT: control target
= control target key end

     0   :  { %s5394_s0 = inlined_call_operand.vmem [shape: f32[8,256], index: 0, kind: input, shape index: {}]   ;;  %s5395_s1 = inlined_call_operand.vmem [shape: f32[1,16], index: 1, kind: input, shape index: {}]   ;;  %s5396_s2 = inlined_call_operand.vmem [shape: f32[16,256], index: 2, kind: input, shape index: {}]   ;;  %s5397_s3 = inlined_call_operand.vmem [shape: f32[456,128], index: 3, kind: input, shape index: {}]   ;;  %s5398_s4 = inlined_call_operand.vmem [shape: f32[2048,64], index: 4, kind: input, shape index: {}]   ;;  %s5399_s5 = inlined_call_operand.vmem [shape: f32[1,128], index: 5, kind: output, shape index: {}]  }
   0x1   :  { %v2949_v0 = vld [vmem:[%s5398_s4] sm:$0xff]  ;;  %v2954_v1 = vld [vmem:[%s5398_s4 + $0x8] sm:$0xff]  ;;  %v2959_v2 = vld [vmem:[%s5398_s4 + $0x10] sm:$0xff] }
   0x2   :  { %5400 = vst [vmem:[#allocation7_spill] sm:$0xff] %v2949_v0  ;;  %v2964_v3 = vld [vmem:[%s5398_s4 + $0x18] sm:$0xff]  ;;  %v2969_v4 = vld [vmem:[%s5398_s4 + $0x20] sm:$0xff]  ;;  %v2974_v5 = vld [vmem:[%s5398_s4 + $0x28] sm:$0xff] }
   0x3   :  { %5401 = vst [vmem:[#allocation8_spill] sm:$0xff] %v2954_v1  ;;  %v2979_v6 = vld [vmem:[%s5398_s4 + $0x30] sm:$0xff]  ;;  %v2984_v7 = vld [vmem:[%s5398_s4 + $0x38] sm:$0xff]  ;;  %v2989_v8 = vld [vmem:[%s5398_s4 + $0x40] sm:$0xff] }
   0x4   :  { %5402 = vst [vmem:[#allocation9_spill] sm:$0xff] %v2959_v2  ;;  %v2994_v9 = vld [vmem:[%s5398_s4 + $0x48] sm:$0xff]  ;;  %v2999_v10 = vld [vmem:[%s5398_s4 + $0x50] sm:$0xff]  ;;  %v3004_v11 = vld [vmem:[%s5398_s4 + $0x58] sm:$0xff] }
   0x5   :  { %5403 = vst [vmem:[#allocation10_spill] sm:$0xff] %v2964_v3  ;;  %v3009_v12 = vld [vmem:[%s5398_s4 + $0x60] sm:$0xff]  ;;  %v3014_v13 = vld [vmem:[%s5398_s4 + $0x68] sm:$0xff]  ;;  %v3019_v14 = vld [vmem:[%s5398_s4 + $0x70] sm:$0xff] }
   0x6   :  { %5404 = vst [vmem:[#allocation11_spill] sm:$0xff] %v2969_v4  ;;  %v3024_v15 = vld [vmem:[%s5398_s4 + $0x78] sm:$0xff]  ;;  %v3029_v16 = vld [vmem:[%s5398_s4 + $0x80] sm:$0xff]  ;;  %v3034_v17 = vld [vmem:[%s5398_s4 + $0x88] sm:$0xff] }
   0x7   :  { %5405 = vst [vmem:[#allocation12_spill] sm:$0xff] %v2974_v5  ;;  %v3039_v18 = vld [vmem:[%s5398_s4 + $0x90] sm:$0xff]  ;;  %v3044_v19 = vld [vmem:[%s5398_s4 + $0x98] sm:$0xff]  ;;  %v3049_v20 = vld [vmem:[%s5398_s4 + $0xa0] sm:$0xff] }
   0x8   :  { %5406 = vst [vmem:[#allocation13_spill] sm:$0xff] %v2979_v6  ;;  %v3054_v21 = vld [vmem:[%s5398_s4 + $0xa8] sm:$0xff]  ;;  %v3059_v22 = vld [vmem:[%s5398_s4 + $0xb0] sm:$0xff]  ;;  %v3064_v23 = vld [vmem:[%s5398_s4 + $0xb8] sm:$0xff] }
   0x9   :  { %5407 = vst [vmem:[#allocation14_spill] sm:$0xff] %v2984_v7  ;;  %v3069_v24 = vld [vmem:[%s5398_s4 + $0xc0] sm:$0xff]  ;;  %v3074_v25 = vld [vmem:[%s5398_s4 + $0xc8] sm:$0xff]  ;;  %v3079_v26 = vld [vmem:[%s5398_s4 + $0xd0] sm:$0xff] }
   0xa   :  { %5408 = vst [vmem:[#allocation15_spill] sm:$0xff] %v2989_v8  ;;  %v3084_v27 = vld [vmem:[%s5398_s4 + $0xd8] sm:$0xff]  ;;  %v3089_v28 = vld [vmem:[%s5398_s4 + $0xe0] sm:$0xff]  ;;  %v3094_v29 = vld [vmem:[%s5398_s4 + $0xe8] sm:$0xff] }
   0xb   :  { %5409 = vst [vmem:[#allocation16_spill] sm:$0xff] %v2994_v9  ;;  %v3099_v30 = vld [vmem:[%s5398_s4 + $0xf0] sm:$0xff]  ;;  %v3104_v31 = vld [vmem:[%s5398_s4 + $0xf8] sm:$0xff]  ;;  %v3109_v32 = vld [vmem:[%s5398_s4 + $0x100] sm:$0xff] }
   0xc   :  { %5410 = vst [vmem:[#allocation17_spill] sm:$0xff] %v2999_v10  ;;  %v3114_v33 = vld [vmem:[%s5398_s4 + $0x108] sm:$0xff]  ;;  %v3119_v34 = vld [vmem:[%s5398_s4 + $0x110] sm:$0xff]  ;;  %v3124_v35 = vld [vmem:[%s5398_s4 + $0x118] sm:$0xff] }
   0xd   :  { %5411 = vst [vmem:[#allocation18_spill] sm:$0xff] %v3004_v11  ;;  %v3129_v36 = vld [vmem:[%s5398_s4 + $0x120] sm:$0xff]  ;;  %v3134_v37 = vld [vmem:[%s5398_s4 + $0x128] sm:$0xff]  ;;  %v3139_v38 = vld [vmem:[%s5398_s4 + $0x130] sm:$0xff] }
   0xe   :  { %5412 = vst [vmem:[#allocation19_spill] sm:$0xff] %v3009_v12  ;;  %v3144_v39 = vld [vmem:[%s5398_s4 + $0x138] sm:$0xff]  ;;  %v3149_v40 = vld [vmem:[%s5398_s4 + $0x140] sm:$0xff]  ;;  %v3154_v41 = vld [vmem:[%s5398_s4 + $0x148] sm:$0xff] }
   0xf   :  { %5413 = vst [vmem:[#allocation20_spill] sm:$0xff] %v3014_v13  ;;  %v3159_v42 = vld [vmem:[%s5398_s4 + $0x150] sm:$0xff]  ;;  %v3164_v43 = vld [vmem:[%s5398_s4 + $0x158] sm:$0xff]  ;;  %v3169_v44 = vld [vmem:[%s5398_s4 + $0x160] sm:$0xff] }
  0x10   :  { %5414 = vst [vmem:[#allocation21_spill] sm:$0xff] %v3019_v14  ;;  %v3174_v45 = vld [vmem:[%s5398_s4 + $0x168] sm:$0xff]  ;;  %v3179_v46 = vld [vmem:[%s5398_s4 + $0x170] sm:$0xff]  ;;  %v3184_v47 = vld [vmem:[%s5398_s4 + $0x178] sm:$0xff] }
  0x11   :  { %5415 = vst [vmem:[#allocation22_spill] sm:$0xff] %v3024_v15  ;;  %v3189_v48 = vld [vmem:[%s5398_s4 + $0x180] sm:$0xff]  ;;  %v3194_v49 = vld [vmem:[%s5398_s4 + $0x188] sm:$0xff]  ;;  %v3199_v50 = vld [vmem:[%s5398_s4 + $0x190] sm:$0xff] }
  0x12   :  { %5416 = vst [vmem:[#allocation23_spill] sm:$0xff] %v3029_v16  ;;  %v3204_v51 = vld [vmem:[%s5398_s4 + $0x198] sm:$0xff]  ;;  %v3209_v52 = vld [vmem:[%s5398_s4 + $0x1a0] sm:$0xff]  ;;  %v3214_v53 = vld [vmem:[%s5398_s4 + $0x1a8] sm:$0xff] }
  0x13   :  { %5417 = vst [vmem:[#allocation24_spill] sm:$0xff] %v3034_v17  ;;  %v3219_v54 = vld [vmem:[%s5398_s4 + $0x1b0] sm:$0xff]  ;;  %v3224_v55 = vld [vmem:[%s5398_s4 + $0x1b8] sm:$0xff]  ;;  %v3229_v56 = vld [vmem:[%s5398_s4 + $0x1c0] sm:$0xff] }
  0x14   :  { %5418 = vst [vmem:[#allocation25_spill] sm:$0xff] %v3039_v18  ;;  %v3234_v57 = vld [vmem:[%s5398_s4 + $0x1c8] sm:$0xff]  ;;  %v3239_v58 = vld [vmem:[%s5398_s4 + $0x1d0] sm:$0xff]  ;;  %v3244_v59 = vld [vmem:[%s5398_s4 + $0x1d8] sm:$0xff] }
  0x15   :  { %5419 = vst [vmem:[#allocation26_spill] sm:$0xff] %v3044_v19  ;;  %v3249_v60 = vld [vmem:[%s5398_s4 + $0x1e0] sm:$0xff]  ;;  %v3254_v61 = vld [vmem:[%s5398_s4 + $0x1e8] sm:$0xff]  ;;  %v3259_v62 = vld [vmem:[%s5398_s4 + $0x1f0] sm:$0xff] }
  0x16   :  { %5420 = vst [vmem:[#allocation27_spill] sm:$0xff] %v3049_v20  ;;  %v3264_v63 = vld [vmem:[%s5398_s4 + $0x1f8] sm:$0xff]  ;;  %v3269_v16 = vld [vmem:[%s5398_s4 + $0x200] sm:$0xff]  ;;  %v3274_v17 = vld [vmem:[%s5398_s4 + $0x208] sm:$0xff] }
  0x17   :  { %5421 = vst [vmem:[#allocation28_spill] sm:$0xff] %v3054_v21  ;;  %v3279_v0 = vld [vmem:[%s5398_s4 + $0x210] sm:$0xff]  ;;  %v3284_v18 = vld [vmem:[%s5398_s4 + $0x218] sm:$0xff]  ;;  %v3289_v1 = vld [vmem:[%s5398_s4 + $0x220] sm:$0xff] }
  0x18   :  { %5422 = vst [vmem:[#allocation29_spill] sm:$0xff] %v3059_v22  ;;  %v3309_v19 = vld [vmem:[%s5398_s4 + $0x240] sm:$0xff]  ;;  %v3314_v2 = vld [vmem:[%s5398_s4 + $0x248] sm:$0xff]  ;;  %v3324_v20 = vld [vmem:[%s5398_s4 + $0x258] sm:$0xff] }
  0x19   :  { %5423 = vst [vmem:[#allocation30_spill] sm:$0xff] %v3064_v23  ;;  %v3329_v3 = vld [vmem:[%s5398_s4 + $0x260] sm:$0xff]  ;;  %v3339_v21 = vld [vmem:[%s5398_s4 + $0x270] sm:$0xff]  ;;  %v3344_v4 = vld [vmem:[%s5398_s4 + $0x278] sm:$0xff] }
  0x1a   :  { %5424 = vst [vmem:[#allocation31_spill] sm:$0xff] %v3069_v24  ;;  %v3354_v22 = vld [vmem:[%s5398_s4 + $0x288] sm:$0xff]  ;;  %v3359_v5 = vld [vmem:[%s5398_s4 + $0x290] sm:$0xff]  ;;  %v3369_v23 = vld [vmem:[%s5398_s4 + $0x2a0] sm:$0xff] }
  0x1b   :  { %5425 = vst [vmem:[#allocation32_spill] sm:$0xff] %v3074_v25  ;;  %v3414_v6 = vld [vmem:[%s5398_s4 + $0x2e8] sm:$0xff]  ;;  %v3429_v24 = vld [vmem:[%s5398_s4 + $0x300] sm:$0xff]  ;;  %v3584_v15 = vld [vmem:[%s5398_s4 + $0x3f8] sm:$0xff] }
  0x1c   :  { %5426 = vst [vmem:[#allocation33_spill] sm:$0xff] %v3079_v26  ;;  %v3434_v7 = vld [vmem:[%s5398_s4 + $0x308] sm:$0xff]  ;;  %v3449_v25 = vld [vmem:[%s5398_s4 + $0x320] sm:$0xff] }
  0x1d   :  { %5427 = vst [vmem:[#allocation34_spill] sm:$0xff] %v3084_v27  ;;  %v3454_v8 = vld [vmem:[%s5398_s4 + $0x328] sm:$0xff]  ;;  %v3469_v26 = vld [vmem:[%s5398_s4 + $0x340] sm:$0xff] }
  0x1e   :  { %5428 = vst [vmem:[#allocation35_spill] sm:$0xff] %v3089_v28  ;;  %v3474_v9 = vld [vmem:[%s5398_s4 + $0x348] sm:$0xff]  ;;  %v3489_v27 = vld [vmem:[%s5398_s4 + $0x360] sm:$0xff] }
  0x1f   :  { %5429 = vst [vmem:[#allocation36_spill] sm:$0xff] %v3094_v29  ;;  %v3494_v10 = vld [vmem:[%s5398_s4 + $0x368] sm:$0xff]  ;;  %v3509_v28 = vld [vmem:[%s5398_s4 + $0x380] sm:$0xff] }
  0x20   :  { %5430 = vst [vmem:[#allocation37_spill] sm:$0xff] %v3099_v30  ;;  %v3514_v11 = vld [vmem:[%s5398_s4 + $0x388] sm:$0xff]  ;;  %v3529_v29 = vld [vmem:[%s5398_s4 + $0x3a0] sm:$0xff] }
  0x21   :  { %5431 = vst [vmem:[#allocation38_spill] sm:$0xff] %v3104_v31  ;;  %v3534_v12 = vld [vmem:[%s5398_s4 + $0x3a8] sm:$0xff]  ;;  %v3549_v30 = vld [vmem:[%s5398_s4 + $0x3c0] sm:$0xff] }
  0x22   :  { %5432 = vst [vmem:[#allocation39_spill] sm:$0xff] %v3109_v32  ;;  %v3554_v13 = vld [vmem:[%s5398_s4 + $0x3c8] sm:$0xff]  ;;  %v3569_v31 = vld [vmem:[%s5398_s4 + $0x3e0] sm:$0xff]  ;;  %v3604_v32 = vld [vmem:[%s5398_s4 + $0x418] sm:$0xff] }
  0x23   :  { %5433 = vst [vmem:[#allocation40_spill] sm:$0xff] %v3114_v33  ;;  %v3574_v14 = vld [vmem:[%s5398_s4 + $0x3e8] sm:$0xff] }
  0x24   :  { %5434 = vst [vmem:[#allocation41_spill] sm:$0xff] %v3119_v34 }
  0x25   :  { %5435 = vst [vmem:[#allocation42_spill] sm:$0xff] %v3124_v35 }
  0x26   :  { %5436 = vst [vmem:[#allocation43_spill] sm:$0xff] %v3129_v36 }
  0x27   :  { %5437 = vst [vmem:[#allocation44_spill] sm:$0xff] %v3134_v37 }
  0x28   :  { %5438 = vst [vmem:[#allocation45_spill] sm:$0xff] %v3189_v48  ;;  %v3594_v48 = vld [vmem:[%s5398_s4 + $0x408] sm:$0xff] }
  0x29   :  { %5439 = vst [vmem:[#allocation46_spill] sm:$0xff] %v3194_v49 }
  0x2a   :  { %5440 = vst [vmem:[#allocation47_spill] sm:$0xff] %v3199_v50 }
  0x2b   :  { %5441 = vst [vmem:[#allocation48_spill] sm:$0xff] %v3204_v51 }
  0x2c   :  { %5442 = vst [vmem:[#allocation49_spill] sm:$0xff] %v3209_v52 }
  0x2d   :  { %5443 = vst [vmem:[#allocation50_spill] sm:$0xff] %v3214_v53 }
  0x2e   :  { %5444 = vst [vmem:[#allocation51_spill] sm:$0xff] %v3219_v54 }
  0x2f   :  { %5445 = vst [vmem:[#allocation52_spill] sm:$0xff] %v3269_v16  ;;  %v3294_v16 = vld [vmem:[%s5398_s4 + $0x228] sm:$0xff] }
  0x30   :  { %5446 = vst [vmem:[#allocation53_spill] sm:$0xff] %v3274_v17  ;;  %v3299_v17 = vld [vmem:[%s5398_s4 + $0x230] sm:$0xff] }
  0x31   :  { %5447 = vst [vmem:[#allocation54_spill] sm:$0xff] %v3279_v0  ;;  %v3304_v0 = vld [vmem:[%s5398_s4 + $0x238] sm:$0xff] }
  0x32   :  { %5448 = vst [vmem:[#allocation55_spill] sm:$0xff] %v3284_v18  ;;  %v3319_v18 = vld [vmem:[%s5398_s4 + $0x250] sm:$0xff] }
  0x33   :  { %5449 = vst [vmem:[#allocation56_spill] sm:$0xff] %v3289_v1  ;;  %v3334_v1 = vld [vmem:[%s5398_s4 + $0x268] sm:$0xff] }
  0x34   :  { %5450 = vst [vmem:[#allocation57_spill] sm:$0xff] %v3294_v16  ;;  %v3349_v16 = vld [vmem:[%s5398_s4 + $0x280] sm:$0xff] }
  0x35   :  { %5451 = vst [vmem:[#allocation58_spill] sm:$0xff] %v3299_v17  ;;  %v3364_v17 = vld [vmem:[%s5398_s4 + $0x298] sm:$0xff] }
  0x36   :  { %5452 = vst [vmem:[#allocation59_spill] sm:$0xff] %v3304_v0  ;;  %v3424_v0 = vld [vmem:[%s5398_s4 + $0x2f8] sm:$0xff] }
  0x37   :  { %5453 = vst [vmem:[#allocation60_spill] sm:$0xff] %v3309_v19  ;;  %v3444_v19 = vld [vmem:[%s5398_s4 + $0x318] sm:$0xff] }
  0x38   :  { %5454 = vst [vmem:[#allocation61_spill] sm:$0xff] %v3314_v2  ;;  %v3464_v2 = vld [vmem:[%s5398_s4 + $0x338] sm:$0xff] }
  0x39   :  { %5455 = vst [vmem:[#allocation62_spill] sm:$0xff] %v3319_v18  ;;  %v3484_v18 = vld [vmem:[%s5398_s4 + $0x358] sm:$0xff] }
  0x3a   :  { %5456 = vst [vmem:[#allocation63_spill] sm:$0xff] %v3324_v20  ;;  %v3504_v20 = vld [vmem:[%s5398_s4 + $0x378] sm:$0xff] }
  0x3b   :  { %5457 = vst [vmem:[#allocation64_spill] sm:$0xff] %v3329_v3  ;;  %v3524_v3 = vld [vmem:[%s5398_s4 + $0x398] sm:$0xff] }
  0x3c   :  { %5458 = vst [vmem:[#allocation65_spill] sm:$0xff] %v3334_v1  ;;  %v3544_v1 = vld [vmem:[%s5398_s4 + $0x3b8] sm:$0xff] }
  0x3d   :  { %5459 = vst [vmem:[#allocation66_spill] sm:$0xff] %v3339_v21  ;;  %v3564_v21 = vld [vmem:[%s5398_s4 + $0x3d8] sm:$0xff] }
  0x3e   :  { %5460 = vst [vmem:[#allocation67_spill] sm:$0xff] %v3344_v4  ;;  %v3579_v4 = vld [vmem:[%s5398_s4 + $0x3f0] sm:$0xff] }
  0x3f   :  { %5461 = vst [vmem:[#allocation68_spill] sm:$0xff] %v3349_v16  ;;  %v3374_v16 = vld [vmem:[%s5398_s4 + $0x2a8] sm:$0xff] }
  0x40   :  { %5462 = vst [vmem:[#allocation69_spill] sm:$0xff] %v3354_v22  ;;  %v3379_v22 = vld [vmem:[%s5398_s4 + $0x2b0] sm:$0xff] }
  0x41   :  { %5463 = vst [vmem:[#allocation70_spill] sm:$0xff] %v3359_v5  ;;  %v3384_v5 = vld [vmem:[%s5398_s4 + $0x2b8] sm:$0xff] }
  0x42   :  { %5464 = vst [vmem:[#allocation71_spill] sm:$0xff] %v3364_v17  ;;  %v3389_v17 = vld [vmem:[%s5398_s4 + $0x2c0] sm:$0xff] }
  0x43   :  { %5465 = vst [vmem:[#allocation72_spill] sm:$0xff] %v3369_v23  ;;  %v3394_v23 = vld [vmem:[%s5398_s4 + $0x2c8] sm:$0xff] }
  0x44   :  { %5466 = vst [vmem:[#allocation73_spill] sm:$0xff] %v3374_v16  ;;  %v3399_v16 = vld [vmem:[%s5398_s4 + $0x2d0] sm:$0xff] }
  0x45   :  { %5467 = vst [vmem:[#allocation74_spill] sm:$0xff] %v3379_v22  ;;  %v3404_v22 = vld [vmem:[%s5398_s4 + $0x2d8] sm:$0xff] }
  0x46   :  { %5468 = vst [vmem:[#allocation75_spill] sm:$0xff] %v3384_v5  ;;  %v3409_v5 = vld [vmem:[%s5398_s4 + $0x2e0] sm:$0xff] }
  0x47   :  { %5469 = vst [vmem:[#allocation76_spill] sm:$0xff] %v3389_v17  ;;  %v3419_v17 = vld [vmem:[%s5398_s4 + $0x2f0] sm:$0xff] }
  0x48   :  { %5470 = vst [vmem:[#allocation77_spill] sm:$0xff] %v3394_v23  ;;  %v3439_v23 = vld [vmem:[%s5398_s4 + $0x310] sm:$0xff] }
  0x49   :  { %5471 = vst [vmem:[#allocation78_spill] sm:$0xff] %v3399_v16  ;;  %v3459_v16 = vld [vmem:[%s5398_s4 + $0x330] sm:$0xff] }
  0x4a   :  { %5472 = vst [vmem:[#allocation79_spill] sm:$0xff] %v3404_v22  ;;  %v3479_v22 = vld [vmem:[%s5398_s4 + $0x350] sm:$0xff] }
  0x4b   :  { %5473 = vst [vmem:[#allocation80_spill] sm:$0xff] %v3409_v5  ;;  %v3499_v5 = vld [vmem:[%s5398_s4 + $0x370] sm:$0xff] }
  0x4c   :  { %5474 = vst [vmem:[#allocation81_spill] sm:$0xff] %v3414_v6  ;;  %v3519_v6 = vld [vmem:[%s5398_s4 + $0x390] sm:$0xff] }
  0x4d   :  { %5475 = vst [vmem:[#allocation82_spill] sm:$0xff] %v3419_v17  ;;  %v3539_v17 = vld [vmem:[%s5398_s4 + $0x3b0] sm:$0xff] }
  0x4e   :  { %5476 = vst [vmem:[#allocation83_spill] sm:$0xff] %v3424_v0  ;;  %v3559_v0 = vld [vmem:[%s5398_s4 + $0x3d0] sm:$0xff] }
  0x4f   :  { %5477 = vst [vmem:[#allocation84_spill] sm:$0xff] %v3429_v24  ;;  %v3599_v24 = vld [vmem:[%s5398_s4 + $0x410] sm:$0xff] }
  0x50   :  { %5478 = vst [vmem:[#allocation85_spill] sm:$0xff] %v3434_v7 }
  0x51   :  { %5479 = vst [vmem:[#allocation86_spill] sm:$0xff] %v3439_v23 }
  0x52   :  { %5480 = vst [vmem:[#allocation87_spill] sm:$0xff] %v3444_v19 }
  0x53   :  { %5481 = vst [vmem:[#allocation88_spill] sm:$0xff] %v3449_v25 }
  0x54   :  { %5482 = vst [vmem:[#allocation89_spill] sm:$0xff] %v3454_v8 }
  0x55   :  { %5483 = vst [vmem:[#allocation90_spill] sm:$0xff] %v3509_v28  ;;  %v3589_v28 = vld [vmem:[%s5398_s4 + $0x400] sm:$0xff] }
  0x56   :  { %5484 = vst [vmem:[#allocation91_spill] sm:$0xff] %v3514_v11  ;;  %v3609_v11 = vld [vmem:[%s5398_s4 + $0x420] sm:$0xff] }
  0x57   :  { %5485 = vst [vmem:[#allocation92_spill] sm:$0xff] %v3519_v6 }
  0x58   :  { %5486 = vst [vmem:[#allocation93_spill] sm:$0xff] %v3524_v3 }
  0x59   :  { %5487 = vst [vmem:[#allocation94_spill] sm:$0xff] %v3529_v29 }
  0x5a   :  { %5488 = vst [vmem:[#allocation95_spill] sm:$0xff] %v3534_v12 }
  0x5b   :  { %5489 = vst [vmem:[#allocation96_spill] sm:$0xff] %v3539_v17 }
  0x5c   :  { %5490 = vst [vmem:[#allocation97_spill] sm:$0xff] %v3589_v28  ;;  %v3614_v28 = vld [vmem:[%s5398_s4 + $0x428] sm:$0xff] }
  0x5d   :  { %5491 = vst [vmem:[#allocation98_spill] sm:$0xff] %v3594_v48  ;;  %v3619_v48 = vld [vmem:[%s5398_s4 + $0x430] sm:$0xff] }
  0x5e   :  { %5492 = vst [vmem:[#allocation99_spill] sm:$0xff] %v3599_v24  ;;  %v3624_v24 = vld [vmem:[%s5398_s4 + $0x438] sm:$0xff] }
  0x5f   :  { %5493 = vst [vmem:[#allocation100_spill] sm:$0xff] %v3604_v32  ;;  %v3629_v32 = vld [vmem:[%s5398_s4 + $0x440] sm:$0xff] }
  0x60   :  { %5494 = vst [vmem:[#allocation101_spill] sm:$0xff] %v3609_v11  ;;  %v3634_v11 = vld [vmem:[%s5398_s4 + $0x448] sm:$0xff] }
  0x61   :  { %5495 = vst [vmem:[#allocation102_spill] sm:$0xff] %v3614_v28  ;;  %v3639_v28 = vld [vmem:[%s5398_s4 + $0x450] sm:$0xff] }
  0x62   :  { %5496 = vst [vmem:[#allocation103_spill] sm:$0xff] %v3619_v48  ;;  %v3644_v48 = vld [vmem:[%s5398_s4 + $0x458] sm:$0xff] }
  0x63   :  { %5497 = vst [vmem:[#allocation104_spill] sm:$0xff] %v3624_v24  ;;  %v3649_v24 = vld [vmem:[%s5398_s4 + $0x460] sm:$0xff] }
  0x64   :  { %5498 = vst [vmem:[#allocation105_spill] sm:$0xff] %v3629_v32  ;;  %v3654_v32 = vld [vmem:[%s5398_s4 + $0x468] sm:$0xff] }
  0x65   :  { %5499 = vst [vmem:[#allocation106_spill] sm:$0xff] %v3634_v11  ;;  %v3659_v11 = vld [vmem:[%s5398_s4 + $0x470] sm:$0xff] }
  0x66   :  { %5500 = vst [vmem:[#allocation107_spill] sm:$0xff] %v3639_v28  ;;  %v3664_v28 = vld [vmem:[%s5398_s4 + $0x478] sm:$0xff] }
  0x67   :  { %5501 = vst [vmem:[#allocation108_spill] sm:$0xff] %v3644_v48  ;;  %v3669_v48 = vld [vmem:[%s5398_s4 + $0x480] sm:$0xff] }
  0x68   :  { %5502 = vst [vmem:[#allocation109_spill] sm:$0xff] %v3649_v24  ;;  %v3674_v24 = vld [vmem:[%s5398_s4 + $0x488] sm:$0xff] }
  0x69   :  { %5503 = vst [vmem:[#allocation110_spill] sm:$0xff] %v3654_v32  ;;  %v3679_v32 = vld [vmem:[%s5398_s4 + $0x490] sm:$0xff] }
  0x6a   :  { %5504 = vst [vmem:[#allocation111_spill] sm:$0xff] %v3659_v11  ;;  %v3684_v11 = vld [vmem:[%s5398_s4 + $0x498] sm:$0xff] }
  0x6b   :  { %5505 = vst [vmem:[#allocation112_spill] sm:$0xff] %v3664_v28  ;;  %v3689_v28 = vld [vmem:[%s5398_s4 + $0x4a0] sm:$0xff] }
  0x6c   :  { %5506 = vst [vmem:[#allocation113_spill] sm:$0xff] %v3669_v48  ;;  %v3694_v48 = vld [vmem:[%s5398_s4 + $0x4a8] sm:$0xff] }
  0x6d   :  { %5507 = vst [vmem:[#allocation114_spill] sm:$0xff] %v3674_v24  ;;  %v3699_v24 = vld [vmem:[%s5398_s4 + $0x4b0] sm:$0xff] }
  0x6e   :  { %5508 = vst [vmem:[#allocation115_spill] sm:$0xff] %v3679_v32  ;;  %v3704_v32 = vld [vmem:[%s5398_s4 + $0x4b8] sm:$0xff] }
  0x6f   :  { %5509 = vst [vmem:[#allocation116_spill] sm:$0xff] %v3684_v11  ;;  %v3709_v11 = vld [vmem:[%s5398_s4 + $0x4c0] sm:$0xff] }
  0x70   :  { %5510 = vst [vmem:[#allocation117_spill] sm:$0xff] %v3689_v28  ;;  %v3714_v28 = vld [vmem:[%s5398_s4 + $0x4c8] sm:$0xff] }
  0x71   :  { %5511 = vst [vmem:[#allocation118_spill] sm:$0xff] %v3694_v48  ;;  %v3719_v48 = vld [vmem:[%s5398_s4 + $0x4d0] sm:$0xff] }
  0x72   :  { %5512 = vst [vmem:[#allocation119_spill] sm:$0xff] %v3699_v24  ;;  %v3724_v24 = vld [vmem:[%s5398_s4 + $0x4d8] sm:$0xff] }
  0x73   :  { %5513 = vst [vmem:[#allocation120_spill] sm:$0xff] %v3704_v32  ;;  %v3729_v32 = vld [vmem:[%s5398_s4 + $0x4e0] sm:$0xff] }
  0x74   :  { %5514 = vst [vmem:[#allocation121_spill] sm:$0xff] %v3709_v11  ;;  %v3734_v11 = vld [vmem:[%s5398_s4 + $0x4e8] sm:$0xff] }
  0x75   :  { %5515 = vst [vmem:[#allocation122_spill] sm:$0xff] %v3714_v28  ;;  %v3739_v28 = vld [vmem:[%s5398_s4 + $0x4f0] sm:$0xff] }
  0x76   :  { %5516 = vst [vmem:[#allocation123_spill] sm:$0xff] %v3719_v48  ;;  %v3744_v48 = vld [vmem:[%s5398_s4 + $0x4f8] sm:$0xff] }
  0x77   :  { %5517 = vst [vmem:[#allocation124_spill] sm:$0xff] %v3724_v24  ;;  %v3749_v24 = vld [vmem:[%s5398_s4 + $0x500] sm:$0xff] }
  0x78   :  { %5518 = vst [vmem:[#allocation125_spill] sm:$0xff] %v3729_v32  ;;  %v3754_v32 = vld [vmem:[%s5398_s4 + $0x508] sm:$0xff] }
  0x79   :  { %5519 = vst [vmem:[#allocation126_spill] sm:$0xff] %v3734_v11  ;;  %v3759_v11 = vld [vmem:[%s5398_s4 + $0x510] sm:$0xff] }
  0x7a   :  { %5520 = vst [vmem:[#allocation127_spill] sm:$0xff] %v3739_v28  ;;  %v3764_v28 = vld [vmem:[%s5398_s4 + $0x518] sm:$0xff] }
  0x7b   :  { %5521 = vst [vmem:[#allocation128_spill] sm:$0xff] %v3744_v48  ;;  %v3769_v48 = vld [vmem:[%s5398_s4 + $0x520] sm:$0xff] }
  0x7c   :  { %5522 = vst [vmem:[#allocation129_spill] sm:$0xff] %v3749_v24  ;;  %v3774_v24 = vld [vmem:[%s5398_s4 + $0x528] sm:$0xff] }
  0x7d   :  { %5523 = vst [vmem:[#allocation130_spill] sm:$0xff] %v3754_v32  ;;  %v3779_v32 = vld [vmem:[%s5398_s4 + $0x530] sm:$0xff] }
  0x7e   :  { %5524 = vst [vmem:[#allocation131_spill] sm:$0xff] %v3759_v11  ;;  %v3784_v11 = vld [vmem:[%s5398_s4 + $0x538] sm:$0xff] }
  0x7f   :  { %5525 = vst [vmem:[#allocation132_spill] sm:$0xff] %v3764_v28  ;;  %v3789_v28 = vld [vmem:[%s5398_s4 + $0x540] sm:$0xff] }
  0x80   :  { %5526 = vst [vmem:[#allocation133_spill] sm:$0xff] %v3769_v48  ;;  %v3794_v48 = vld [vmem:[%s5398_s4 + $0x548] sm:$0xff] }
  0x81   :  { %5527 = vst [vmem:[#allocation134_spill] sm:$0xff] %v3774_v24  ;;  %v3799_v24 = vld [vmem:[%s5398_s4 + $0x550] sm:$0xff] }
  0x82   :  { %5528 = vst [vmem:[#allocation135_spill] sm:$0xff] %v3779_v32  ;;  %v3804_v32 = vld [vmem:[%s5398_s4 + $0x558] sm:$0xff] }
  0x83   :  { %5529 = vst [vmem:[#allocation136_spill] sm:$0xff] %v3784_v11  ;;  %v3809_v11 = vld [vmem:[%s5398_s4 + $0x560] sm:$0xff] }
  0x84   :  { %5530 = vst [vmem:[#allocation137_spill] sm:$0xff] %v3789_v28  ;;  %v3814_v28 = vld [vmem:[%s5398_s4 + $0x568] sm:$0xff] }
  0x85   :  { %5531 = vst [vmem:[#allocation138_spill] sm:$0xff] %v3794_v48  ;;  %v3819_v48 = vld [vmem:[%s5398_s4 + $0x570] sm:$0xff] }
  0x86   :  { %5532 = vst [vmem:[#allocation139_spill] sm:$0xff] %v3799_v24  ;;  %v3824_v24 = vld [vmem:[%s5398_s4 + $0x578] sm:$0xff] }
  0x87   :  { %5533 = vst [vmem:[#allocation140_spill] sm:$0xff] %v3804_v32  ;;  %v3829_v32 = vld [vmem:[%s5398_s4 + $0x580] sm:$0xff] }
  0x88   :  { %5534 = vst [vmem:[#allocation141_spill] sm:$0xff] %v3809_v11  ;;  %v3834_v11 = vld [vmem:[%s5398_s4 + $0x588] sm:$0xff] }
  0x89   :  { %5535 = vst [vmem:[#allocation142_spill] sm:$0xff] %v3814_v28  ;;  %v3839_v28 = vld [vmem:[%s5398_s4 + $0x590] sm:$0xff] }
  0x8a   :  { %5536 = vst [vmem:[#allocation143_spill] sm:$0xff] %v3819_v48  ;;  %v3844_v48 = vld [vmem:[%s5398_s4 + $0x598] sm:$0xff] }
  0x8b   :  { %5537 = vst [vmem:[#allocation144_spill] sm:$0xff] %v3824_v24  ;;  %v3849_v24 = vld [vmem:[%s5398_s4 + $0x5a0] sm:$0xff] }
  0x8c   :  { %5538 = vst [vmem:[#allocation145_spill] sm:$0xff] %v3829_v32  ;;  %v3854_v32 = vld [vmem:[%s5398_s4 + $0x5a8] sm:$0xff] }
  0x8d   :  { %5539 = vst [vmem:[#allocation146_spill] sm:$0xff] %v3834_v11  ;;  %v3859_v11 = vld [vmem:[%s5398_s4 + $0x5b0] sm:$0xff] }
  0x8e   :  { %5540 = vst [vmem:[#allocation147_spill] sm:$0xff] %v3839_v28  ;;  %v3864_v28 = vld [vmem:[%s5398_s4 + $0x5b8] sm:$0xff] }
  0x8f   :  { %5541 = vst [vmem:[#allocation148_spill] sm:$0xff] %v3844_v48  ;;  %v3869_v48 = vld [vmem:[%s5398_s4 + $0x5c0] sm:$0xff] }
  0x90   :  { %5542 = vst [vmem:[#allocation149_spill] sm:$0xff] %v3849_v24  ;;  %v3874_v24 = vld [vmem:[%s5398_s4 + $0x5c8] sm:$0xff] }
  0x91   :  { %5543 = vst [vmem:[#allocation150_spill] sm:$0xff] %v3854_v32  ;;  %v3879_v32 = vld [vmem:[%s5398_s4 + $0x5d0] sm:$0xff] }
  0x92   :  { %5544 = vst [vmem:[#allocation151_spill] sm:$0xff] %v3859_v11  ;;  %v3884_v11 = vld [vmem:[%s5398_s4 + $0x5d8] sm:$0xff] }
  0x93   :  { %5545 = vst [vmem:[#allocation152_spill] sm:$0xff] %v3864_v28  ;;  %v3889_v28 = vld [vmem:[%s5398_s4 + $0x5e0] sm:$0xff] }
  0x94   :  { %5546 = vst [vmem:[#allocation153_spill] sm:$0xff] %v3869_v48  ;;  %v3894_v48 = vld [vmem:[%s5398_s4 + $0x5e8] sm:$0xff] }
  0x95   :  { %5547 = vst [vmem:[#allocation154_spill] sm:$0xff] %v3874_v24  ;;  %v3899_v24 = vld [vmem:[%s5398_s4 + $0x5f0] sm:$0xff] }
  0x96   :  { %5548 = vst [vmem:[#allocation155_spill] sm:$0xff] %v3879_v32  ;;  %v3904_v32 = vld [vmem:[%s5398_s4 + $0x5f8] sm:$0xff] }
  0x97   :  { %5549 = vst [vmem:[#allocation156_spill] sm:$0xff] %v3884_v11  ;;  %v3909_v11 = vld [vmem:[%s5398_s4 + $0x600] sm:$0xff] }
  0x98   :  { %5550 = vst [vmem:[#allocation157_spill] sm:$0xff] %v3889_v28  ;;  %v3914_v28 = vld [vmem:[%s5398_s4 + $0x608] sm:$0xff] }
  0x99   :  { %5551 = vst [vmem:[#allocation158_spill] sm:$0xff] %v3894_v48  ;;  %v3919_v48 = vld [vmem:[%s5398_s4 + $0x610] sm:$0xff] }
  0x9a   :  { %5552 = vst [vmem:[#allocation159_spill] sm:$0xff] %v3899_v24  ;;  %v3924_v24 = vld [vmem:[%s5398_s4 + $0x618] sm:$0xff] }
  0x9b   :  { %5553 = vst [vmem:[#allocation160_spill] sm:$0xff] %v3904_v32  ;;  %v3929_v32 = vld [vmem:[%s5398_s4 + $0x620] sm:$0xff] }
  0x9c   :  { %5554 = vst [vmem:[#allocation161_spill] sm:$0xff] %v3909_v11  ;;  %v3934_v11 = vld [vmem:[%s5398_s4 + $0x628] sm:$0xff] }
  0x9d   :  { %5555 = vst [vmem:[#allocation162_spill] sm:$0xff] %v3914_v28  ;;  %v3939_v28 = vld [vmem:[%s5398_s4 + $0x630] sm:$0xff] }
  0x9e   :  { %5556 = vst [vmem:[#allocation163_spill] sm:$0xff] %v3919_v48  ;;  %v3944_v48 = vld [vmem:[%s5398_s4 + $0x638] sm:$0xff] }
  0x9f   :  { %5557 = vst [vmem:[#allocation164_spill] sm:$0xff] %v3924_v24  ;;  %v3949_v24 = vld [vmem:[%s5398_s4 + $0x640] sm:$0xff] }
  0xa0   :  { %5558 = vst [vmem:[#allocation165_spill] sm:$0xff] %v3929_v32  ;;  %v3954_v32 = vld [vmem:[%s5398_s4 + $0x648] sm:$0xff] }
  0xa1   :  { %5559 = vst [vmem:[#allocation166_spill] sm:$0xff] %v3934_v11  ;;  %v3959_v11 = vld [vmem:[%s5398_s4 + $0x650] sm:$0xff] }
  0xa2   :  { %5560 = vst [vmem:[#allocation167_spill] sm:$0xff] %v3939_v28  ;;  %v3964_v28 = vld [vmem:[%s5398_s4 + $0x658] sm:$0xff] }
  0xa3   :  { %5561 = vst [vmem:[#allocation168_spill] sm:$0xff] %v3944_v48  ;;  %v3969_v48 = vld [vmem:[%s5398_s4 + $0x660] sm:$0xff] }
  0xa4   :  { %5562 = vst [vmem:[#allocation169_spill] sm:$0xff] %v3949_v24  ;;  %v3974_v24 = vld [vmem:[%s5398_s4 + $0x668] sm:$0xff] }
  0xa5   :  { %5563 = vst [vmem:[#allocation170_spill] sm:$0xff] %v3954_v32  ;;  %v3979_v32 = vld [vmem:[%s5398_s4 + $0x670] sm:$0xff] }
  0xa6   :  { %5564 = vst [vmem:[#allocation171_spill] sm:$0xff] %v3959_v11  ;;  %v3984_v11 = vld [vmem:[%s5398_s4 + $0x678] sm:$0xff] }
  0xa7   :  { %5565 = vst [vmem:[#allocation172_spill] sm:$0xff] %v3964_v28  ;;  %v3989_v28 = vld [vmem:[%s5398_s4 + $0x680] sm:$0xff] }
  0xa8   :  { %5566 = vst [vmem:[#allocation173_spill] sm:$0xff] %v3969_v48  ;;  %v3994_v48 = vld [vmem:[%s5398_s4 + $0x688] sm:$0xff] }
  0xa9   :  { %5567 = vst [vmem:[#allocation174_spill] sm:$0xff] %v3974_v24  ;;  %v3999_v24 = vld [vmem:[%s5398_s4 + $0x690] sm:$0xff] }
  0xaa   :  { %5568 = vst [vmem:[#allocation175_spill] sm:$0xff] %v3979_v32  ;;  %v4004_v32 = vld [vmem:[%s5398_s4 + $0x698] sm:$0xff] }
  0xab   :  { %5569 = vst [vmem:[#allocation176_spill] sm:$0xff] %v3984_v11  ;;  %v4009_v11 = vld [vmem:[%s5398_s4 + $0x6a0] sm:$0xff] }
  0xac   :  { %5570 = vst [vmem:[#allocation177_spill] sm:$0xff] %v3989_v28  ;;  %v4014_v28 = vld [vmem:[%s5398_s4 + $0x6a8] sm:$0xff] }
  0xad   :  { %5571 = vst [vmem:[#allocation178_spill] sm:$0xff] %v3994_v48  ;;  %v4019_v48 = vld [vmem:[%s5398_s4 + $0x6b0] sm:$0xff] }
  0xae   :  { %5572 = vst [vmem:[#allocation179_spill] sm:$0xff] %v3999_v24  ;;  %v4024_v24 = vld [vmem:[%s5398_s4 + $0x6b8] sm:$0xff] }
  0xaf   :  { %5573 = vst [vmem:[#allocation180_spill] sm:$0xff] %v4004_v32  ;;  %v4029_v32 = vld [vmem:[%s5398_s4 + $0x6c0] sm:$0xff] }
  0xb0   :  { %5574 = vst [vmem:[#allocation181_spill] sm:$0xff] %v4009_v11  ;;  %v4034_v11 = vld [vmem:[%s5398_s4 + $0x6c8] sm:$0xff] }
  0xb1   :  { %5575 = vst [vmem:[#allocation182_spill] sm:$0xff] %v4014_v28  ;;  %v4039_v28 = vld [vmem:[%s5398_s4 + $0x6d0] sm:$0xff] }
  0xb2   :  { %5576 = vst [vmem:[#allocation183_spill] sm:$0xff] %v4019_v48  ;;  %v4044_v48 = vld [vmem:[%s5398_s4 + $0x6d8] sm:$0xff] }
  0xb3   :  { %5577 = vst [vmem:[#allocation184_spill] sm:$0xff] %v4024_v24  ;;  %v4049_v24 = vld [vmem:[%s5398_s4 + $0x6e0] sm:$0xff] }
  0xb4   :  { %5578 = vst [vmem:[#allocation185_spill] sm:$0xff] %v4029_v32  ;;  %v4054_v32 = vld [vmem:[%s5398_s4 + $0x6e8] sm:$0xff] }
  0xb5   :  { %5579 = vst [vmem:[#allocation186_spill] sm:$0xff] %v4034_v11  ;;  %v4059_v11 = vld [vmem:[%s5398_s4 + $0x6f0] sm:$0xff] }
  0xb6   :  { %5580 = vst [vmem:[#allocation187_spill] sm:$0xff] %v4039_v28  ;;  %v4064_v28 = vld [vmem:[%s5398_s4 + $0x6f8] sm:$0xff] }
  0xb7   :  { %5581 = vst [vmem:[#allocation188_spill] sm:$0xff] %v4044_v48  ;;  %v4069_v48 = vld [vmem:[%s5398_s4 + $0x700] sm:$0xff] }
  0xb8   :  { %5582 = vst [vmem:[#allocation189_spill] sm:$0xff] %v4049_v24  ;;  %v4074_v24 = vld [vmem:[%s5398_s4 + $0x708] sm:$0xff] }
  0xb9   :  { %5583 = vst [vmem:[#allocation190_spill] sm:$0xff] %v4054_v32  ;;  %v4079_v32 = vld [vmem:[%s5398_s4 + $0x710] sm:$0xff] }
  0xba   :  { %5584 = vst [vmem:[#allocation191_spill] sm:$0xff] %v4059_v11  ;;  %v4084_v11 = vld [vmem:[%s5398_s4 + $0x718] sm:$0xff] }
  0xbb   :  { %5585 = vst [vmem:[#allocation192_spill] sm:$0xff] %v4064_v28  ;;  %v4089_v28 = vld [vmem:[%s5398_s4 + $0x720] sm:$0xff] }
  0xbc   :  { %5586 = vst [vmem:[#allocation193_spill] sm:$0xff] %v4069_v48  ;;  %v4094_v48 = vld [vmem:[%s5398_s4 + $0x728] sm:$0xff] }
  0xbd   :  { %5587 = vst [vmem:[#allocation194_spill] sm:$0xff] %v4074_v24  ;;  %v4099_v24 = vld [vmem:[%s5398_s4 + $0x730] sm:$0xff] }
  0xbe   :  { %5588 = vst [vmem:[#allocation195_spill] sm:$0xff] %v4079_v32  ;;  %v4104_v32 = vld [vmem:[%s5398_s4 + $0x738] sm:$0xff] }
  0xbf   :  { %5589 = vst [vmem:[#allocation196_spill] sm:$0xff] %v4084_v11  ;;  %v4109_v11 = vld [vmem:[%s5398_s4 + $0x740] sm:$0xff] }
  0xc0   :  { %5590 = vst [vmem:[#allocation197_spill] sm:$0xff] %v4089_v28  ;;  %v4114_v28 = vld [vmem:[%s5398_s4 + $0x748] sm:$0xff] }
  0xc1   :  { %5591 = vst [vmem:[#allocation198_spill] sm:$0xff] %v4094_v48  ;;  %v4119_v48 = vld [vmem:[%s5398_s4 + $0x750] sm:$0xff] }
  0xc2   :  { %5592 = vst [vmem:[#allocation199_spill] sm:$0xff] %v4099_v24  ;;  %v4124_v24 = vld [vmem:[%s5398_s4 + $0x758] sm:$0xff] }
  0xc3   :  { %5593 = vst [vmem:[#allocation200_spill] sm:$0xff] %v4104_v32  ;;  %v4129_v32 = vld [vmem:[%s5398_s4 + $0x760] sm:$0xff] }
  0xc4   :  { %5594 = vst [vmem:[#allocation201_spill] sm:$0xff] %v4109_v11  ;;  %v4134_v11 = vld [vmem:[%s5398_s4 + $0x768] sm:$0xff] }
  0xc5   :  { %5595 = vst [vmem:[#allocation202_spill] sm:$0xff] %v4114_v28  ;;  %v4139_v28 = vld [vmem:[%s5398_s4 + $0x770] sm:$0xff] }
  0xc6   :  { %5596 = vst [vmem:[#allocation203_spill] sm:$0xff] %v4119_v48  ;;  %v4144_v48 = vld [vmem:[%s5398_s4 + $0x778] sm:$0xff] }
  0xc7   :  { %5597 = vst [vmem:[#allocation204_spill] sm:$0xff] %v4124_v24  ;;  %v4149_v24 = vld [vmem:[%s5398_s4 + $0x780] sm:$0xff] }
  0xc8   :  { %5598 = vst [vmem:[#allocation205_spill] sm:$0xff] %v4129_v32  ;;  %v4154_v32 = vld [vmem:[%s5398_s4 + $0x788] sm:$0xff] }
  0xc9   :  { %5599 = vst [vmem:[#allocation206_spill] sm:$0xff] %v4134_v11  ;;  %v4159_v11 = vld [vmem:[%s5398_s4 + $0x790] sm:$0xff] }
  0xca   :  { %5600 = vst [vmem:[#allocation207_spill] sm:$0xff] %v4139_v28  ;;  %v4164_v28 = vld [vmem:[%s5398_s4 + $0x798] sm:$0xff] }
  0xcb   :  { %5601 = vst [vmem:[#allocation208_spill] sm:$0xff] %v4144_v48  ;;  %v4169_v48 = vld [vmem:[%s5398_s4 + $0x7a0] sm:$0xff] }
  0xcc   :  { %5602 = vst [vmem:[#allocation209_spill] sm:$0xff] %v4149_v24  ;;  %v4174_v24 = vld [vmem:[%s5398_s4 + $0x7a8] sm:$0xff] }
  0xcd   :  { %5603 = vst [vmem:[#allocation210_spill] sm:$0xff] %v4154_v32  ;;  %v4179_v32 = vld [vmem:[%s5398_s4 + $0x7b0] sm:$0xff] }
  0xce   :  { %5604 = vst [vmem:[#allocation211_spill] sm:$0xff] %v4159_v11  ;;  %v4184_v11 = vld [vmem:[%s5398_s4 + $0x7b8] sm:$0xff] }
  0xcf   :  { %5605 = vst [vmem:[#allocation212_spill] sm:$0xff] %v4164_v28  ;;  %v4189_v28 = vld [vmem:[%s5398_s4 + $0x7c0] sm:$0xff] }
  0xd0   :  { %5606 = vst [vmem:[#allocation213_spill] sm:$0xff] %v4169_v48  ;;  %v4194_v48 = vld [vmem:[%s5398_s4 + $0x7c8] sm:$0xff] }
  0xd1   :  { %5607 = vst [vmem:[#allocation214_spill] sm:$0xff] %v4174_v24  ;;  %v4199_v24 = vld [vmem:[%s5398_s4 + $0x7d0] sm:$0xff] }
  0xd2   :  { %5608 = vst [vmem:[#allocation215_spill] sm:$0xff] %v4179_v32  ;;  %v4204_v32 = vld [vmem:[%s5398_s4 + $0x7d8] sm:$0xff] }
  0xd3   :  { %5609 = vst [vmem:[#allocation216_spill] sm:$0xff] %v4184_v11  ;;  %v4209_v11 = vld [vmem:[%s5398_s4 + $0x7e0] sm:$0xff] }
  0xd4   :  { %5610 = vst [vmem:[#allocation217_spill] sm:$0xff] %v4189_v28  ;;  %v4214_v28 = vld [vmem:[%s5398_s4 + $0x7e8] sm:$0xff] }
  0xd5   :  { %5611 = vst [vmem:[#allocation218_spill] sm:$0xff] %v4194_v48  ;;  %v4219_v48 = vld [vmem:[%s5398_s4 + $0x7f0] sm:$0xff] }
  0xd6   :  { %5612 = vst [vmem:[#allocation219_spill] sm:$0xff] %v4199_v24  ;;  %v4224_v24 = vld [vmem:[%s5398_s4 + $0x7f8] sm:$0xff] }
  0xd7   :  { %5613 = vst [vmem:[#allocation220_spill] sm:$0xff] %v4204_v32  ;;  %v4229_v32 = vld [vmem:[%s5394_s0] sm:$0xff] }
  0xd8   :  { %5614 = vst [vmem:[#allocation221_spill] sm:$0xff] %v4209_v11 }
  0xd9   :  { %5615 = vst [vmem:[#allocation222_spill] sm:$0xff] %v4214_v28 }
  0xda   :  { %5616 = vst [vmem:[#allocation223_spill] sm:$0xff] %v4219_v48 }
  0xdb   :  { %5617 = vst [vmem:[#allocation224_spill] sm:$0xff] %v4224_v24 }
  0xdc   :  { %545 = vsyncadd [#allocation4], 32768  ;;  %s2907_s7 = smov 112   ;;  %s2908_s8 = smov 111   ;;  %v4240_v11 = vld [vmem:[%s5394_s0 + $0x8] sm:$0xff]  ;;  %v552_v48 = vlaneseq  ;;  %vm729_vm8 = vcmask 588800  }
  0xdd   :  { %668 = vrot.lane.b32.xlu1 %v4229_v32, %s2907_s7  ;;  %686 = vrot.lane.b32.xlu0 %v4229_v32, %s2908_s8  ;;  %s2909_s9 = smov 113   ;;  %s2910_s11 = smov 127   ;;  %v2825_v33 = vld [vmem:[%s5396_s2 + $0x10] ss:$8 sm:$0x3] }
  0xde   :  { %650 = vrot.lane.b32.xlu2 %v4229_v32, %s2909_s9  ;;  %s2911_s12 = smov 1   ;;  %s2912_s0 = smov 15   ;;  %v4268_v7 = vand.u32 127, %v552_v48  ;;  %v2824_v50 = vld [vmem:[%s5396_s2 + $0x7] ss:$8 sm:$0x3] }
  0xdf   :  { %s2913_s13 = smov 16   ;;  %s2914_s14 = smov 17   ;;  %v696_v23 = vperm.slane %v2825_v33, 0  ;;  %v697_v34 = vperm.slane %v2825_v33, 1  ;;  %v678_v19 = vperm.slane %v2824_v50, 0  ;;  %v679_v35 = vperm.slane %v2824_v50, 1 }
  0xe0   :  { %vm672_vm0 = vcmp.lt.s32.totalorder %v4268_v7, 112  ;;  %vm690_vm1 = vcmp.lt.s32.totalorder %v4268_v7, 111  ;;  %v2823_v48 = vld [vmem:[%s5396_s2 + $0x6] ss:$8 sm:$0x3]  ;;  %vm654_vm2 = vcmp.lt.s32.totalorder %v4268_v7, 113 }
  0xe1   :  { %v660_v53 = vperm.slane %v2823_v48, 0  ;;  %v661_v8 = vperm.slane %v2823_v48, 1  ;;  %v2822_v50 = vld [vmem:[%s5396_s2 + $0x5] ss:$8 sm:$0x3]  ;;  %vm636_vm3 = vcmp.lt.s32.totalorder %v4268_v7, 127 }
  0xe2   :  { %vm607_vm4 = vcmp.lt.s32.totalorder %v4268_v7, 1  ;;  %vm589_vm5 = vcmp.lt.s32.totalorder %v4268_v7, 15  ;;  %vm571_vm6 = vcmp.lt.s32.totalorder %v4268_v7, 16  ;;  %vm554_vm7 = vcmp.lt.s32.totalorder %v4268_v7, 17 }
  0xe5   :  { %670 = vrot.lane.b32.xlu1 %v4240_v11, %s2907_s7  ;;  %688 = vrot.lane.b32.xlu0 %v4240_v11, %s2908_s8 }
  0xe6   :  { %652 = vrot.lane.b32.xlu2 %v4240_v11, %s2909_s9 }
  0xed   :  { %634 = vrot.lane.b32.xlu1 %v4240_v11, %s2910_s11  ;;  %632 = vrot.lane.b32.xlu0 %v4229_v32, %s2910_s11 }
  0xee   :  { %603 = vrot.lane.b32.xlu2 %v4229_v32, %s2911_s12 }
  0xf5   :  { %585 = vrot.lane.b32.xlu1 %v4229_v32, %s2912_s0  ;;  %605 = vrot.lane.b32.xlu0 %v4240_v11, %s2911_s12 }
  0xf6   :  { %587 = vrot.lane.b32.xlu2 %v4240_v11, %s2912_s0 }
  0xfd   :  { %569 = vrot.lane.b32.xlu1 %v4240_v11, %s2913_s13  ;;  %567 = vrot.lane.b32.xlu0 %v4229_v32, %s2913_s13 }
  0xfe   :  { %548 = vrot.lane.b32.xlu2 %v4229_v32, %s2914_s14 }
 0x105   :  { %550 = vrot.lane.b32.xlu0 %v4240_v11, %s2914_s14 }
 0x138   :  { %v651_v28 = vpop.permute.xlu2 %650 }
 0x140   :  { %v653_v6 = vpop.permute.xlu2 %652 }
 0x141   :  { %v655_v37 = vsel %vm654_vm2, %v651_v28, %v653_v6 }
 0x142   :  { %v664_v48 = vmul.f32 %v660_v53, %v655_v37  ;;  %v2820_v53 = vld [vmem:[%s5396_s2 + $0x3] ss:$8 sm:$0x3] }
 0x14f   :  { %v669_v24 = vpop.permute.xlu1 %668  ;;  %v687_v49 = vpop.permute.xlu0 %686 }
 0x157   :  { %v671_v3 = vpop.permute.xlu1 %670  ;;  %v689_v51 = vpop.permute.xlu0 %688 }
 0x158   :  { %v673_v29 = vsel %vm672_vm0, %v669_v24, %v671_v3  ;;  %v674_v52 = vsel %vm672_vm0, %v671_v3, %v669_v24  ;;  %v691_v25 = vsel %vm690_vm1, %v687_v49, %v689_v51  ;;  %v692_v33 = vsel %vm690_vm1, %v689_v51, %v687_v49  ;;  %v2821_v24 = vld [vmem:[%s5396_s2 + $0x4] ss:$8 sm:$0x3] }
 0x159   :  { %v700_v36 = vmul.f32 %v696_v23, %v691_v25  ;;  %v701_v12 = vmul.f32 %v697_v34, %v692_v33  ;;  %v656_v3 = vsel %vm654_vm2, %v653_v6, %v651_v28  ;;  %v682_v23 = vmul.f32 %v678_v19, %v673_v29  ;;  %v604_v34 = vpop.permute.xlu2 %603  ;;  %v723_v6 = vld [vmem:[%s5397_s3 + $0x8] sm:$0xff] }
 0x15a   :  { %v683_v25 = vmul.f32 %v679_v35, %v674_v52  ;;  %v642_v49 = vperm.slane %v2822_v50, 0  ;;  %v643_v51 = vperm.slane %v2822_v50, 1  ;;  %v665_v33 = vmul.f32 %v661_v8, %v656_v3  ;;  %v2819_v50 = vld [vmem:[%s5396_s2 + $0x2] ss:$8 sm:$0x3] }
 0x15b   :  { %740 = vmatpush.msra.mxu0 %v700_v36  ;;  %760 = vmatpush.msra.mxu1 %v701_v12  ;;  %v624_v17 = vperm.slane %v2821_v24, 0  ;;  %v625_v54 = vperm.slane %v2821_v24, 1  ;;  %v2915_v28 = vmov 0   ;;  %v613_v3 = vperm.slane %v2820_v53, 0 }
 0x15c   :  { %2902 = vset.pattern.permute.xlu1 %v2915_v28  ;;  %2903 = vset.pattern.permute.xlu0 %v2915_v28  ;;  %v614_v24 = vperm.slane %v2820_v53, 1 }
 0x15d   :  { %741 = vmatpush.msra.mxu0 %v682_v23  ;;  %761 = vmatpush.msra.mxu1 %v683_v25  ;;  %v628_v37 = vmul.f32 %v624_v17, %v4229_v32  ;;  %v629_v52 = vmul.f32 %v625_v54, %v4240_v11  ;;  %v595_v54 = vperm.slane %v2819_v50, 0  ;;  %v596_v23 = vperm.slane %v2819_v50, 1 }
 0x15e   :  { %726 = vperm.xlu1 %2902, %v723_v6   ;;  %2904 = vset.pattern.permute.xlu2 %v2915_v28 }
 0x15f   :  { %v635_v12 = vpop.permute.xlu1 %634  ;;  %742 = vmatpush.msra.mxu0 %v664_v48  ;;  %762 = vmatpush.msra.mxu1 %v665_v33  ;;  %v633_v19 = vpop.permute.xlu0 %632 }
 0x160   :  { %v637_v29 = vsel %vm636_vm3, %v633_v19, %v635_v12  ;;  %v638_v35 = vsel %vm636_vm3, %v635_v12, %v633_v19 }
 0x161   :  { %v646_v8 = vmul.f32 %v642_v49, %v637_v29  ;;  %v647_v36 = vmul.f32 %v643_v51, %v638_v35  ;;  %v588_v17 = vpop.permute.xlu2 %587  ;;  %v2818_v35 = vld [vmem:[%s5396_s2 + $0x1] ss:$8 sm:$0x3] }
 0x163   :  { %743 = vmatpush.msra.mxu0 %v646_v8  ;;  %763 = vmatpush.msra.mxu1 %v647_v36  ;;  %v578_v8 = vperm.slane %v2818_v35, 1 }
 0x165   :  { %744 = vmatpush.msra.mxu0 %v628_v37  ;;  %764 = vmatpush.msra.mxu1 %v629_v52 }
 0x167   :  { %v586_v25 = vpop.permute.xlu1 %585  ;;  %v606_v49 = vpop.permute.xlu0 %605 }
 0x168   :  { %v608_v51 = vsel %vm607_vm4, %v604_v34, %v606_v49  ;;  %v609_v48 = vsel %vm607_vm4, %v606_v49, %v604_v34  ;;  %v590_v33 = vsel %vm589_vm5, %v586_v25, %v588_v17  ;;  %v591_v6 = vsel %vm589_vm5, %v588_v17, %v586_v25 }
 0x169   :  { %v617_v28 = vmul.f32 %v613_v3, %v609_v48  ;;  %v618_v12 = vmul.f32 %v614_v24, %v608_v51  ;;  %v599_v19 = vmul.f32 %v595_v54, %v591_v6  ;;  %v600_v29 = vmul.f32 %v596_v23, %v590_v33  ;;  %v557_v24 = vld [vmem:[%s5396_s2] ss:$8 sm:$0x3]  ;;  %v549_v17 = vpop.permute.xlu2 %548 }
 0x16a   :  { %v577_v34 = vperm.slane %v2818_v35, 0  ;;  %v559_v54 = vperm.slane %v557_v24, 0  ;;  %v560_v23 = vperm.slane %v557_v24, 1  ;;  %v704_v6 = vld [vmem:[%s5397_s3] sm:$0xff] }
 0x16b   :  { %745 = vmatpush.msra.mxu0 %v617_v28  ;;  %765 = vmatpush.msra.mxu1 %v618_v12 }
 0x16d   :  { %746 = vmatpush.msra.mxu0 %v599_v19  ;;  %766 = vmatpush.msra.mxu1 %v600_v29 }
 0x16f   :  { %v570_v36 = vpop.permute.xlu1 %569  ;;  %v568_v37 = vpop.permute.xlu0 %567 }
 0x170   :  { %v572_v52 = vsel %vm571_vm6, %v568_v37, %v570_v36  ;;  %v573_v53 = vsel %vm571_vm6, %v570_v36, %v568_v37 }
 0x171   :  { %v581_v50 = vmul.f32 %v577_v34, %v573_v53  ;;  %v582_v3 = vmul.f32 %v578_v8, %v572_v52  ;;  %v2835_v52 = vld [vmem:[%s5396_s2 + $0x10] ss:$8 sm:$0x3]  ;;  %v2834_v53 = vld [vmem:[%s5396_s2 + $0x7] ss:$8 sm:$0x3] }
 0x173   :  { %747 = vmatpush.msra.mxu0 %v581_v50  ;;  %767 = vmatpush.msra.mxu1 %v582_v3  ;;  %v905_v50 = vperm.slane %v2835_v52, 0  ;;  %v906_v3 = vperm.slane %v2835_v52, 1  ;;  %v932_v52 = vld [vmem:[%s5397_s3 + $0x18] sm:$0xff] }
 0x177   :  { %v551_v25 = vpop.permute.xlu0 %550 }
 0x178   :  { %v555_v49 = vsel %vm554_vm7, %v549_v17, %v551_v25  ;;  %v556_v51 = vsel %vm554_vm7, %v551_v25, %v549_v17 }
 0x179   :  { %v563_v48 = vmul.f32 %v559_v54, %v556_v51  ;;  %v564_v33 = vmul.f32 %v560_v23, %v555_v49  ;;  %v889_v54 = vperm.slane %v2834_v53, 0  ;;  %v890_v23 = vperm.slane %v2834_v53, 1 }
 0x17b   :  { %748 = vmatpush.msra.mxu0 %v563_v48  ;;  %768 = vmatpush.msra.mxu1 %v564_v33 }
 0x17c   :  { %2826 = vmatmul.msk.f32.vlgmr.msra.gmra.mxu0 %vm729_vm8, %v704_v6  ;;  %2827 = vmatmul.msk.f32.vlgmr.msra.gmra.mxu1 %vm729_vm8, %v704_v6 }
 0x1d0   :  { %v727_v28 = vpop.permute.xlu1 %726 }
 0x1f9   :  { %v750_v12 = vpop.f32.mrf.mxu0  ;;  %v770_v19 = vpop.f32.mrf.mxu1 }
 0x1fa   :  { %v751_v29 = vadd.f32 %v750_v12, %v727_v28  ;;  %v771_v35 = vadd.f32 %v770_v19, %v727_v28  ;;  %v2833_v12 = vld [vmem:[%s5396_s2 + $0x6] ss:$8 sm:$0x3] }
 0x1fc   :  { %v4347_v34 = vmax.f32 %v751_v29, 0.0  ;;  %v4349_v8 = vmax.f32 %v771_v35, 0.0  ;;  %v873_v35 = vperm.slane %v2833_v12, 0 }
 0x1fe   :  { %899 = vrot.lane.b32.xlu0 %v4349_v8, %s2908_s8  ;;  %881 = vrot.lane.b32.xlu1 %v4347_v34, %s2907_s7 }
 0x1ff   :  { %897 = vrot.lane.b32.xlu2 %v4347_v34, %s2908_s8 }
 0x206   :  { %865 = vrot.lane.b32.xlu0 %v4347_v34, %s2909_s9  ;;  %867 = vrot.lane.b32.xlu1 %v4349_v8, %s2909_s9 }
 0x207   :  { %883 = vrot.lane.b32.xlu2 %v4349_v8, %s2907_s7 }
 0x20e   :  { %851 = vrot.lane.b32.xlu0 %v4349_v8, %s2910_s11  ;;  %823 = vrot.lane.b32.xlu1 %v4347_v34, %s2911_s12 }
 0x20f   :  { %849 = vrot.lane.b32.xlu2 %v4347_v34, %s2910_s11 }
 0x216   :  { %807 = vrot.lane.b32.xlu0 %v4347_v34, %s2912_s0  ;;  %809 = vrot.lane.b32.xlu1 %v4349_v8, %s2912_s0 }
 0x217   :  { %825 = vrot.lane.b32.xlu2 %v4349_v8, %s2911_s12 }
 0x21e   :  { %793 = vrot.lane.b32.xlu0 %v4349_v8, %s2913_s13  ;;  %775 = vrot.lane.b32.xlu1 %v4347_v34, %s2914_s14 }
 0x21f   :  { %791 = vrot.lane.b32.xlu2 %v4347_v34, %s2913_s13 }
 0x226   :  { %935 = vperm.xlu0 %2903, %v932_v52  }
 0x227   :  { %777 = vrot.lane.b32.xlu2 %v4349_v8, %s2914_s14 }
 0x259   :  { %v898_v36 = vpop.permute.xlu2 %897 }
 0x261   :  { %v884_v37 = vpop.permute.xlu2 %883 }
 0x269   :  { %v850_v25 = vpop.permute.xlu2 %849 }
 0x270   :  { %v900_v24 = vpop.permute.xlu0 %899  ;;  %v882_v17 = vpop.permute.xlu1 %881 }
 0x271   :  { %v885_v49 = vsel %vm672_vm0, %v882_v17, %v884_v37  ;;  %v886_v51 = vsel %vm672_vm0, %v884_v37, %v882_v17  ;;  %v901_v48 = vsel %vm690_vm1, %v898_v36, %v900_v24  ;;  %v902_v33 = vsel %vm690_vm1, %v900_v24, %v898_v36 }
 0x272   :  { %v909_v6 = vmul.f32 %v905_v50, %v901_v48  ;;  %v910_v28 = vmul.f32 %v906_v3, %v902_v33  ;;  %v893_v19 = vmul.f32 %v889_v54, %v885_v49  ;;  %v894_v29 = vmul.f32 %v890_v23, %v886_v51  ;;  %v826_v54 = vpop.permute.xlu2 %825  ;;  %v2832_v23 = vld [vmem:[%s5396_s2 + $0x5] ss:$8 sm:$0x3]  ;;  %v2831_v49 = vld [vmem:[%s5396_s2 + $0x4] ss:$8 sm:$0x3] }
 0x273   :  { %v874_v37 = vperm.slane %v2833_v12, 1  ;;  %v857_v51 = vperm.slane %v2832_v23, 0  ;;  %v858_v48 = vperm.slane %v2832_v23, 1  ;;  %v2830_v33 = vld [vmem:[%s5396_s2 + $0x3] ss:$8 sm:$0x3] }
 0x274   :  { %948 = vmatpush.msra.mxu2 %v909_v6  ;;  %968 = vmatpush.msra.mxu3 %v910_v28  ;;  %v841_v12 = vperm.slane %v2831_v49, 0 }
 0x276   :  { %949 = vmatpush.msra.mxu2 %v893_v19  ;;  %969 = vmatpush.msra.mxu3 %v894_v29  ;;  %v842_v19 = vperm.slane %v2831_v49, 1 }
 0x278   :  { %v866_v53 = vpop.permute.xlu0 %865  ;;  %v868_v36 = vpop.permute.xlu1 %867 }
 0x279   :  { %v869_v50 = vsel %vm654_vm2, %v866_v53, %v868_v36  ;;  %v870_v3 = vsel %vm654_vm2, %v868_v36, %v866_v53  ;;  %v831_v53 = vperm.slane %v2830_v33, 0  ;;  %v832_v36 = vperm.slane %v2830_v33, 1 }
 0x27a   :  { %v877_v24 = vmul.f32 %v873_v35, %v869_v50  ;;  %v878_v17 = vmul.f32 %v874_v37, %v870_v3  ;;  %v792_v23 = vpop.permute.xlu2 %791 }
 0x27c   :  { %950 = vmatpush.msra.mxu2 %v877_v24  ;;  %970 = vmatpush.msra.mxu3 %v878_v17  ;;  %v2829_v24 = vld [vmem:[%s5396_s2 + $0x2] ss:$8 sm:$0x3]  ;;  %v845_v17 = vmul.f32 %v841_v12, %v4347_v34 }
 0x27d   :  { %v816_v33 = vperm.slane %v2829_v24, 1 }
 0x280   :  { %v852_v6 = vpop.permute.xlu0 %851  ;;  %v824_v28 = vpop.permute.xlu1 %823 }
 0x281   :  { %v853_v29 = vsel %vm636_vm3, %v850_v25, %v852_v6  ;;  %v854_v35 = vsel %vm636_vm3, %v852_v6, %v850_v25  ;;  %v827_v50 = vsel %vm607_vm4, %v824_v28, %v826_v54  ;;  %v828_v3 = vsel %vm607_vm4, %v826_v54, %v824_v28 }
 0x282   :  { %v861_v37 = vmul.f32 %v857_v51, %v853_v29  ;;  %v862_v52 = vmul.f32 %v858_v48, %v854_v35  ;;  %v846_v25 = vmul.f32 %v842_v19, %v4349_v8  ;;  %v835_v49 = vmul.f32 %v831_v53, %v828_v3  ;;  %v2828_v8 = vld [vmem:[%s5396_s2 + $0x1] ss:$8 sm:$0x3]  ;;  %v781_v19 = vld [vmem:[%s5396_s2] ss:$8 sm:$0x3] }
 0x283   :  { %v836_v51 = vmul.f32 %v832_v36, %v827_v50  ;;  %v815_v48 = vperm.slane %v2829_v24, 0  ;;  %v799_v35 = vperm.slane %v2828_v8, 0  ;;  %v783_v50 = vperm.slane %v781_v19, 0 }
 0x284   :  { %951 = vmatpush.msra.mxu2 %v861_v37  ;;  %971 = vmatpush.msra.mxu3 %v862_v52  ;;  %v800_v37 = vperm.slane %v2828_v8, 1  ;;  %v778_v52 = vpop.permute.xlu2 %777  ;;  %v784_v3 = vperm.slane %v781_v19, 1 }
 0x286   :  { %952 = vmatpush.msra.mxu2 %v845_v17  ;;  %972 = vmatpush.msra.mxu3 %v846_v25 }
 0x288   :  { %v808_v6 = vpop.permute.xlu0 %807  ;;  %v810_v29 = vpop.permute.xlu1 %809  ;;  %953 = vmatpush.msra.mxu2 %v835_v49  ;;  %973 = vmatpush.msra.mxu3 %v836_v51 }
 0x289   :  { %v811_v54 = vsel %vm589_vm5, %v808_v6, %v810_v29  ;;  %v812_v28 = vsel %vm589_vm5, %v810_v29, %v808_v6  ;;  %v913_v29 = vld [vmem:[%s5397_s3 + $0x10] sm:$0xff] }
 0x28a   :  { %v819_v34 = vmul.f32 %v815_v48, %v812_v28  ;;  %v820_v12 = vmul.f32 %v816_v33, %v811_v54 }
 0x28c   :  { %954 = vmatpush.msra.mxu2 %v819_v34  ;;  %974 = vmatpush.msra.mxu3 %v820_v12 }
 0x290   :  { %v794_v53 = vpop.permute.xlu0 %793  ;;  %v776_v36 = vpop.permute.xlu1 %775 }
 0x291   :  { %v795_v24 = vsel %vm571_vm6, %v792_v23, %v794_v53  ;;  %v796_v17 = vsel %vm571_vm6, %v794_v53, %v792_v23  ;;  %v779_v25 = vsel %vm554_vm7, %v776_v36, %v778_v52  ;;  %v780_v49 = vsel %vm554_vm7, %v778_v52, %v776_v36  ;;  %v2845_v52 = vld [vmem:[%s5396_s2 + $0x10] ss:$8 sm:$0x3] }
 0x292   :  { %v803_v51 = vmul.f32 %v799_v35, %v796_v17  ;;  %v804_v48 = vmul.f32 %v800_v37, %v795_v24  ;;  %v787_v33 = vmul.f32 %v783_v50, %v780_v49  ;;  %v788_v6 = vmul.f32 %v784_v3, %v779_v25  ;;  %v1140_v35 = vld [vmem:[%s5397_s3 + $0x28] sm:$0xff] }
 0x293   :  { %v1113_v53 = vperm.slane %v2845_v52, 0  ;;  %v1114_v36 = vperm.slane %v2845_v52, 1  ;;  %v2842_v52 = vld [vmem:[%s5396_s2 + $0x5] ss:$8 sm:$0x3] }
 0x294   :  { %955 = vmatpush.msra.mxu2 %v803_v51  ;;  %975 = vmatpush.msra.mxu3 %v804_v48  ;;  %v2844_v48 = vld [vmem:[%s5396_s2 + $0x7] ss:$8 sm:$0x3] }
 0x296   :  { %956 = vmatpush.msra.mxu2 %v787_v33  ;;  %976 = vmatpush.msra.mxu3 %v788_v6  ;;  %v1097_v33 = vperm.slane %v2844_v48, 0  ;;  %v1098_v6 = vperm.slane %v2844_v48, 1 }
 0x297   :  { %2836 = vmatmul.msk.f32.vlgmr.msra.gmra.mxu2 %vm729_vm8, %v913_v29  ;;  %2837 = vmatmul.msk.f32.vlgmr.msra.gmra.mxu3 %vm729_vm8, %v913_v29 }
 0x298   :  { %v936_v23 = vpop.permute.xlu0 %935 }
 0x31a   :  { %v958_v54 = vpop.f32.mrf.mxu2  ;;  %v978_v28 = vpop.f32.mrf.mxu3 }
 0x31b   :  { %v959_v34 = vadd.f32 %v958_v54, %v936_v23  ;;  %v979_v12 = vadd.f32 %v978_v28, %v936_v23 }
 0x31d   :  { %v4452_v8 = vmax.f32 %v959_v34, 0.0  ;;  %v4454_v19 = vmax.f32 %v979_v12, 0.0 }
 0x31f   :  { %1107 = vrot.lane.b32.xlu2 %v4454_v19, %s2908_s8  ;;  %1073 = vrot.lane.b32.xlu0 %v4452_v8, %s2909_s9 }
 0x320   :  { %1105 = vrot.lane.b32.xlu1 %v4452_v8, %s2908_s8 }
 0x327   :  { %1091 = vrot.lane.b32.xlu2 %v4454_v19, %s2907_s7  ;;  %1059 = vrot.lane.b32.xlu0 %v4454_v19, %s2910_s11 }
 0x328   :  { %1089 = vrot.lane.b32.xlu1 %v4452_v8, %s2907_s7 }
 0x32f   :  { %1057 = vrot.lane.b32.xlu2 %v4452_v8, %s2910_s11  ;;  %1015 = vrot.lane.b32.xlu0 %v4452_v8, %s2912_s0 }
 0x330   :  { %1075 = vrot.lane.b32.xlu1 %v4454_v19, %s2909_s9 }
 0x337   :  { %1033 = vrot.lane.b32.xlu2 %v4454_v19, %s2911_s12  ;;  %1001 = vrot.lane.b32.xlu0 %v4454_v19, %s2913_s13 }
 0x338   :  { %1031 = vrot.lane.b32.xlu1 %v4452_v8, %s2911_s12 }
 0x33f   :  { %999 = vrot.lane.b32.xlu2 %v4452_v8, %s2913_s13  ;;  %1143 = vperm.xlu0 %2903, %v1140_v35  }
 0x340   :  { %1017 = vrot.lane.b32.xlu1 %v4454_v19, %s2912_s0 }
 0x347   :  { %985 = vrot.lane.b32.xlu2 %v4454_v19, %s2914_s14 }
 0x348   :  { %983 = vrot.lane.b32.xlu1 %v4452_v8, %s2914_s14 }
 0x379   :  { %v1108_v37 = vpop.permute.xlu2 %1107 }
 0x381   :  { %v1092_v50 = vpop.permute.xlu2 %1091 }
 0x389   :  { %v1058_v28 = vpop.permute.xlu2 %1057 }
 0x391   :  { %v1074_v3 = vpop.permute.xlu0 %1073 }
 0x392   :  { %v1106_v24 = vpop.permute.xlu1 %1105 }
 0x393   :  { %v1109_v17 = vsel %vm690_vm1, %v1106_v24, %v1108_v37  ;;  %v1110_v25 = vsel %vm690_vm1, %v1108_v37, %v1106_v24  ;;  %v2843_v37 = vld [vmem:[%s5396_s2 + $0x6] ss:$8 sm:$0x3] }
 0x394   :  { %v1117_v49 = vmul.f32 %v1113_v53, %v1109_v17  ;;  %v1118_v51 = vmul.f32 %v1114_v36, %v1110_v25  ;;  %v1081_v53 = vperm.slane %v2843_v37, 0  ;;  %v1082_v36 = vperm.slane %v2843_v37, 1 }
 0x395   :  { %v1065_v17 = vperm.slane %v2842_v52, 0  ;;  %v1066_v25 = vperm.slane %v2842_v52, 1 }
 0x396   :  { %1156 = vmatpush.msrb.mxu0 %v1117_v49  ;;  %1176 = vmatpush.msrb.mxu1 %v1118_v51 }
 0x399   :  { %v1060_v34 = vpop.permute.xlu0 %1059 }
 0x39a   :  { %v1090_v29 = vpop.permute.xlu1 %1089  ;;  %v1061_v49 = vsel %vm636_vm3, %v1058_v28, %v1060_v34  ;;  %v1062_v51 = vsel %vm636_vm3, %v1060_v34, %v1058_v28 }
 0x39b   :  { %v1093_v23 = vsel %vm672_vm0, %v1090_v29, %v1092_v50  ;;  %v1094_v54 = vsel %vm672_vm0, %v1092_v50, %v1090_v29  ;;  %v2841_v50 = vld [vmem:[%s5396_s2 + $0x4] ss:$8 sm:$0x3]  ;;  %v1069_v52 = vmul.f32 %v1065_v17, %v1061_v49  ;;  %v1070_v28 = vmul.f32 %v1066_v25, %v1062_v51  ;;  %v2839_v25 = vld [vmem:[%s5396_s2 + $0x2] ss:$8 sm:$0x3] }
 0x39c   :  { %v1101_v12 = vmul.f32 %v1097_v33, %v1093_v23  ;;  %v1102_v35 = vmul.f32 %v1098_v6, %v1094_v54  ;;  %v1050_v23 = vperm.slane %v2841_v50, 1  ;;  %v1049_v54 = vperm.slane %v2841_v50, 0 }
 0x39d   :  { %v1023_v51 = vperm.slane %v2839_v25, 0 }
 0x39e   :  { %1157 = vmatpush.msrb.mxu0 %v1101_v12  ;;  %1177 = vmatpush.msrb.mxu1 %v1102_v35  ;;  %v2840_v12 = vld [vmem:[%s5396_s2 + $0x3] ss:$8 sm:$0x3]  ;;  %v1034_v35 = vpop.permute.xlu2 %1033  ;;  %v1054_v34 = vmul.f32 %v1050_v23, %v4454_v19 }
 0x3a1   :  { %v1016_v37 = vpop.permute.xlu0 %1015 }
 0x3a2   :  { %v1076_v24 = vpop.permute.xlu1 %1075 }
 0x3a3   :  { %v1077_v48 = vsel %vm654_vm2, %v1074_v3, %v1076_v24  ;;  %v1078_v33 = vsel %vm654_vm2, %v1076_v24, %v1074_v3  ;;  %v1053_v3 = vmul.f32 %v1049_v54, %v4452_v8  ;;  %v2838_v8 = vld [vmem:[%s5396_s2 + $0x1] ss:$8 sm:$0x3] }
 0x3a4   :  { %v1085_v6 = vmul.f32 %v1081_v53, %v1077_v48  ;;  %v1086_v29 = vmul.f32 %v1082_v36, %v1078_v33  ;;  %v1039_v53 = vperm.slane %v2840_v12, 0  ;;  %v1040_v36 = vperm.slane %v2840_v12, 1 }
 0x3a5   :  { %v1007_v23 = vperm.slane %v2838_v8, 0  ;;  %v1008_v54 = vperm.slane %v2838_v8, 1 }
 0x3a6   :  { %1158 = vmatpush.msrb.mxu0 %v1085_v6  ;;  %1178 = vmatpush.msrb.mxu1 %v1086_v29  ;;  %v1000_v19 = vpop.permute.xlu2 %999  ;;  %v1024_v6 = vperm.slane %v2839_v25, 1 }
 0x3a8   :  { %1159 = vmatpush.msrb.mxu0 %v1069_v52  ;;  %1179 = vmatpush.msrb.mxu1 %v1070_v28 }
 0x3a9   :  { %v1002_v49 = vpop.permute.xlu0 %1001 }
 0x3aa   :  { %1180 = vmatpush.msrb.mxu1 %v1054_v34  ;;  %v1032_v50 = vpop.permute.xlu1 %1031  ;;  %1160 = vmatpush.msrb.mxu0 %v1053_v3  ;;  %v1003_v12 = vsel %vm571_vm6, %v1000_v19, %v1002_v49 }
 0x3ab   :  { %v1035_v24 = vsel %vm607_vm4, %v1032_v50, %v1034_v35  ;;  %v1036_v48 = vsel %vm607_vm4, %v1034_v35, %v1032_v50  ;;  %v1004_v35 = vsel %vm571_vm6, %v1002_v49, %v1000_v19  ;;  %v1012_v50 = vmul.f32 %v1008_v54, %v1003_v12  ;;  %v1121_v49 = vld [vmem:[%s5397_s3 + $0x20] sm:$0xff] }
 0x3ac   :  { %v1043_v33 = vmul.f32 %v1039_v53, %v1036_v48  ;;  %v1044_v17 = vmul.f32 %v1040_v36, %v1035_v24  ;;  %v989_v53 = vld [vmem:[%s5396_s2] ss:$8 sm:$0x3]  ;;  %v1011_v36 = vmul.f32 %v1007_v23, %v1004_v35 }
 0x3ad   :  { %v991_v24 = vperm.slane %v989_v53, 0  ;;  %v992_v48 = vperm.slane %v989_v53, 1 }
 0x3ae   :  { %1161 = vmatpush.msrb.mxu0 %v1043_v33  ;;  %1181 = vmatpush.msrb.mxu1 %v1044_v17  ;;  %v986_v33 = vpop.permute.xlu2 %985 }
 0x3b2   :  { %v1018_v29 = vpop.permute.xlu1 %1017 }
 0x3b3   :  { %v1019_v52 = vsel %vm589_vm5, %v1016_v37, %v1018_v29  ;;  %v1020_v28 = vsel %vm589_vm5, %v1018_v29, %v1016_v37 }
 0x3b4   :  { %v1027_v34 = vmul.f32 %v1023_v51, %v1020_v28  ;;  %v1028_v3 = vmul.f32 %v1024_v6, %v1019_v52  ;;  %v1144_v51 = vpop.permute.xlu0 %1143 }
 0x3b6   :  { %1162 = vmatpush.msrb.mxu0 %v1027_v34  ;;  %1182 = vmatpush.msrb.mxu1 %v1028_v3 }
 0x3b8   :  { %1163 = vmatpush.msrb.mxu0 %v1011_v36  ;;  %1183 = vmatpush.msrb.mxu1 %v1012_v50 }
 0x3ba   :  { %v984_v17 = vpop.permute.xlu1 %983 }
 0x3bb   :  { %v987_v25 = vsel %vm554_vm7, %v984_v17, %v986_v33  ;;  %v988_v37 = vsel %vm554_vm7, %v986_v33, %v984_v17 }
 0x3bc   :  { %v995_v8 = vmul.f32 %v991_v24, %v988_v37  ;;  %v996_v19 = vmul.f32 %v992_v48, %v987_v25  ;;  %v2854_v25 = vld [vmem:[%s5396_s2 + $0x7] ss:$8 sm:$0x3]  ;;  %v2853_v37 = vld [vmem:[%s5396_s2 + $0x6] ss:$8 sm:$0x3] }
 0x3be   :  { %1164 = vmatpush.msrb.mxu0 %v995_v8  ;;  %1184 = vmatpush.msrb.mxu1 %v996_v19  ;;  %v1307_v8 = vperm.slane %v2854_v25, 0  ;;  %v1308_v19 = vperm.slane %v2854_v25, 1 }
 0x3bf   :  { %2846 = vmatmul.msk.f32.vlgmr.msrb.gmra.mxu0 %vm729_vm8, %v1121_v49  ;;  %2847 = vmatmul.msk.f32.vlgmr.msrb.gmra.mxu1 %vm729_vm8, %v1121_v49 }
 0x43c   :  { %v1166_v6 = vpop.f32.mrf.mxu0  ;;  %v1186_v29 = vpop.f32.mrf.mxu1 }
 0x43d   :  { %v1167_v23 = vadd.f32 %v1166_v6, %v1144_v51  ;;  %v1187_v54 = vadd.f32 %v1186_v29, %v1144_v51  ;;  %v1291_v6 = vperm.slane %v2853_v37, 0  ;;  %v1292_v29 = vperm.slane %v2853_v37, 1 }
 0x43f   :  { %v1189_v12 = vadd.f32 %v1167_v23, %v4229_v32  ;;  %v1190_v35 = vadd.f32 %v1187_v54, %v4240_v11  ;;  %v2855_v32 = vld [vmem:[%s5396_s2 + $0x10] ss:$8 sm:$0x3] }
 0x440   :  { %v1323_v34 = vperm.slane %v2855_v32, 0  ;;  %v1324_v3 = vperm.slane %v2855_v32, 1 }
 0x441   :  { %v4559_v52 = vmax.f32 %v1189_v12, 0.0  ;;  %v4561_v28 = vmax.f32 %v1190_v35, 0.0 }
 0x443   :  { %1317 = vrot.lane.b32.xlu2 %v4561_v28, %s2908_s8  ;;  %1299 = vrot.lane.b32.xlu0 %v4559_v52, %s2907_s7 }
 0x444   :  { %1315 = vrot.lane.b32.xlu1 %v4559_v52, %s2908_s8 }
 0x44b   :  { %1283 = vrot.lane.b32.xlu2 %v4559_v52, %s2909_s9  ;;  %1285 = vrot.lane.b32.xlu0 %v4561_v28, %s2909_s9 }
 0x44c   :  { %1301 = vrot.lane.b32.xlu1 %v4561_v28, %s2907_s7 }
 0x453   :  { %1269 = vrot.lane.b32.xlu2 %v4561_v28, %s2910_s11  ;;  %1241 = vrot.lane.b32.xlu0 %v4559_v52, %s2911_s12 }
 0x454   :  { %1267 = vrot.lane.b32.xlu1 %v4559_v52, %s2910_s11 }
 0x45b   :  { %1225 = vrot.lane.b32.xlu2 %v4559_v52, %s2912_s0  ;;  %1227 = vrot.lane.b32.xlu0 %v4561_v28, %s2912_s0 }
 0x45c   :  { %1243 = vrot.lane.b32.xlu1 %v4561_v28, %s2911_s12 }
 0x463   :  { %1211 = vrot.lane.b32.xlu2 %v4561_v28, %s2913_s13  ;;  %1193 = vrot.lane.b32.xlu0 %v4559_v52, %s2914_s14 }
 0x464   :  { %1209 = vrot.lane.b32.xlu1 %v4559_v52, %s2913_s13 }
 0x46c   :  { %1195 = vrot.lane.b32.xlu1 %v4561_v28, %s2914_s14 }
 0x49d   :  { %v1318_v11 = vpop.permute.xlu2 %1317 }
 0x4a5   :  { %v1284_v48 = vpop.permute.xlu2 %1283 }
 0x4b5   :  { %v1300_v53 = vpop.permute.xlu0 %1299 }
 0x4b6   :  { %v1316_v36 = vpop.permute.xlu1 %1315 }
 0x4b7   :  { %v1319_v50 = vsel %vm690_vm1, %v1316_v36, %v1318_v11  ;;  %v1320_v24 = vsel %vm690_vm1, %v1318_v11, %v1316_v36 }
 0x4b8   :  { %v1327_v33 = vmul.f32 %v1323_v34, %v1319_v50  ;;  %v1328_v17 = vmul.f32 %v1324_v3, %v1320_v24  ;;  %v2852_v34 = vld [vmem:[%s5396_s2 + $0x5] ss:$8 sm:$0x3]  ;;  %v1270_v3 = vpop.permute.xlu2 %1269  ;;  %v2851_v24 = vld [vmem:[%s5396_s2 + $0x4] ss:$8 sm:$0x3] }
 0x4b9   :  { %v1259_v37 = vperm.slane %v2851_v24, 0 }
 0x4ba   :  { %1366 = vmatpush.msrb.mxu2 %v1327_v33  ;;  %1386 = vmatpush.msrb.mxu3 %v1328_v17  ;;  %v1276_v33 = vperm.slane %v2852_v34, 1 }
 0x4bd   :  { %v1286_v49 = vpop.permute.xlu0 %1285 }
 0x4be   :  { %v1302_v51 = vpop.permute.xlu1 %1301  ;;  %v1287_v23 = vsel %vm654_vm2, %v1284_v48, %v1286_v49  ;;  %v1288_v54 = vsel %vm654_vm2, %v1286_v49, %v1284_v48  ;;  %v1350_v48 = vld [vmem:[%s5397_s3 + $0x38] sm:$0xff] }
 0x4bf   :  { %v1303_v12 = vsel %vm672_vm0, %v1300_v53, %v1302_v51  ;;  %v1304_v35 = vsel %vm672_vm0, %v1302_v51, %v1300_v53  ;;  %v1295_v36 = vmul.f32 %v1291_v6, %v1287_v23  ;;  %v1296_v50 = vmul.f32 %v1292_v29, %v1288_v54  ;;  %1353 = vperm.xlu2 %2904, %v1350_v48   ;;  %v2850_v29 = vld [vmem:[%s5396_s2 + $0x3] ss:$8 sm:$0x3] }
 0x4c0   :  { %v1311_v11 = vmul.f32 %v1307_v8, %v1303_v12  ;;  %v1312_v32 = vmul.f32 %v1308_v19, %v1304_v35  ;;  %v1275_v53 = vperm.slane %v2852_v34, 0  ;;  %v1260_v8 = vperm.slane %v2851_v24, 1  ;;  %v2849_v12 = vld [vmem:[%s5396_s2 + $0x2] ss:$8 sm:$0x3]  ;;  %v1226_v35 = vpop.permute.xlu2 %1225 }
 0x4c1   :  { %v1263_v23 = vmul.f32 %v1259_v37, %v4559_v52 }
 0x4c2   :  { %1367 = vmatpush.msrb.mxu2 %v1311_v11  ;;  %1387 = vmatpush.msrb.mxu3 %v1312_v32  ;;  %v1264_v54 = vmul.f32 %v1260_v8, %v4561_v28  ;;  %v1249_v11 = vperm.slane %v2850_v29, 0  ;;  %v1250_v32 = vperm.slane %v2850_v29, 1 }
 0x4c4   :  { %1368 = vmatpush.msrb.mxu2 %v1295_v36  ;;  %1388 = vmatpush.msrb.mxu3 %v1296_v50  ;;  %v1233_v36 = vperm.slane %v2849_v12, 0  ;;  %v1234_v50 = vperm.slane %v2849_v12, 1  ;;  %v1199_v12 = vld [vmem:[%s5396_s2] ss:$8 sm:$0x3] }
 0x4c5   :  { %v1242_v17 = vpop.permute.xlu0 %1241 }
 0x4c6   :  { %v1268_v25 = vpop.permute.xlu1 %1267 }
 0x4c7   :  { %v1271_v19 = vsel %vm636_vm3, %v1268_v25, %v1270_v3  ;;  %v1272_v49 = vsel %vm636_vm3, %v1270_v3, %v1268_v25  ;;  %v2848_v25 = vld [vmem:[%s5396_s2 + $0x1] ss:$8 sm:$0x3] }
 0x4c8   :  { %v1279_v51 = vmul.f32 %v1275_v53, %v1271_v19  ;;  %v1280_v6 = vmul.f32 %v1276_v33, %v1272_v49  ;;  %v1217_v19 = vperm.slane %v2848_v25, 0  ;;  %v1218_v49 = vperm.slane %v2848_v25, 1 }
 0x4ca   :  { %1369 = vmatpush.msrb.mxu2 %v1279_v51  ;;  %1389 = vmatpush.msrb.mxu3 %v1280_v6  ;;  %v1212_v51 = vpop.permute.xlu2 %1211 }
 0x4cc   :  { %1370 = vmatpush.msrb.mxu2 %v1263_v23  ;;  %1390 = vmatpush.msrb.mxu3 %v1264_v54 }
 0x4cd   :  { %v1228_v34 = vpop.permute.xlu0 %1227 }
 0x4ce   :  { %v1244_v3 = vpop.permute.xlu1 %1243  ;;  %v1229_v24 = vsel %vm589_vm5, %v1226_v35, %v1228_v34  ;;  %v1230_v52 = vsel %vm589_vm5, %v1228_v34, %v1226_v35  ;;  %v1201_v35 = vperm.slane %v1199_v12, 0 }
 0x4cf   :  { %v1245_v28 = vsel %vm607_vm4, %v1242_v17, %v1244_v3  ;;  %v1246_v48 = vsel %vm607_vm4, %v1244_v3, %v1242_v17  ;;  %v1237_v37 = vmul.f32 %v1233_v36, %v1230_v52  ;;  %v1238_v8 = vmul.f32 %v1234_v50, %v1229_v24  ;;  %v1331_v52 = vld [vmem:[%s5397_s3 + $0x30] sm:$0xff] }
 0x4d0   :  { %v1253_v53 = vmul.f32 %v1249_v11, %v1246_v48  ;;  %v1254_v33 = vmul.f32 %v1250_v32, %v1245_v28  ;;  %v1202_v11 = vperm.slane %v1199_v12, 1 }
 0x4d2   :  { %1371 = vmatpush.msrb.mxu2 %v1253_v53  ;;  %1391 = vmatpush.msrb.mxu3 %v1254_v33 }
 0x4d4   :  { %1372 = vmatpush.msrb.mxu2 %v1237_v37  ;;  %1392 = vmatpush.msrb.mxu3 %v1238_v8 }
 0x4d5   :  { %v1194_v32 = vpop.permute.xlu0 %1193 }
 0x4d6   :  { %v1210_v6 = vpop.permute.xlu1 %1209 }
 0x4d7   :  { %v1213_v29 = vsel %vm571_vm6, %v1210_v6, %v1212_v51  ;;  %v1214_v17 = vsel %vm571_vm6, %v1212_v51, %v1210_v6  ;;  %v2865_v51 = vld [vmem:[%s5396_s2 + $0x10] ss:$8 sm:$0x3] }
 0x4d8   :  { %v1221_v23 = vmul.f32 %v1217_v19, %v1214_v17  ;;  %v1222_v54 = vmul.f32 %v1218_v49, %v1213_v29  ;;  %v1558_v19 = vld [vmem:[%s5397_s3 + $0x48] sm:$0xff]  ;;  %v1531_v6 = vperm.slane %v2865_v51, 0  ;;  %v1532_v29 = vperm.slane %v2865_v51, 1 }
 0x4da   :  { %1373 = vmatpush.msrb.mxu2 %v1221_v23  ;;  %1393 = vmatpush.msrb.mxu3 %v1222_v54 }
 0x4de   :  { %v1196_v34 = vpop.permute.xlu1 %1195 }
 0x4df   :  { %v1197_v3 = vsel %vm554_vm7, %v1194_v32, %v1196_v34  ;;  %v1198_v36 = vsel %vm554_vm7, %v1196_v34, %v1194_v32  ;;  %v2864_v32 = vld [vmem:[%s5396_s2 + $0x7] ss:$8 sm:$0x3] }
 0x4e0   :  { %v1205_v50 = vmul.f32 %v1201_v35, %v1198_v36  ;;  %v1206_v24 = vmul.f32 %v1202_v11, %v1197_v3  ;;  %v2863_v3 = vld [vmem:[%s5396_s2 + $0x6] ss:$8 sm:$0x3]  ;;  %v1515_v36 = vperm.slane %v2864_v32, 0 }
 0x4e2   :  { %1374 = vmatpush.msrb.mxu2 %v1205_v50  ;;  %1394 = vmatpush.msrb.mxu3 %v1206_v24  ;;  %v1516_v50 = vperm.slane %v2864_v32, 1 }
 0x4e3   :  { %2856 = vmatmul.msk.f32.vlgmr.msrb.gmra.mxu2 %vm729_vm8, %v1331_v52  ;;  %2857 = vmatmul.msk.f32.vlgmr.msrb.gmra.mxu3 %vm729_vm8, %v1331_v52  ;;  %v1499_v52 = vperm.slane %v2863_v3, 0 }
 0x519   :  { %v1354_v28 = vpop.permute.xlu2 %1353 }
 0x566   :  { %v1376_v48 = vpop.f32.mrf.mxu2  ;;  %v1396_v53 = vpop.f32.mrf.mxu3 }
 0x567   :  { %v1377_v33 = vadd.f32 %v1376_v48, %v1354_v28  ;;  %v1397_v25 = vadd.f32 %v1396_v53, %v1354_v28  ;;  %v1500_v28 = vperm.slane %v2863_v3, 1 }
 0x569   :  { %v4664_v37 = vmax.f32 %v1377_v33, 0.0  ;;  %v4666_v8 = vmax.f32 %v1397_v25, 0.0 }
 0x56b   :  { %1525 = vrot.lane.b32.xlu1 %v4666_v8, %s2908_s8  ;;  %1507 = vrot.lane.b32.xlu2 %v4664_v37, %s2907_s7 }
 0x56c   :  { %1523 = vrot.lane.b32.xlu0 %v4664_v37, %s2908_s8 }
 0x573   :  { %1491 = vrot.lane.b32.xlu1 %v4664_v37, %s2909_s9  ;;  %1493 = vrot.lane.b32.xlu2 %v4666_v8, %s2909_s9 }
 0x574   :  { %1509 = vrot.lane.b32.xlu0 %v4666_v8, %s2907_s7 }
 0x57b   :  { %1477 = vrot.lane.b32.xlu1 %v4666_v8, %s2910_s11  ;;  %1449 = vrot.lane.b32.xlu2 %v4664_v37, %s2911_s12 }
 0x57c   :  { %1475 = vrot.lane.b32.xlu0 %v4664_v37, %s2910_s11 }
 0x583   :  { %1433 = vrot.lane.b32.xlu1 %v4664_v37, %s2912_s0  ;;  %1435 = vrot.lane.b32.xlu2 %v4666_v8, %s2912_s0 }
 0x584   :  { %1451 = vrot.lane.b32.xlu0 %v4666_v8, %s2911_s12 }
 0x58b   :  { %1419 = vrot.lane.b32.xlu1 %v4666_v8, %s2913_s13  ;;  %1401 = vrot.lane.b32.xlu2 %v4664_v37, %s2914_s14 }
 0x58c   :  { %1417 = vrot.lane.b32.xlu0 %v4664_v37, %s2913_s13 }
 0x593   :  { %1561 = vperm.xlu1 %2902, %v1558_v19  }
 0x594   :  { %1403 = vrot.lane.b32.xlu0 %v4666_v8, %s2914_s14 }
 0x5c5   :  { %v1508_v49 = vpop.permute.xlu2 %1507 }
 0x5cd   :  { %v1494_v34 = vpop.permute.xlu2 %1493 }
 0x5dd   :  { %v1526_v17 = vpop.permute.xlu1 %1525 }
 0x5de   :  { %v1524_v23 = vpop.permute.xlu0 %1523 }
 0x5df   :  { %v1527_v54 = vsel %vm690_vm1, %v1524_v23, %v1526_v17  ;;  %v1528_v12 = vsel %vm690_vm1, %v1526_v17, %v1524_v23 }
 0x5e0   :  { %v1535_v35 = vmul.f32 %v1531_v6, %v1527_v54  ;;  %v1536_v11 = vmul.f32 %v1532_v29, %v1528_v12  ;;  %v2862_v29 = vld [vmem:[%s5396_s2 + $0x5] ss:$8 sm:$0x3]  ;;  %v2861_v54 = vld [vmem:[%s5396_s2 + $0x4] ss:$8 sm:$0x3]  ;;  %v1450_v12 = vpop.permute.xlu2 %1449 }
 0x5e1   :  { %v1468_v3 = vperm.slane %v2861_v54, 1 }
 0x5e2   :  { %1574 = vmatpush.msra.mxu0 %v1535_v35  ;;  %1594 = vmatpush.msra.mxu1 %v1536_v11  ;;  %v1483_v35 = vperm.slane %v2862_v29, 0  ;;  %v1484_v11 = vperm.slane %v2862_v29, 1 }
 0x5e5   :  { %v1492_v24 = vpop.permute.xlu1 %1491 }
 0x5e6   :  { %v1510_v48 = vpop.permute.xlu0 %1509  ;;  %v1495_v53 = vsel %vm654_vm2, %v1492_v24, %v1494_v34  ;;  %v1496_v33 = vsel %vm654_vm2, %v1494_v34, %v1492_v24  ;;  %v1467_v34 = vperm.slane %v2861_v54, 0 }
 0x5e7   :  { %v1511_v25 = vsel %vm672_vm0, %v1508_v49, %v1510_v48  ;;  %v1512_v19 = vsel %vm672_vm0, %v1510_v48, %v1508_v49  ;;  %v1503_v17 = vmul.f32 %v1499_v52, %v1495_v53  ;;  %v1504_v23 = vmul.f32 %v1500_v28, %v1496_v33  ;;  %v2860_v28 = vld [vmem:[%s5396_s2 + $0x3] ss:$8 sm:$0x3]  ;;  %v2859_v33 = vld [vmem:[%s5396_s2 + $0x2] ss:$8 sm:$0x3] }
 0x5e8   :  { %v1519_v51 = vmul.f32 %v1515_v36, %v1511_v25  ;;  %v1520_v6 = vmul.f32 %v1516_v50, %v1512_v19  ;;  %v1471_v48 = vmul.f32 %v1467_v34, %v4664_v37  ;;  %v1472_v53 = vmul.f32 %v1468_v3, %v4666_v8  ;;  %v2858_v3 = vld [vmem:[%s5396_s2 + $0x1] ss:$8 sm:$0x3] }
 0x5e9   :  { %v1457_v25 = vperm.slane %v2860_v28, 0  ;;  %v1458_v19 = vperm.slane %v2860_v28, 1  ;;  %v1441_v29 = vperm.slane %v2859_v33, 0 }
 0x5ea   :  { %1575 = vmatpush.msra.mxu0 %v1519_v51  ;;  %1595 = vmatpush.msra.mxu1 %v1520_v6  ;;  %v1436_v6 = vpop.permute.xlu2 %1435 }
 0x5ec   :  { %1576 = vmatpush.msra.mxu0 %v1503_v17  ;;  %1596 = vmatpush.msra.mxu1 %v1504_v23  ;;  %v1442_v17 = vperm.slane %v2859_v33, 1 }
 0x5ed   :  { %v1478_v49 = vpop.permute.xlu1 %1477 }
 0x5ee   :  { %v1476_v32 = vpop.permute.xlu0 %1475 }
 0x5ef   :  { %v1479_v36 = vsel %vm636_vm3, %v1476_v32, %v1478_v49  ;;  %v1480_v50 = vsel %vm636_vm3, %v1478_v49, %v1476_v32 }
 0x5f0   :  { %v1487_v24 = vmul.f32 %v1483_v35, %v1479_v36  ;;  %v1488_v52 = vmul.f32 %v1484_v11, %v1480_v50 }
 0x5f2   :  { %1577 = vmatpush.msra.mxu0 %v1487_v24  ;;  %1597 = vmatpush.msra.mxu1 %v1488_v52  ;;  %v1425_v24 = vperm.slane %v2858_v3, 0  ;;  %v1426_v52 = vperm.slane %v2858_v3, 1 }
 0x5f4   :  { %1578 = vmatpush.msra.mxu0 %v1471_v48  ;;  %1598 = vmatpush.msra.mxu1 %v1472_v53 }
 0x5f5   :  { %v1434_v51 = vpop.permute.xlu1 %1433 }
 0x5f6   :  { %v1452_v23 = vpop.permute.xlu0 %1451  ;;  %v1437_v54 = vsel %vm589_vm5, %v1434_v51, %v1436_v6  ;;  %v1438_v35 = vsel %vm589_vm5, %v1436_v6, %v1434_v51 }
 0x5f7   :  { %v1453_v11 = vsel %vm607_vm4, %v1450_v12, %v1452_v23  ;;  %v1454_v49 = vsel %vm607_vm4, %v1452_v23, %v1450_v12  ;;  %v1445_v36 = vmul.f32 %v1441_v29, %v1438_v35  ;;  %v1446_v50 = vmul.f32 %v1442_v17, %v1437_v54  ;;  %v1402_v29 = vpop.permute.xlu2 %1401 }
 0x5f8   :  { %v1461_v32 = vmul.f32 %v1457_v25, %v1454_v49  ;;  %v1462_v34 = vmul.f32 %v1458_v19, %v1453_v11  ;;  %v1407_v19 = vld [vmem:[%s5396_s2] ss:$8 sm:$0x3] }
 0x5f9   :  { %v1409_v51 = vperm.slane %v1407_v19, 0  ;;  %v1410_v6 = vperm.slane %v1407_v19, 1  ;;  %v1539_v49 = vld [vmem:[%s5397_s3 + $0x40] sm:$0xff] }
 0x5fa   :  { %1579 = vmatpush.msra.mxu0 %v1461_v32  ;;  %1599 = vmatpush.msra.mxu1 %v1462_v34 }
 0x5fc   :  { %1580 = vmatpush.msra.mxu0 %v1445_v36  ;;  %1600 = vmatpush.msra.mxu1 %v1446_v50 }
 0x5fd   :  { %v1420_v28 = vpop.permute.xlu1 %1419 }
 0x5fe   :  { %v1418_v48 = vpop.permute.xlu0 %1417 }
 0x5ff   :  { %v1421_v53 = vsel %vm571_vm6, %v1418_v48, %v1420_v28  ;;  %v1422_v12 = vsel %vm571_vm6, %v1420_v28, %v1418_v48  ;;  %v1766_v28 = vld [vmem:[%s5397_s3 + $0x58] sm:$0xff] }
 0x600   :  { %v1429_v33 = vmul.f32 %v1425_v24, %v1422_v12  ;;  %v1430_v25 = vmul.f32 %v1426_v52, %v1421_v53  ;;  %v2875_v12 = vld [vmem:[%s5396_s2 + $0x10] ss:$8 sm:$0x3] }
 0x601   :  { %v1740_v19 = vperm.slane %v2875_v12, 1 }
 0x602   :  { %1581 = vmatpush.msra.mxu0 %v1429_v33  ;;  %1601 = vmatpush.msra.mxu1 %v1430_v25  ;;  %v2874_v33 = vld [vmem:[%s5396_s2 + $0x7] ss:$8 sm:$0x3]  ;;  %v1739_v25 = vperm.slane %v2875_v12, 0 }
 0x605   :  { %v1562_v32 = vpop.permute.xlu1 %1561 }
 0x606   :  { %v1404_v17 = vpop.permute.xlu0 %1403 }
 0x607   :  { %v1405_v23 = vsel %vm554_vm7, %v1402_v29, %v1404_v17  ;;  %v1406_v54 = vsel %vm554_vm7, %v1404_v17, %v1402_v29  ;;  %v1724_v29 = vperm.slane %v2874_v33, 1 }
 0x608   :  { %v1413_v35 = vmul.f32 %v1409_v51, %v1406_v54  ;;  %v1414_v11 = vmul.f32 %v1410_v6, %v1405_v23  ;;  %v1723_v6 = vperm.slane %v2874_v33, 0 }
 0x60a   :  { %1582 = vmatpush.msra.mxu0 %v1413_v35  ;;  %1602 = vmatpush.msra.mxu1 %v1414_v11 }
 0x60b   :  { %2866 = vmatmul.msk.f32.vlgmr.msra.gmra.mxu0 %vm729_vm8, %v1539_v49  ;;  %2867 = vmatmul.msk.f32.vlgmr.msra.gmra.mxu1 %vm729_vm8, %v1539_v49 }
 0x688   :  { %v1584_v34 = vpop.f32.mrf.mxu0  ;;  %v1604_v3 = vpop.f32.mrf.mxu1 }
 0x689   :  { %v1585_v36 = vadd.f32 %v1584_v34, %v1562_v32  ;;  %v1605_v50 = vadd.f32 %v1604_v3, %v1562_v32  ;;  %v2873_v3 = vld [vmem:[%s5396_s2 + $0x6] ss:$8 sm:$0x3] }
 0x68b   :  { %v4769_v24 = vmax.f32 %v1585_v36, 0.0  ;;  %v4771_v52 = vmax.f32 %v1605_v50, 0.0 }
 0x68d   :  { %1733 = vrot.lane.b32.xlu0 %v4771_v52, %s2908_s8  ;;  %1715 = vrot.lane.b32.xlu1 %v4769_v24, %s2907_s7 }
 0x68e   :  { %1731 = vrot.lane.b32.xlu2 %v4769_v24, %s2908_s8 }
 0x695   :  { %1699 = vrot.lane.b32.xlu0 %v4769_v24, %s2909_s9  ;;  %1701 = vrot.lane.b32.xlu1 %v4771_v52, %s2909_s9 }
 0x696   :  { %1717 = vrot.lane.b32.xlu2 %v4771_v52, %s2907_s7 }
 0x69d   :  { %1685 = vrot.lane.b32.xlu0 %v4771_v52, %s2910_s11  ;;  %1657 = vrot.lane.b32.xlu1 %v4769_v24, %s2911_s12 }
 0x69e   :  { %1683 = vrot.lane.b32.xlu2 %v4769_v24, %s2910_s11 }
 0x6a5   :  { %1641 = vrot.lane.b32.xlu0 %v4769_v24, %s2912_s0  ;;  %1643 = vrot.lane.b32.xlu1 %v4771_v52, %s2912_s0 }
 0x6a6   :  { %1659 = vrot.lane.b32.xlu2 %v4771_v52, %s2911_s12 }
 0x6ad   :  { %1627 = vrot.lane.b32.xlu0 %v4771_v52, %s2913_s13  ;;  %1609 = vrot.lane.b32.xlu1 %v4769_v24, %s2914_s14 }
 0x6ae   :  { %1625 = vrot.lane.b32.xlu2 %v4769_v24, %s2913_s13 }
 0x6b5   :  { %1769 = vperm.xlu0 %2903, %v1766_v28   ;;  %v1707_v28 = vperm.slane %v2873_v3, 0 }
 0x6b6   :  { %1611 = vrot.lane.b32.xlu2 %v4771_v52, %s2914_s14 }
 0x6e8   :  { %v1732_v48 = vpop.permute.xlu2 %1731 }
 0x6f0   :  { %v1718_v53 = vpop.permute.xlu2 %1717 }
 0x6f8   :  { %v1684_v23 = vpop.permute.xlu2 %1683 }
 0x6ff   :  { %v1734_v51 = vpop.permute.xlu0 %1733  ;;  %v1716_v17 = vpop.permute.xlu1 %1715 }
 0x700   :  { %v1735_v54 = vsel %vm690_vm1, %v1732_v48, %v1734_v51  ;;  %v1736_v35 = vsel %vm690_vm1, %v1734_v51, %v1732_v48  ;;  %v1719_v11 = vsel %vm672_vm0, %v1716_v17, %v1718_v53  ;;  %v1720_v49 = vsel %vm672_vm0, %v1718_v53, %v1716_v17  ;;  %v1660_v17 = vpop.permute.xlu2 %1659 }
 0x701   :  { %v1743_v32 = vmul.f32 %v1739_v25, %v1735_v54  ;;  %v1744_v34 = vmul.f32 %v1740_v19, %v1736_v35  ;;  %v1727_v36 = vmul.f32 %v1723_v6, %v1719_v11  ;;  %v1728_v50 = vmul.f32 %v1724_v29, %v1720_v49  ;;  %v2872_v6 = vld [vmem:[%s5396_s2 + $0x5] ss:$8 sm:$0x3]  ;;  %v2871_v29 = vld [vmem:[%s5396_s2 + $0x4] ss:$8 sm:$0x3] }
 0x702   :  { %v1708_v48 = vperm.slane %v2873_v3, 1  ;;  %v1691_v54 = vperm.slane %v2872_v6, 0  ;;  %v1692_v35 = vperm.slane %v2872_v6, 1  ;;  %v2870_v11 = vld [vmem:[%s5396_s2 + $0x3] ss:$8 sm:$0x3] }
 0x703   :  { %1782 = vmatpush.msra.mxu2 %v1743_v32  ;;  %1802 = vmatpush.msra.mxu3 %v1744_v34  ;;  %v1675_v34 = vperm.slane %v2871_v29, 0  ;;  %v1676_v3 = vperm.slane %v2871_v29, 1 }
 0x705   :  { %1783 = vmatpush.msra.mxu2 %v1727_v36  ;;  %1803 = vmatpush.msra.mxu3 %v1728_v50 }
 0x707   :  { %v1700_v12 = vpop.permute.xlu0 %1699  ;;  %v1702_v33 = vpop.permute.xlu1 %1701 }
 0x708   :  { %v1703_v51 = vsel %vm654_vm2, %v1700_v12, %v1702_v33  ;;  %v1704_v53 = vsel %vm654_vm2, %v1702_v33, %v1700_v12  ;;  %v1665_v12 = vperm.slane %v2870_v11, 0  ;;  %v1666_v33 = vperm.slane %v2870_v11, 1  ;;  %v1626_v6 = vpop.permute.xlu2 %1625 }
 0x709   :  { %v1711_v25 = vmul.f32 %v1707_v28, %v1703_v51  ;;  %v1712_v19 = vmul.f32 %v1708_v48, %v1704_v53 }
 0x70b   :  { %1784 = vmatpush.msra.mxu2 %v1711_v25  ;;  %1804 = vmatpush.msra.mxu3 %v1712_v19  ;;  %v2869_v25 = vld [vmem:[%s5396_s2 + $0x2] ss:$8 sm:$0x3]  ;;  %v1679_v19 = vmul.f32 %v1675_v34, %v4769_v24 }
 0x70c   :  { %v1650_v11 = vperm.slane %v2869_v25, 1 }
 0x70f   :  { %v1686_v49 = vpop.permute.xlu0 %1685  ;;  %v1658_v32 = vpop.permute.xlu1 %1657 }
 0x710   :  { %v1687_v36 = vsel %vm636_vm3, %v1684_v23, %v1686_v49  ;;  %v1688_v50 = vsel %vm636_vm3, %v1686_v49, %v1684_v23  ;;  %v1661_v51 = vsel %vm607_vm4, %v1658_v32, %v1660_v17  ;;  %v1662_v53 = vsel %vm607_vm4, %v1660_v17, %v1658_v32 }
 0x711   :  { %v1695_v28 = vmul.f32 %v1691_v54, %v1687_v36  ;;  %v1696_v48 = vmul.f32 %v1692_v35, %v1688_v50  ;;  %v1680_v23 = vmul.f32 %v1676_v3, %v4771_v52  ;;  %v1669_v29 = vmul.f32 %v1665_v12, %v1662_v53  ;;  %v2868_v52 = vld [vmem:[%s5396_s2 + $0x1] ss:$8 sm:$0x3]  ;;  %v1615_v3 = vld [vmem:[%s5396_s2] ss:$8 sm:$0x3] }
 0x712   :  { %v1670_v54 = vmul.f32 %v1666_v33, %v1661_v51  ;;  %v1649_v35 = vperm.slane %v2869_v25, 0  ;;  %v1633_v50 = vperm.slane %v2868_v52, 0  ;;  %v1617_v33 = vperm.slane %v1615_v3, 0 }
 0x713   :  { %1785 = vmatpush.msra.mxu2 %v1695_v28  ;;  %1805 = vmatpush.msra.mxu3 %v1696_v48  ;;  %v1634_v28 = vperm.slane %v2868_v52, 1  ;;  %v1612_v48 = vpop.permute.xlu2 %1611  ;;  %v1618_v51 = vperm.slane %v1615_v3, 1 }
 0x715   :  { %1786 = vmatpush.msra.mxu2 %v1679_v19  ;;  %1806 = vmatpush.msra.mxu3 %v1680_v23 }
 0x717   :  { %v1642_v49 = vpop.permute.xlu0 %1641  ;;  %v1644_v36 = vpop.permute.xlu1 %1643  ;;  %1787 = vmatpush.msra.mxu2 %v1669_v29  ;;  %1807 = vmatpush.msra.mxu3 %v1670_v54 }
 0x718   :  { %v1645_v17 = vsel %vm589_vm5, %v1642_v49, %v1644_v36  ;;  %v1646_v32 = vsel %vm589_vm5, %v1644_v36, %v1642_v49  ;;  %v1747_v36 = vld [vmem:[%s5397_s3 + $0x50] sm:$0xff] }
 0x719   :  { %v1653_v24 = vmul.f32 %v1649_v35, %v1646_v32  ;;  %v1654_v34 = vmul.f32 %v1650_v11, %v1645_v17 }
 0x71b   :  { %1788 = vmatpush.msra.mxu2 %v1653_v24  ;;  %1808 = vmatpush.msra.mxu3 %v1654_v34 }
 0x71f   :  { %v1628_v12 = vpop.permute.xlu0 %1627  ;;  %v1610_v53 = vpop.permute.xlu1 %1609 }
 0x720   :  { %v1629_v25 = vsel %vm571_vm6, %v1626_v6, %v1628_v12  ;;  %v1630_v19 = vsel %vm571_vm6, %v1628_v12, %v1626_v6  ;;  %v1613_v23 = vsel %vm554_vm7, %v1610_v53, %v1612_v48  ;;  %v1614_v29 = vsel %vm554_vm7, %v1612_v48, %v1610_v53  ;;  %v2885_v48 = vld [vmem:[%s5396_s2 + $0x10] ss:$8 sm:$0x3] }
 0x721   :  { %v1637_v54 = vmul.f32 %v1633_v50, %v1630_v19  ;;  %v1638_v35 = vmul.f32 %v1634_v28, %v1629_v25  ;;  %v1621_v11 = vmul.f32 %v1617_v33, %v1614_v29  ;;  %v1622_v49 = vmul.f32 %v1618_v51, %v1613_v23  ;;  %v1974_v50 = vld [vmem:[%s5397_s3 + $0x68] sm:$0xff] }
 0x722   :  { %v1947_v12 = vperm.slane %v2885_v48, 0  ;;  %v1948_v33 = vperm.slane %v2885_v48, 1 }
 0x723   :  { %1789 = vmatpush.msra.mxu2 %v1637_v54  ;;  %1809 = vmatpush.msra.mxu3 %v1638_v35  ;;  %v2884_v35 = vld [vmem:[%s5396_s2 + $0x7] ss:$8 sm:$0x3] }
 0x725   :  { %1790 = vmatpush.msra.mxu2 %v1621_v11  ;;  %1810 = vmatpush.msra.mxu3 %v1622_v49  ;;  %v2883_v11 = vld [vmem:[%s5396_s2 + $0x6] ss:$8 sm:$0x3]  ;;  %v1931_v49 = vperm.slane %v2884_v35, 0 }
 0x726   :  { %2876 = vmatmul.msk.f32.vlgmr.msra.gmra.mxu2 %vm729_vm8, %v1747_v36  ;;  %2877 = vmatmul.msk.f32.vlgmr.msra.gmra.mxu3 %vm729_vm8, %v1747_v36  ;;  %v1932_v36 = vperm.slane %v2884_v35, 1 }
 0x727   :  { %v1770_v6 = vpop.permute.xlu0 %1769  ;;  %2100 = vmatpush.msrb.mxu2 %v3184_v47 }
 0x7a9   :  { %v1792_v17 = vpop.f32.mrf.mxu2  ;;  %v1812_v32 = vpop.f32.mrf.mxu3 }
 0x7aa   :  { %v1793_v24 = vadd.f32 %v1792_v17, %v1770_v6  ;;  %v1813_v34 = vadd.f32 %v1812_v32, %v1770_v6  ;;  %v1915_v17 = vperm.slane %v2883_v11, 0  ;;  %v1916_v32 = vperm.slane %v2883_v11, 1 }
 0x7ac   :  { %v4874_v52 = vmax.f32 %v1793_v24, 0.0  ;;  %v4876_v3 = vmax.f32 %v1813_v34, 0.0 }
 0x7ae   :  { %1941 = vrot.lane.b32.xlu2 %v4876_v3, %s2908_s8  ;;  %1923 = vrot.lane.b32.xlu0 %v4874_v52, %s2907_s7 }
 0x7af   :  { %1939 = vrot.lane.b32.xlu1 %v4874_v52, %s2908_s8 }
 0x7b6   :  { %1907 = vrot.lane.b32.xlu2 %v4874_v52, %s2909_s9  ;;  %1909 = vrot.lane.b32.xlu0 %v4876_v3, %s2909_s9 }
 0x7b7   :  { %1925 = vrot.lane.b32.xlu1 %v4876_v3, %s2907_s7 }
 0x7be   :  { %1893 = vrot.lane.b32.xlu2 %v4876_v3, %s2910_s11  ;;  %1865 = vrot.lane.b32.xlu0 %v4874_v52, %s2911_s12 }
 0x7bf   :  { %1891 = vrot.lane.b32.xlu1 %v4874_v52, %s2910_s11 }
 0x7c6   :  { %1849 = vrot.lane.b32.xlu2 %v4874_v52, %s2912_s0  ;;  %1851 = vrot.lane.b32.xlu0 %v4876_v3, %s2912_s0 }
 0x7c7   :  { %1867 = vrot.lane.b32.xlu1 %v4876_v3, %s2911_s12 }
 0x7ce   :  { %1835 = vrot.lane.b32.xlu2 %v4876_v3, %s2913_s13  ;;  %1817 = vrot.lane.b32.xlu0 %v4874_v52, %s2914_s14 }
 0x7cf   :  { %1833 = vrot.lane.b32.xlu1 %v4874_v52, %s2913_s13 }
 0x7d6   :  { %1977 = vperm.xlu2 %2904, %v1974_v50  }
 0x7d7   :  { %1819 = vrot.lane.b32.xlu1 %v4876_v3, %s2914_s14 }
 0x808   :  { %v1942_v28 = vpop.permute.xlu2 %1941 }
 0x810   :  { %v1908_v23 = vpop.permute.xlu2 %1907 }
 0x820   :  { %v1924_v51 = vpop.permute.xlu0 %1923 }
 0x821   :  { %v1940_v53 = vpop.permute.xlu1 %1939 }
 0x822   :  { %v1943_v25 = vsel %vm690_vm1, %v1940_v53, %v1942_v28  ;;  %v1944_v19 = vsel %vm690_vm1, %v1942_v28, %v1940_v53  ;;  %v2882_v53 = vld [vmem:[%s5396_s2 + $0x5] ss:$8 sm:$0x3] }
 0x823   :  { %v1951_v29 = vmul.f32 %v1947_v12, %v1943_v25  ;;  %v1952_v54 = vmul.f32 %v1948_v33, %v1944_v19  ;;  %v1894_v25 = vpop.permute.xlu2 %1893  ;;  %v1900_v35 = vperm.slane %v2882_v53, 1 }
 0x825   :  { %1990 = vmatpush.msrb.mxu0 %v1951_v29  ;;  %2010 = vmatpush.msrb.mxu1 %v1952_v54  ;;  %v1899_v54 = vperm.slane %v2882_v53, 0 }
 0x828   :  { %v1910_v6 = vpop.permute.xlu0 %1909 }
 0x829   :  { %v1926_v24 = vpop.permute.xlu1 %1925  ;;  %v1911_v34 = vsel %vm654_vm2, %v1908_v23, %v1910_v6  ;;  %v1912_v50 = vsel %vm654_vm2, %v1910_v6, %v1908_v23  ;;  %v2881_v23 = vld [vmem:[%s5396_s2 + $0x4] ss:$8 sm:$0x3] }
 0x82a   :  { %v1927_v28 = vsel %vm672_vm0, %v1924_v51, %v1926_v24  ;;  %v1928_v48 = vsel %vm672_vm0, %v1926_v24, %v1924_v51  ;;  %v1919_v19 = vmul.f32 %v1915_v17, %v1911_v34  ;;  %v1920_v29 = vmul.f32 %v1916_v32, %v1912_v50  ;;  %v2880_v34 = vld [vmem:[%s5396_s2 + $0x3] ss:$8 sm:$0x3] }
 0x82b   :  { %v1935_v12 = vmul.f32 %v1931_v49, %v1927_v28  ;;  %v1936_v33 = vmul.f32 %v1932_v36, %v1928_v48  ;;  %v1883_v49 = vperm.slane %v2881_v23, 0  ;;  %v1884_v36 = vperm.slane %v2881_v23, 1  ;;  %v2879_v48 = vld [vmem:[%s5396_s2 + $0x2] ss:$8 sm:$0x3] }
 0x82c   :  { %v1874_v53 = vperm.slane %v2880_v34, 1 }
 0x82d   :  { %1991 = vmatpush.msrb.mxu0 %v1935_v12  ;;  %2011 = vmatpush.msrb.mxu1 %v1936_v33  ;;  %v1887_v50 = vmul.f32 %v1883_v49, %v4874_v52  ;;  %v1888_v28 = vmul.f32 %v1884_v36, %v4876_v3  ;;  %v1850_v12 = vpop.permute.xlu2 %1849  ;;  %v1873_v33 = vperm.slane %v2880_v34, 0  ;;  %v2878_v36 = vld [vmem:[%s5396_s2 + $0x1] ss:$8 sm:$0x3] }
 0x82f   :  { %1992 = vmatpush.msrb.mxu0 %v1919_v19  ;;  %2012 = vmatpush.msrb.mxu1 %v1920_v29  ;;  %v1857_v19 = vperm.slane %v2879_v48, 0  ;;  %v1858_v29 = vperm.slane %v2879_v48, 1 }
 0x830   :  { %v1866_v51 = vpop.permute.xlu0 %1865 }
 0x831   :  { %v1892_v11 = vpop.permute.xlu1 %1891 }
 0x832   :  { %v1895_v6 = vsel %vm636_vm3, %v1892_v11, %v1894_v25  ;;  %v1896_v17 = vsel %vm636_vm3, %v1894_v25, %v1892_v11 }
 0x833   :  { %v1903_v32 = vmul.f32 %v1899_v54, %v1895_v6  ;;  %v1904_v24 = vmul.f32 %v1900_v35, %v1896_v17 }
 0x835   :  { %1993 = vmatpush.msrb.mxu0 %v1903_v32  ;;  %2013 = vmatpush.msrb.mxu1 %v1904_v24  ;;  %v1841_v32 = vperm.slane %v2878_v36, 0  ;;  %v1842_v24 = vperm.slane %v2878_v36, 1  ;;  %v1836_v34 = vpop.permute.xlu2 %1835 }
 0x837   :  { %1994 = vmatpush.msrb.mxu0 %v1887_v50  ;;  %2014 = vmatpush.msrb.mxu1 %v1888_v28 }
 0x838   :  { %v1852_v25 = vpop.permute.xlu0 %1851 }
 0x839   :  { %v1868_v23 = vpop.permute.xlu1 %1867  ;;  %v1853_v54 = vsel %vm589_vm5, %v1850_v12, %v1852_v25  ;;  %v1854_v52 = vsel %vm589_vm5, %v1852_v25, %v1850_v12 }
 0x83a   :  { %v1869_v3 = vsel %vm607_vm4, %v1866_v51, %v1868_v23  ;;  %v1870_v35 = vsel %vm607_vm4, %v1868_v23, %v1866_v51  ;;  %v1861_v6 = vmul.f32 %v1857_v19, %v1854_v52  ;;  %v1862_v17 = vmul.f32 %v1858_v29, %v1853_v54 }
 0x83b   :  { %v1877_v11 = vmul.f32 %v1873_v33, %v1870_v35  ;;  %v1878_v49 = vmul.f32 %v1874_v53, %v1869_v3  ;;  %v1823_v33 = vld [vmem:[%s5396_s2] ss:$8 sm:$0x3] }
 0x83c   :  { %v1825_v53 = vperm.slane %v1823_v33, 0  ;;  %v1826_v25 = vperm.slane %v1823_v33, 1  ;;  %v1955_v35 = vld [vmem:[%s5397_s3 + $0x60] sm:$0xff] }
 0x83d   :  { %1995 = vmatpush.msrb.mxu0 %v1877_v11  ;;  %2015 = vmatpush.msrb.mxu1 %v1878_v49  ;;  %v1978_v11 = vpop.permute.xlu2 %1977 }
 0x83f   :  { %1996 = vmatpush.msrb.mxu0 %v1861_v6  ;;  %2016 = vmatpush.msrb.mxu1 %v1862_v17 }
 0x840   :  { %v1818_v19 = vpop.permute.xlu0 %1817 }
 0x841   :  { %v1834_v50 = vpop.permute.xlu1 %1833 }
 0x842   :  { %v1837_v28 = vsel %vm571_vm6, %v1834_v50, %v1836_v34  ;;  %v1838_v51 = vsel %vm571_vm6, %v1836_v34, %v1834_v50 }
 0x843   :  { %v1845_v48 = vmul.f32 %v1841_v32, %v1838_v51  ;;  %v1846_v12 = vmul.f32 %v1842_v24, %v1837_v28 }
 0x845   :  { %1997 = vmatpush.msrb.mxu0 %v1845_v48  ;;  %2017 = vmatpush.msrb.mxu1 %v1846_v12 }
 0x849   :  { %v1820_v29 = vpop.permute.xlu1 %1819 }
 0x84a   :  { %v1821_v23 = vsel %vm554_vm7, %v1818_v19, %v1820_v29  ;;  %v1822_v54 = vsel %vm554_vm7, %v1820_v29, %v1818_v19 }
 0x84b   :  { %v1829_v52 = vmul.f32 %v1825_v53, %v1822_v54  ;;  %v1830_v3 = vmul.f32 %v1826_v25, %v1821_v23 }
 0x84d   :  { %1998 = vmatpush.msrb.mxu0 %v1829_v52  ;;  %2018 = vmatpush.msrb.mxu1 %v1830_v3 }
 0x84e   :  { %2886 = vmatmul.msk.f32.vlgmr.msrb.gmra.mxu0 %vm729_vm8, %v1955_v35  ;;  %2887 = vmatmul.msk.f32.vlgmr.msrb.gmra.mxu1 %vm729_vm8, %v1955_v35 }
 0x84f   :  { %2208 = vmatpush.msra.mxu0 %v3504_v20 }
 0x8cb   :  { %v2000_v49 = vpop.f32.mrf.mxu0  ;;  %v2020_v36 = vpop.f32.mrf.mxu1 }
 0x8cc   :  { %v2001_v6 = vadd.f32 %v2000_v49, %v1978_v11  ;;  %v2021_v17 = vadd.f32 %v2020_v36, %v1978_v11 }
 0x8ce   :  { %v2023_v7 = vadd.f32 %v2001_v6, %v4664_v37  ;;  %v2024_v32 = vadd.f32 %v2021_v17, %v4666_v8 }
 0x8d0   :  { %v4981_v24 = vmax.f32 %v2023_v7, 0.0  ;;  %v4983_v34 = vmax.f32 %v2024_v32, 0.0 }
 0x8d1   :  { %2905 = dma.done.wait [#allocation4], 32768 }
 0x8d2   :  { %2906 = vsyncadd [#allocation4], 4294934528  ;;  %2120 = vmatpush.msrb.mxu3 %v3264_v63  ;;  %2228 = vmatpush.msra.mxu1 %v3584_v15  ;;  %v5627_v15 = vld [vmem:[#allocation94_spill] sm:$0xff]  ;;  %v5630_v20 = vld [vmem:[#allocation48_spill] sm:$0xff]  ;;  %vm2651_vm9 = vcmask 523264   ;;  %vm2682_vm10 = vcmask 261120  }
 0x8d3   :  { %2101 = vmatpush.msrb.mxu2 %v3179_v46  ;;  %2209 = vmatpush.msra.mxu0 %v3499_v5  ;;  %v5620_v5 = vld [vmem:[#allocation44_spill] sm:$0xff]  ;;  %v5645_v46 = vld [vmem:[#allocation90_spill] sm:$0xff]  ;;  %v5646_v47 = vld [vmem:[#allocation143_spill] sm:$0xff]  ;;  %vm2706_vm11 = vcmask 130048  }
 0x8d4   :  { %2121 = vmatpush.msrb.mxu3 %v3259_v62  ;;  %2229 = vmatpush.msra.mxu1 %v3579_v4  ;;  %v5619_v4 = vld [vmem:[#allocation96_spill] sm:$0xff]  ;;  %v5654_v62 = vld [vmem:[#allocation141_spill] sm:$0xff]  ;;  %v5655_v63 = vld [vmem:[#allocation158_spill] sm:$0xff] }
 0x8d5   :  { %2102 = vmatpush.msrb.mxu2 %v3174_v45  ;;  %2210 = vmatpush.msra.mxu0 %v3494_v10  ;;  %v5622_v10 = vld [vmem:[#allocation50_spill] sm:$0xff]  ;;  %v5644_v45 = vld [vmem:[#allocation45_spill] sm:$0xff]  ;;  %v5658_v50 = vld [vmem:[#allocation140_spill] sm:$0xff] }
 0x8d6   :  { %2122 = vmatpush.msrb.mxu3 %v3254_v61  ;;  %2230 = vmatpush.msra.mxu1 %v3574_v14  ;;  %v5625_v14 = vld [vmem:[#allocation88_spill] sm:$0xff]  ;;  %v5653_v61 = vld [vmem:[#allocation223_spill] sm:$0xff]  ;;  %v5656_v37 = vld [vmem:[#allocation205_spill] sm:$0xff] }
 0x8d7   :  { %2103 = vmatpush.msrb.mxu2 %v3169_v44  ;;  %2211 = vmatpush.msra.mxu0 %v3489_v27  ;;  %v5634_v27 = vld [vmem:[#allocation47_spill] sm:$0xff]  ;;  %v5643_v44 = vld [vmem:[#allocation208_spill] sm:$0xff]  ;;  %v5657_v8 = vld [vmem:[#allocation222_spill] sm:$0xff] }
 0x8d8   :  { %2123 = vmatpush.msrb.mxu3 %v3249_v60  ;;  %2231 = vmatpush.msra.mxu1 %v3569_v31  ;;  %v5636_v31 = vld [vmem:[#allocation40_spill] sm:$0xff]  ;;  %v5652_v60 = vld [vmem:[#allocation206_spill] sm:$0xff]  ;;  %v5659_v28 = vld [vmem:[#allocation157_spill] sm:$0xff] }
 0x8d9   :  { %2104 = vmatpush.msrb.mxu2 %v3164_v43  ;;  %2212 = vmatpush.msra.mxu0 %v3484_v18  ;;  %v5629_v18 = vld [vmem:[#allocation87_spill] sm:$0xff]  ;;  %v5642_v43 = vld [vmem:[#allocation144_spill] sm:$0xff]  ;;  %v5661_v48 = vld [vmem:[#allocation221_spill] sm:$0xff] }
 0x8da   :  { %2124 = vmatpush.msrb.mxu3 %v3244_v59  ;;  %2232 = vmatpush.msra.mxu1 %v3564_v21  ;;  %v5631_v21 = vld [vmem:[#allocation93_spill] sm:$0xff]  ;;  %v5651_v59 = vld [vmem:[#allocation159_spill] sm:$0xff]  ;;  %v5660_v51 = vld [vmem:[#allocation204_spill] sm:$0xff] }
 0x8db   :  { %2105 = vmatpush.msrb.mxu2 %v3159_v42  ;;  %2213 = vmatpush.msra.mxu0 %v3479_v22  ;;  %v5632_v22 = vld [vmem:[#allocation41_spill] sm:$0xff]  ;;  %v5641_v42 = vld [vmem:[#allocation84_spill] sm:$0xff]  ;;  %v5662_v12 = vld [vmem:[#allocation139_spill] sm:$0xff] }
 0x8dc   :  { %2125 = vmatpush.msrb.mxu3 %v3239_v58  ;;  %2233 = vmatpush.msra.mxu1 %v3559_v0  ;;  %v5618_v0 = vld [vmem:[#allocation51_spill] sm:$0xff]  ;;  %v5650_v58 = vld [vmem:[#allocation142_spill] sm:$0xff]  ;;  %v5663_v33 = vld [vmem:[#allocation156_spill] sm:$0xff] }
 0x8dd   :  { %2106 = vmatpush.msrb.mxu2 %v3154_v41  ;;  %2214 = vmatpush.msra.mxu0 %v3474_v9  ;;  %v5621_v9 = vld [vmem:[#allocation89_spill] sm:$0xff]  ;;  %v5640_v41 = vld [vmem:[#allocation39_spill] sm:$0xff]  ;;  %v5665_v25 = vld [vmem:[#allocation220_spill] sm:$0xff] }
 0x8de   :  { %2126 = vmatpush.msrb.mxu3 %v3234_v57  ;;  %2234 = vmatpush.msra.mxu1 %v3554_v13  ;;  %v5623_v13 = vld [vmem:[#allocation95_spill] sm:$0xff]  ;;  %v5649_v57 = vld [vmem:[#allocation224_spill] sm:$0xff]  ;;  %v5666_v19 = vld [vmem:[#allocation138_spill] sm:$0xff] }
 0x8df   :  { %2107 = vmatpush.msrb.mxu2 %v3149_v40  ;;  %2215 = vmatpush.msra.mxu0 %v3469_v26  ;;  %v5633_v26 = vld [vmem:[#allocation86_spill] sm:$0xff]  ;;  %v5639_v40 = vld [vmem:[#allocation91_spill] sm:$0xff]  ;;  %v5670_v52 = vld [vmem:[#allocation137_spill] sm:$0xff] }
 0x8e0   :  { %2127 = vmatpush.msrb.mxu3 %v3229_v56  ;;  %2235 = vmatpush.msra.mxu1 %v3549_v30  ;;  %v5635_v30 = vld [vmem:[#allocation92_spill] sm:$0xff]  ;;  %v5648_v56 = vld [vmem:[#allocation207_spill] sm:$0xff]  ;;  %v5668_v23 = vld [vmem:[#allocation202_spill] sm:$0xff] }
 0x8e1   :  { %2108 = vmatpush.msrb.mxu2 %v3144_v39  ;;  %2216 = vmatpush.msra.mxu0 %v3464_v2  ;;  %v5624_v2 = vld [vmem:[#allocation43_spill] sm:$0xff]  ;;  %v5638_v39 = vld [vmem:[#allocation46_spill] sm:$0xff]  ;;  %v5672_v35 = vld [vmem:[#allocation201_spill] sm:$0xff] }
 0x8e2   :  { %2128 = vmatpush.msrb.mxu3 %v3224_v55  ;;  %2236 = vmatpush.msra.mxu1 %v3544_v1  ;;  %v5626_v1 = vld [vmem:[#allocation49_spill] sm:$0xff]  ;;  %v5647_v55 = vld [vmem:[#allocation160_spill] sm:$0xff]  ;;  %v5664_v53 = vld [vmem:[#allocation203_spill] sm:$0xff] }
 0x8e3   :  { %2109 = vmatpush.msrb.mxu2 %v3139_v38  ;;  %2217 = vmatpush.msra.mxu0 %v3459_v16  ;;  %v5628_v16 = vld [vmem:[#allocation42_spill] sm:$0xff]  ;;  %v5637_v38 = vld [vmem:[#allocation85_spill] sm:$0xff]  ;;  %v5667_v29 = vld [vmem:[#allocation155_spill] sm:$0xff] }
 0x8e4   :  { %2129 = vmatpush.msrb.mxu3 %v5618_v0  ;;  %2237 = vmatpush.msra.mxu1 %v5619_v4  ;;  %v5669_v54 = vld [vmem:[#allocation219_spill] sm:$0xff]  ;;  %v5671_v3 = vld [vmem:[#allocation154_spill] sm:$0xff]  ;;  %v5674_v49 = vld [vmem:[#allocation136_spill] sm:$0xff] }
 0x8e5   :  { %2110 = vmatpush.msrb.mxu2 %v5620_v5  ;;  %2218 = vmatpush.msra.mxu0 %v5621_v9  ;;  %v5673_v11 = vld [vmem:[#allocation218_spill] sm:$0xff]  ;;  %v5675_v36 = vld [vmem:[#allocation153_spill] sm:$0xff]  ;;  %v5676_v6 = vld [vmem:[#allocation200_spill] sm:$0xff] }
 0x8e6   :  { %2130 = vmatpush.msrb.mxu3 %v5622_v10  ;;  %2238 = vmatpush.msra.mxu1 %v5623_v13  ;;  %v5677_v17 = vld [vmem:[#allocation217_spill] sm:$0xff]  ;;  %v5678_v7 = vld [vmem:[#allocation135_spill] sm:$0xff]  ;;  %v5679_v32 = vld [vmem:[#allocation152_spill] sm:$0xff] }
 0x8e7   :  { %2111 = vmatpush.msrb.mxu2 %v5624_v2  ;;  %2219 = vmatpush.msra.mxu0 %v5625_v14  ;;  %v5680_v0 = vld [vmem:[#allocation199_spill] sm:$0xff]  ;;  %v5681_v4 = vld [vmem:[#allocation216_spill] sm:$0xff]  ;;  %v5682_v5 = vld [vmem:[#allocation134_spill] sm:$0xff] }
 0x8e8   :  { %2131 = vmatpush.msrb.mxu3 %v5626_v1  ;;  %2239 = vmatpush.msra.mxu1 %v5627_v15  ;;  %v5683_v9 = vld [vmem:[#allocation151_spill] sm:$0xff]  ;;  %v5684_v10 = vld [vmem:[#allocation198_spill] sm:$0xff]  ;;  %v5686_v2 = vld [vmem:[#allocation133_spill] sm:$0xff] }
 0x8e9   :  { %2112 = vmatpush.msrb.mxu2 %v5628_v16  ;;  %2220 = vmatpush.msra.mxu0 %v5629_v18  ;;  %v5685_v13 = vld [vmem:[#allocation215_spill] sm:$0xff]  ;;  %v5687_v14 = vld [vmem:[#allocation150_spill] sm:$0xff]  ;;  %v5688_v1 = vld [vmem:[#allocation197_spill] sm:$0xff] }
 0x8ea   :  { %2132 = vmatpush.msrb.mxu3 %v5630_v20  ;;  %2240 = vmatpush.msra.mxu1 %v5631_v21  ;;  %v5689_v15 = vld [vmem:[#allocation214_spill] sm:$0xff]  ;;  %v5690_v16 = vld [vmem:[#allocation132_spill] sm:$0xff]  ;;  %v5691_v18 = vld [vmem:[#allocation149_spill] sm:$0xff] }
 0x8eb   :  { %2113 = vmatpush.msrb.mxu2 %v5632_v22  ;;  %2221 = vmatpush.msra.mxu0 %v5633_v26  ;;  %v5692_v20 = vld [vmem:[#allocation196_spill] sm:$0xff]  ;;  %v5693_v21 = vld [vmem:[#allocation213_spill] sm:$0xff]  ;;  %v5694_v22 = vld [vmem:[#allocation131_spill] sm:$0xff] }
 0x8ec   :  { %2133 = vmatpush.msrb.mxu3 %v5634_v27  ;;  %2241 = vmatpush.msra.mxu1 %v5635_v30  ;;  %v5695_v26 = vld [vmem:[#allocation148_spill] sm:$0xff]  ;;  %v5696_v27 = vld [vmem:[#allocation195_spill] sm:$0xff] }
 0x8ed   :  { %2114 = vmatpush.msrb.mxu2 %v5636_v31  ;;  %2222 = vmatpush.msra.mxu0 %v5637_v38  ;;  %v5697_v30 = vld [vmem:[#allocation212_spill] sm:$0xff]  ;;  %v5698_v31 = vld [vmem:[#allocation130_spill] sm:$0xff]  ;;  %v5699_v38 = vld [vmem:[#allocation147_spill] sm:$0xff] }
 0x8ee   :  { %2134 = vmatpush.msrb.mxu3 %v5638_v39  ;;  %2242 = vmatpush.msra.mxu1 %v5639_v40  ;;  %v2096_v39 = vrot.slane %v4981_v24, 1  ;;  %v2097_v40 = vrot.slane %v4983_v34, 1 }
 0x8ef   :  { %2115 = vmatpush.msrb.mxu2 %v5640_v41  ;;  %2223 = vmatpush.msra.mxu0 %v5641_v42  ;;  %v5700_v41 = vld [vmem:[#allocation194_spill] sm:$0xff]  ;;  %v5701_v42 = vld [vmem:[#allocation211_spill] sm:$0xff] }
 0x8f0   :  { %2135 = vmatpush.msrb.mxu3 %v5644_v45  ;;  %2243 = vmatpush.msra.mxu1 %v5645_v46  ;;  %v5703_v45 = vld [vmem:[#allocation146_spill] sm:$0xff]  ;;  %v5704_v46 = vld [vmem:[#allocation193_spill] sm:$0xff] }
 0x8f1   :  { %2316 = vmatpush.msra.mxu2 %v5642_v43  ;;  %2424 = vmatpush.msrb.mxu0 %v5643_v44  ;;  %v2204_v43 = vrot.slane %v4981_v24, 3  ;;  %v5702_v44 = vld [vmem:[#allocation129_spill] sm:$0xff] }
 0x8f2   :  { %2336 = vmatpush.msra.mxu3 %v5647_v55  ;;  %2444 = vmatpush.msrb.mxu1 %v5649_v57  ;;  %v2205_v55 = vrot.slane %v4983_v34, 3  ;;  %v5707_v57 = vld [vmem:[#allocation67_spill] sm:$0xff] }
 0x8f3   :  { %2317 = vmatpush.msra.mxu2 %v5646_v47  ;;  %2425 = vmatpush.msrb.mxu0 %v5648_v56  ;;  %v5705_v47 = vld [vmem:[#allocation210_spill] sm:$0xff] }
 0x8f4   :  { %2337 = vmatpush.msra.mxu3 %v5651_v59  ;;  %2445 = vmatpush.msrb.mxu1 %v5653_v61  ;;  %v5706_v56 = vld [vmem:[#allocation22_spill] sm:$0xff]  ;;  %v5709_v59 = vld [vmem:[#allocation209_spill] sm:$0xff] }
 0x8f5   :  { %2318 = vmatpush.msra.mxu2 %v5650_v58  ;;  %2426 = vmatpush.msrb.mxu0 %v5652_v60  ;;  %v5708_v58 = vld [vmem:[#allocation145_spill] sm:$0xff]  ;;  %v5711_v61 = vld [vmem:[#allocation38_spill] sm:$0xff] }
 0x8f6   :  { %2338 = vmatpush.msra.mxu3 %v5655_v63  ;;  %2446 = vmatpush.msrb.mxu1 %v5657_v8  ;;  %v5710_v60 = vld [vmem:[#allocation21_spill] sm:$0xff]  ;;  %v5713_v63 = vld [vmem:[#allocation83_spill] sm:$0xff] }
 0x8f7   :  { %2319 = vmatpush.msra.mxu2 %v5654_v62  ;;  %2427 = vmatpush.msrb.mxu0 %v5656_v37  ;;  %v5712_v62 = vld [vmem:[#allocation66_spill] sm:$0xff]  ;;  %v5714_v37 = vld [vmem:[#allocation20_spill] sm:$0xff]  ;;  %v5715_v8 = vld [vmem:[#allocation37_spill] sm:$0xff] }
 0x8f8   :  { %2339 = vmatpush.msra.mxu3 %v5659_v28  ;;  %2447 = vmatpush.msrb.mxu1 %v5661_v48  ;;  %v5717_v28 = vld [vmem:[#allocation82_spill] sm:$0xff]  ;;  %v5719_v48 = vld [vmem:[#allocation36_spill] sm:$0xff] }
 0x8f9   :  { %2320 = vmatpush.msra.mxu2 %v5658_v50  ;;  %2428 = vmatpush.msrb.mxu0 %v5660_v51  ;;  %v5716_v50 = vld [vmem:[#allocation65_spill] sm:$0xff]  ;;  %v5718_v51 = vld [vmem:[#allocation19_spill] sm:$0xff] }
 0x8fa   :  { %2340 = vmatpush.msra.mxu3 %v5663_v33  ;;  %2448 = vmatpush.msrb.mxu1 %v5665_v25  ;;  %v5721_v33 = vld [vmem:[#allocation81_spill] sm:$0xff]  ;;  %v5723_v25 = vld [vmem:[#allocation35_spill] sm:$0xff] }
 0x8fb   :  { %2321 = vmatpush.msra.mxu2 %v5662_v12  ;;  %2429 = vmatpush.msrb.mxu0 %v5664_v53  ;;  %v5720_v12 = vld [vmem:[#allocation64_spill] sm:$0xff]  ;;  %v5722_v53 = vld [vmem:[#allocation18_spill] sm:$0xff] }
 0x8fc   :  { %2341 = vmatpush.msra.mxu3 %v5667_v29  ;;  %2449 = vmatpush.msrb.mxu1 %v5669_v54  ;;  %v5725_v29 = vld [vmem:[#allocation80_spill] sm:$0xff]  ;;  %v5727_v54 = vld [vmem:[#allocation34_spill] sm:$0xff] }
 0x8fd   :  { %2322 = vmatpush.msra.mxu2 %v5666_v19  ;;  %2430 = vmatpush.msrb.mxu0 %v5668_v23  ;;  %v5724_v19 = vld [vmem:[#allocation63_spill] sm:$0xff]  ;;  %v5726_v23 = vld [vmem:[#allocation17_spill] sm:$0xff] }
 0x8fe   :  { %2342 = vmatpush.msra.mxu3 %v5671_v3  ;;  %2450 = vmatpush.msrb.mxu1 %v5673_v11  ;;  %v5729_v3 = vld [vmem:[#allocation79_spill] sm:$0xff]  ;;  %v5731_v11 = vld [vmem:[#allocation33_spill] sm:$0xff] }
 0x8ff   :  { %2323 = vmatpush.msra.mxu2 %v5670_v52  ;;  %2431 = vmatpush.msrb.mxu0 %v5672_v35  ;;  %v5728_v52 = vld [vmem:[#allocation62_spill] sm:$0xff]  ;;  %v5730_v35 = vld [vmem:[#allocation16_spill] sm:$0xff] }
 0x900   :  { %2343 = vmatpush.msra.mxu3 %v5675_v36  ;;  %2451 = vmatpush.msrb.mxu1 %v5677_v17  ;;  %v5733_v36 = vld [vmem:[#allocation78_spill] sm:$0xff]  ;;  %v5735_v17 = vld [vmem:[#allocation32_spill] sm:$0xff] }
 0x901   :  { %2324 = vmatpush.msra.mxu2 %v5674_v49  ;;  %2432 = vmatpush.msrb.mxu0 %v5676_v6  ;;  %v5732_v49 = vld [vmem:[#allocation61_spill] sm:$0xff]  ;;  %v5734_v6 = vld [vmem:[#allocation15_spill] sm:$0xff] }
 0x902   :  { %2344 = vmatpush.msra.mxu3 %v5679_v32  ;;  %2452 = vmatpush.msrb.mxu1 %v5681_v4  ;;  %v5737_v32 = vld [vmem:[#allocation77_spill] sm:$0xff]  ;;  %v5739_v4 = vld [vmem:[#allocation31_spill] sm:$0xff] }
 0x903   :  { %2325 = vmatpush.msra.mxu2 %v5678_v7  ;;  %2433 = vmatpush.msrb.mxu0 %v5680_v0  ;;  %v5736_v7 = vld [vmem:[#allocation60_spill] sm:$0xff]  ;;  %v5738_v0 = vld [vmem:[#allocation14_spill] sm:$0xff] }
 0x904   :  { %2345 = vmatpush.msra.mxu3 %v5683_v9  ;;  %2453 = vmatpush.msrb.mxu1 %v5685_v13  ;;  %v5741_v9 = vld [vmem:[#allocation76_spill] sm:$0xff]  ;;  %v5743_v13 = vld [vmem:[#allocation30_spill] sm:$0xff] }
 0x905   :  { %2326 = vmatpush.msra.mxu2 %v5682_v5  ;;  %2434 = vmatpush.msrb.mxu0 %v5684_v10  ;;  %v5740_v5 = vld [vmem:[#allocation59_spill] sm:$0xff]  ;;  %v5742_v10 = vld [vmem:[#allocation13_spill] sm:$0xff] }
 0x906   :  { %2346 = vmatpush.msra.mxu3 %v5687_v14  ;;  %2454 = vmatpush.msrb.mxu1 %v5689_v15  ;;  %v5745_v14 = vld [vmem:[#allocation75_spill] sm:$0xff]  ;;  %v5747_v15 = vld [vmem:[#allocation29_spill] sm:$0xff] }
 0x907   :  { %2327 = vmatpush.msra.mxu2 %v5686_v2  ;;  %2435 = vmatpush.msrb.mxu0 %v5688_v1  ;;  %v5744_v2 = vld [vmem:[#allocation58_spill] sm:$0xff]  ;;  %v5746_v1 = vld [vmem:[#allocation12_spill] sm:$0xff] }
 0x908   :  { %2347 = vmatpush.msra.mxu3 %v5691_v18  ;;  %2455 = vmatpush.msrb.mxu1 %v5693_v21  ;;  %v2420_v18 = vrot.slane %v4981_v24, 7  ;;  %v5749_v21 = vld [vmem:[#allocation74_spill] sm:$0xff] }
 0x909   :  { %2328 = vmatpush.msra.mxu2 %v5690_v16  ;;  %2436 = vmatpush.msrb.mxu0 %v5692_v20  ;;  %v2312_v16 = vrot.slane %v4981_v24, 5  ;;  %v5748_v20 = vld [vmem:[#allocation57_spill] sm:$0xff] }
 0x90a   :  { %2348 = vmatpush.msra.mxu3 %v5695_v26  ;;  %2456 = vmatpush.msrb.mxu1 %v5697_v30  ;;  %v5751_v26 = vld [vmem:[#allocation28_spill] sm:$0xff]  ;;  %v5753_v30 = vld [vmem:[#allocation73_spill] sm:$0xff] }
 0x90b   :  { %2329 = vmatpush.msra.mxu2 %v5694_v22  ;;  %2437 = vmatpush.msrb.mxu0 %v5696_v27  ;;  %v5750_v22 = vld [vmem:[#allocation11_spill] sm:$0xff]  ;;  %v5752_v27 = vld [vmem:[#allocation56_spill] sm:$0xff] }
 0x90c   :  { %2349 = vmatpush.msra.mxu3 %v5699_v38  ;;  %2457 = vmatpush.msrb.mxu1 %v5701_v42  ;;  %v2421_v38 = vrot.slane %v4983_v34, 7  ;;  %v5757_v42 = vld [vmem:[#allocation72_spill] sm:$0xff] }
 0x90d   :  { %2330 = vmatpush.msra.mxu2 %v5698_v31  ;;  %2438 = vmatpush.msrb.mxu0 %v5700_v41  ;;  %v2313_v31 = vrot.slane %v4983_v34, 5  ;;  %v5756_v41 = vld [vmem:[#allocation55_spill] sm:$0xff] }
 0x90e   :  { %2350 = vmatpush.msra.mxu3 %v5703_v45  ;;  %2458 = vmatpush.msrb.mxu1 %v5705_v47  ;;  %v5760_v45 = vld [vmem:[#allocation54_spill] sm:$0xff]  ;;  %v5762_v47 = vld [vmem:[#allocation8_spill] sm:$0xff] }
 0x90f   :  { %2331 = vmatpush.msra.mxu2 %v5702_v44  ;;  %2439 = vmatpush.msrb.mxu0 %v5704_v46  ;;  %v5759_v44 = vld [vmem:[#allocation26_spill] sm:$0xff]  ;;  %v5761_v46 = vld [vmem:[#allocation71_spill] sm:$0xff] }
 0x910   :  { %2116 = vmatmul.f32.vlgmr.msrb.gmra.mxu2 %v2096_v39  ;;  %2136 = vmatmul.f32.vlgmr.msrb.gmra.mxu3 %v2097_v40  ;;  %v5754_v39 = vld [vmem:[#allocation10_spill] sm:$0xff]  ;;  %v5755_v40 = vld [vmem:[#allocation27_spill] sm:$0xff] }
 0x911   :  { %2224 = vmatmul.f32.vlgmr.msra.gmra.mxu0 %v2204_v43  ;;  %2464 = vmatpush.msrb.mxu2 %v5706_v56  ;;  %v5758_v43 = vld [vmem:[#allocation9_spill] sm:$0xff]  ;;  %v2504_v56 = vrot.slane %v4981_v24, 2 }
 0x912   :  { %2508 = vmatpush.msra.mxu0 %v5707_v57  ;;  %2351 = vmatpush.msra.mxu3 %v5708_v58  ;;  %v5764_v57 = vld [vmem:[#allocation53_spill] sm:$0xff]  ;;  %v5765_v58 = vld [vmem:[#allocation70_spill] sm:$0xff] }
 0x913   :  { %2459 = vmatpush.msrb.mxu1 %v5709_v59  ;;  %2465 = vmatpush.msrb.mxu2 %v5710_v60  ;;  %v5766_v59 = vld [vmem:[#allocation7_spill] sm:$0xff]  ;;  %v5767_v60 = vld [vmem:[#allocation24_spill] sm:$0xff] }
 0x914   :  { %2244 = vmatmul.f32.vlgmr.msra.gmra.mxu1 %v2205_v55  ;;  %2484 = vmatpush.msrb.mxu3 %v5711_v61  ;;  %v5763_v55 = vld [vmem:[#allocation25_spill] sm:$0xff]  ;;  %v5768_v61 = vld [vmem:[#allocation52_spill] sm:$0xff] }
 0x915   :  { %2509 = vmatpush.msra.mxu0 %v5712_v62  ;;  %2528 = vmatpush.msra.mxu1 %v5713_v63  ;;  %v5769_v62 = vld [vmem:[#allocation69_spill] sm:$0xff]  ;;  %v2505_v63 = vrot.slane %v4983_v34, 2 }
 0x916   :  { %2466 = vmatpush.msrb.mxu2 %v5714_v37  ;;  %2485 = vmatpush.msrb.mxu3 %v5715_v8  ;;  %v5770_v37 = vld [vmem:[#allocation112_spill] sm:$0xff] }
 0x917   :  { %2510 = vmatpush.msra.mxu0 %v5716_v50  ;;  %2529 = vmatpush.msra.mxu1 %v5717_v28  ;;  %v5771_v8 = vld [vmem:[#allocation176_spill] sm:$0xff]  ;;  %v5772_v50 = vld [vmem:[#allocation23_spill] sm:$0xff] }
 0x918   :  { %2467 = vmatpush.msrb.mxu2 %v5718_v51  ;;  %2486 = vmatpush.msrb.mxu3 %v5719_v48  ;;  %v5773_v28 = vld [vmem:[#allocation68_spill] sm:$0xff]  ;;  %v5774_v51 = vld [vmem:[#allocation111_spill] sm:$0xff] }
 0x919   :  { %2511 = vmatpush.msra.mxu0 %v5720_v12  ;;  %2530 = vmatpush.msra.mxu1 %v5721_v33  ;;  %v5775_v48 = vld [vmem:[#allocation128_spill] sm:$0xff]  ;;  %v5776_v12 = vld [vmem:[#allocation175_spill] sm:$0xff] }
 0x91a   :  { %2468 = vmatpush.msrb.mxu2 %v5722_v53  ;;  %2487 = vmatpush.msrb.mxu3 %v5723_v25  ;;  %v5777_v33 = vld [vmem:[#allocation192_spill] sm:$0xff]  ;;  %v5778_v53 = vld [vmem:[#allocation110_spill] sm:$0xff]  ;;  %v5779_v25 = vld [vmem:[#allocation127_spill] sm:$0xff] }
 0x91b   :  { %2512 = vmatpush.msra.mxu0 %v5724_v19  ;;  %2531 = vmatpush.msra.mxu1 %v5725_v29  ;;  %v5780_v19 = vld [vmem:[#allocation174_spill] sm:$0xff]  ;;  %v5781_v29 = vld [vmem:[#allocation191_spill] sm:$0xff] }
 0x91c   :  { %2469 = vmatpush.msrb.mxu2 %v5726_v23  ;;  %2488 = vmatpush.msrb.mxu3 %v5727_v54  ;;  %v5782_v23 = vld [vmem:[#allocation109_spill] sm:$0xff]  ;;  %v5783_v54 = vld [vmem:[#allocation126_spill] sm:$0xff] }
 0x91d   :  { %2513 = vmatpush.msra.mxu0 %v5728_v52  ;;  %2532 = vmatpush.msra.mxu1 %v5729_v3  ;;  %v5784_v52 = vld [vmem:[#allocation173_spill] sm:$0xff]  ;;  %v5785_v3 = vld [vmem:[#allocation190_spill] sm:$0xff] }
 0x91e   :  { %2470 = vmatpush.msrb.mxu2 %v5730_v35  ;;  %2489 = vmatpush.msrb.mxu3 %v5731_v11  ;;  %v5786_v35 = vld [vmem:[#allocation108_spill] sm:$0xff]  ;;  %v5787_v11 = vld [vmem:[#allocation125_spill] sm:$0xff] }
 0x91f   :  { %2514 = vmatpush.msra.mxu0 %v5732_v49  ;;  %2533 = vmatpush.msra.mxu1 %v5733_v36  ;;  %v5788_v49 = vld [vmem:[#allocation172_spill] sm:$0xff]  ;;  %v5789_v36 = vld [vmem:[#allocation189_spill] sm:$0xff] }
 0x920   :  { %2471 = vmatpush.msrb.mxu2 %v5734_v6  ;;  %2490 = vmatpush.msrb.mxu3 %v5735_v17  ;;  %v5790_v6 = vld [vmem:[#allocation107_spill] sm:$0xff]  ;;  %v5791_v17 = vld [vmem:[#allocation124_spill] sm:$0xff] }
 0x921   :  { %2515 = vmatpush.msra.mxu0 %v5736_v7  ;;  %2534 = vmatpush.msra.mxu1 %v5737_v32  ;;  %v5792_v7 = vld [vmem:[#allocation171_spill] sm:$0xff]  ;;  %v5793_v32 = vld [vmem:[#allocation188_spill] sm:$0xff] }
 0x922   :  { %2472 = vmatpush.msrb.mxu2 %v5738_v0  ;;  %2491 = vmatpush.msrb.mxu3 %v5739_v4  ;;  %v5794_v0 = vld [vmem:[#allocation106_spill] sm:$0xff]  ;;  %v5795_v4 = vld [vmem:[#allocation123_spill] sm:$0xff] }
 0x923   :  { %2516 = vmatpush.msra.mxu0 %v5740_v5  ;;  %2535 = vmatpush.msra.mxu1 %v5741_v9  ;;  %v5796_v5 = vld [vmem:[#allocation170_spill] sm:$0xff]  ;;  %v5797_v9 = vld [vmem:[#allocation187_spill] sm:$0xff] }
 0x924   :  { %2473 = vmatpush.msrb.mxu2 %v5742_v10  ;;  %2492 = vmatpush.msrb.mxu3 %v5743_v13  ;;  %v5798_v10 = vld [vmem:[#allocation105_spill] sm:$0xff]  ;;  %v5799_v13 = vld [vmem:[#allocation122_spill] sm:$0xff] }
 0x925   :  { %2517 = vmatpush.msra.mxu0 %v5744_v2  ;;  %2536 = vmatpush.msra.mxu1 %v5745_v14  ;;  %v5800_v2 = vld [vmem:[#allocation169_spill] sm:$0xff]  ;;  %v5801_v14 = vld [vmem:[#allocation186_spill] sm:$0xff] }
 0x926   :  { %2474 = vmatpush.msrb.mxu2 %v5746_v1  ;;  %2493 = vmatpush.msrb.mxu3 %v5747_v15  ;;  %v5802_v1 = vld [vmem:[#allocation104_spill] sm:$0xff]  ;;  %v5803_v15 = vld [vmem:[#allocation121_spill] sm:$0xff] }
 0x927   :  { %2518 = vmatpush.msra.mxu0 %v5748_v20  ;;  %2537 = vmatpush.msra.mxu1 %v5749_v21  ;;  %v5806_v20 = vld [vmem:[#allocation103_spill] sm:$0xff]  ;;  %v5807_v21 = vld [vmem:[#allocation120_spill] sm:$0xff] }
 0x928   :  { %2475 = vmatpush.msrb.mxu2 %v5750_v22  ;;  %2494 = vmatpush.msrb.mxu3 %v5751_v26  ;;  %v5808_v22 = vld [vmem:[#allocation167_spill] sm:$0xff]  ;;  %v5809_v26 = vld [vmem:[#allocation184_spill] sm:$0xff] }
 0x929   :  { %2519 = vmatpush.msra.mxu0 %v5752_v27  ;;  %2538 = vmatpush.msra.mxu1 %v5753_v30  ;;  %v5810_v27 = vld [vmem:[#allocation102_spill] sm:$0xff]  ;;  %v5811_v30 = vld [vmem:[#allocation119_spill] sm:$0xff] }
 0x92a   :  { %2332 = vmatmul.f32.vlgmr.msra.gmra.mxu2 %v2312_v16  ;;  %2440 = vmatmul.f32.vlgmr.msrb.gmra.mxu0 %v2420_v18  ;;  %v5804_v16 = vld [vmem:[#allocation168_spill] sm:$0xff]  ;;  %v5805_v18 = vld [vmem:[#allocation185_spill] sm:$0xff] }
 0x92b   :  { %2476 = vmatpush.msrb.mxu2 %v5754_v39  ;;  %2495 = vmatpush.msrb.mxu3 %v5755_v40  ;;  %v5814_v39 = vld [vmem:[#allocation101_spill] sm:$0xff]  ;;  %v5815_v40 = vld [vmem:[#allocation118_spill] sm:$0xff] }
 0x92c   :  { %2520 = vmatpush.msra.mxu0 %v5756_v41  ;;  %2539 = vmatpush.msra.mxu1 %v5757_v42  ;;  %v5816_v41 = vld [vmem:[#allocation165_spill] sm:$0xff]  ;;  %v5817_v42 = vld [vmem:[#allocation182_spill] sm:$0xff] }
 0x92d   :  { %2352 = vmatmul.f32.vlgmr.msra.gmra.mxu3 %v2313_v31  ;;  %2460 = vmatmul.f32.vlgmr.msrb.gmra.mxu1 %v2421_v38  ;;  %v5812_v31 = vld [vmem:[#allocation166_spill] sm:$0xff]  ;;  %v5813_v38 = vld [vmem:[#allocation183_spill] sm:$0xff] }
 0x92e   :  { %2477 = vmatpush.msrb.mxu2 %v5758_v43  ;;  %2496 = vmatpush.msrb.mxu3 %v5759_v44  ;;  %v5818_v43 = vld [vmem:[#allocation100_spill] sm:$0xff]  ;;  %v5819_v44 = vld [vmem:[#allocation117_spill] sm:$0xff] }
 0x92f   :  { %2521 = vmatpush.msra.mxu0 %v5760_v45  ;;  %2540 = vmatpush.msra.mxu1 %v5761_v46  ;;  %v5820_v45 = vld [vmem:[#allocation164_spill] sm:$0xff]  ;;  %v5821_v46 = vld [vmem:[#allocation181_spill] sm:$0xff] }
 0x930   :  { %2478 = vmatpush.msrb.mxu2 %v5762_v47  ;;  %2497 = vmatpush.msrb.mxu3 %v5763_v55  ;;  %v5822_v47 = vld [vmem:[#allocation99_spill] sm:$0xff]  ;;  %v5823_v55 = vld [vmem:[#allocation116_spill] sm:$0xff] }
 0x931   :  { %2522 = vmatpush.msra.mxu0 %v5764_v57  ;;  %2541 = vmatpush.msra.mxu1 %v5765_v58  ;;  %v5825_v57 = vld [vmem:[#allocation180_spill] sm:$0xff]  ;;  %v5826_v58 = vld [vmem:[#allocation98_spill] sm:$0xff] }
 0x932   :  { %2479 = vmatpush.msrb.mxu2 %v5766_v59  ;;  %2498 = vmatpush.msrb.mxu3 %v5767_v60  ;;  %v5827_v59 = vld [vmem:[#allocation115_spill] sm:$0xff]  ;;  %v2548_v60 = vrot.slane %v4981_v24, 4 }
 0x933   :  { %2523 = vmatpush.msra.mxu0 %v5768_v61  ;;  %2542 = vmatpush.msra.mxu1 %v5769_v62  ;;  %v2592_v61 = vrot.slane %v4981_v24, 6  ;;  %v5828_v62 = vld [vmem:[#allocation162_spill] sm:$0xff] }
 0x934   :  { %2480 = vmatmul.f32.vlgmr.msrb.gmra.mxu2 %v4981_v24  ;;  %2524 = vmatmul.f32.vlgmr.msra.gmra.mxu0 %v2504_v56  ;;  %v5824_v56 = vld [vmem:[#allocation163_spill] sm:$0xff]  ;;  %v5835_v24 = vld [vmem:[#allocation177_spill] sm:$0xff] }
 0x935   :  { %2552 = vmatpush.msra.mxu2 %v5770_v37  ;;  %2596 = vmatpush.msrb.mxu0 %v5771_v8  ;;  %v5830_v37 = vld [vmem:[#allocation97_spill] sm:$0xff]  ;;  %v5831_v8 = vld [vmem:[#allocation114_spill] sm:$0xff] }
 0x936   :  { %2499 = vmatpush.msrb.mxu3 %v5772_v50  ;;  %2543 = vmatpush.msra.mxu1 %v5773_v28  ;;  %v2549_v50 = vrot.slane %v4983_v34, 4  ;;  %v2593_v28 = vrot.slane %v4983_v34, 6 }
 0x937   :  { %2500 = vmatmul.f32.vlgmr.msrb.gmra.mxu3 %v4983_v34  ;;  %2544 = vmatmul.f32.vlgmr.msra.gmra.mxu1 %v2505_v63  ;;  %v5829_v63 = vld [vmem:[#allocation179_spill] sm:$0xff]  ;;  %v2648_v34 = vld [vmem:[%s5397_s3 + $0xa8] sm:$0xff] }
 0x938   :  { %2553 = vmatpush.msra.mxu2 %v5774_v51  ;;  %2572 = vmatpush.msra.mxu3 %v5775_v48  ;;  %v5832_v51 = vld [vmem:[#allocation161_spill] sm:$0xff]  ;;  %v5833_v48 = vld [vmem:[#allocation178_spill] sm:$0xff] }
 0x939   :  { %2597 = vmatpush.msrb.mxu0 %v5776_v12  ;;  %2616 = vmatpush.msrb.mxu1 %v5777_v33  ;;  %v5834_v12 = vld [vmem:[#allocation113_spill] sm:$0xff] }
 0x93a   :  { %2554 = vmatpush.msra.mxu2 %v5778_v53  ;;  %2573 = vmatpush.msra.mxu3 %v5779_v25  ;;  %v2649_v33 = vld [vmem:[%s5397_s3 + $0xb0] sm:$0xff]  ;;  %v2647_v53 = vld [vmem:[%s5397_s3 + $0xa0] sm:$0xff] }
 0x93b   :  { %2598 = vmatpush.msrb.mxu0 %v5780_v19  ;;  %2617 = vmatpush.msrb.mxu1 %v5781_v29  ;;  %v2646_v19 = vld [vmem:[%s5397_s3 + $0x98] sm:$0xff]  ;;  %v2645_v29 = vld [vmem:[%s5397_s3 + $0x90] sm:$0xff] }
 0x93c   :  { %2555 = vmatpush.msra.mxu2 %v5782_v23  ;;  %2574 = vmatpush.msra.mxu3 %v5783_v54 }
 0x93d   :  { %2599 = vmatpush.msrb.mxu0 %v5784_v52  ;;  %2618 = vmatpush.msrb.mxu1 %v5785_v3  ;;  %v2644_v52 = vld [vmem:[%s5397_s3 + $0x88] sm:$0xff] }
 0x93e   :  { %2556 = vmatpush.msra.mxu2 %v5786_v35  ;;  %2575 = vmatpush.msra.mxu3 %v5787_v11  ;;  %v2643_v35 = vld [vmem:[%s5397_s3 + $0x80] sm:$0xff] }
 0x93f   :  { %2600 = vmatpush.msrb.mxu0 %v5788_v49  ;;  %2619 = vmatpush.msrb.mxu1 %v5789_v36  ;;  %v2642_v49 = vld [vmem:[%s5397_s3 + $0x78] sm:$0xff]  ;;  %v2681_v36 = vld [vmem:[%s5397_s3 + $0xe8] sm:$0xff] }
 0x940   :  { %2557 = vmatpush.msra.mxu2 %v5790_v6  ;;  %2576 = vmatpush.msra.mxu3 %v5791_v17  ;;  %v2680_v6 = vld [vmem:[%s5397_s3 + $0xe0] sm:$0xff] }
 0x941   :  { %2601 = vmatpush.msrb.mxu0 %v5792_v7  ;;  %2620 = vmatpush.msrb.mxu1 %v5793_v32  ;;  %v2679_v32 = vld [vmem:[%s5397_s3 + $0xd8] sm:$0xff] }
 0x942   :  { %2558 = vmatpush.msra.mxu2 %v5794_v0  ;;  %2577 = vmatpush.msra.mxu3 %v5795_v4 }
 0x943   :  { %2602 = vmatpush.msrb.mxu0 %v5796_v5  ;;  %2621 = vmatpush.msrb.mxu1 %v5797_v9 }
 0x944   :  { %2559 = vmatpush.msra.mxu2 %v5798_v10  ;;  %2578 = vmatpush.msra.mxu3 %v5799_v13 }
 0x945   :  { %2603 = vmatpush.msrb.mxu0 %v5800_v2  ;;  %2622 = vmatpush.msrb.mxu1 %v5801_v14 }
 0x946   :  { %2560 = vmatpush.msra.mxu2 %v5802_v1  ;;  %2579 = vmatpush.msra.mxu3 %v5803_v15 }
 0x947   :  { %2604 = vmatpush.msrb.mxu0 %v5804_v16  ;;  %2623 = vmatpush.msrb.mxu1 %v5805_v18 }
 0x948   :  { %2561 = vmatpush.msra.mxu2 %v5806_v20  ;;  %2580 = vmatpush.msra.mxu3 %v5807_v21 }
 0x949   :  { %2605 = vmatpush.msrb.mxu0 %v5808_v22  ;;  %2624 = vmatpush.msrb.mxu1 %v5809_v26 }
 0x94a   :  { %2562 = vmatpush.msra.mxu2 %v5810_v27  ;;  %2581 = vmatpush.msra.mxu3 %v5811_v30 }
 0x94b   :  { %2606 = vmatpush.msrb.mxu0 %v5812_v31  ;;  %2625 = vmatpush.msrb.mxu1 %v5813_v38 }
 0x94c   :  { %2563 = vmatpush.msra.mxu2 %v5814_v39  ;;  %2582 = vmatpush.msra.mxu3 %v5815_v40 }
 0x94d   :  { %2607 = vmatpush.msrb.mxu0 %v5816_v41  ;;  %2626 = vmatpush.msrb.mxu1 %v5817_v42  ;;  %v2639_v42 = vld [vmem:[%s5397_s3 + $0x70] sm:$0x1] }
 0x94e   :  { %2564 = vmatpush.msra.mxu2 %v5818_v43  ;;  %2583 = vmatpush.msra.mxu3 %v5819_v44 }
 0x94f   :  { %2608 = vmatpush.msrb.mxu0 %v5820_v45  ;;  %2627 = vmatpush.msrb.mxu1 %v5821_v46  ;;  %v2678_v46 = vld [vmem:[%s5397_s3 + $0xd0] sm:$0xff] }
 0x950   :  { %2565 = vmatpush.msra.mxu2 %v5822_v47  ;;  %2584 = vmatpush.msra.mxu3 %v5823_v55  ;;  %v2677_v47 = vld [vmem:[%s5397_s3 + $0xc8] sm:$0xff]  ;;  %v2676_v55 = vld [vmem:[%s5397_s3 + $0xc0] sm:$0xff] }
 0x951   :  { %2609 = vmatpush.msrb.mxu0 %v5824_v56  ;;  %2628 = vmatpush.msrb.mxu1 %v5825_v57  ;;  %v2748_v56 = vld [vmem:[%s5397_s3 + $0x170] sm:$0xff]  ;;  %v2747_v57 = vld [vmem:[%s5397_s3 + $0x168] sm:$0xff] }
 0x952   :  { %2566 = vmatpush.msra.mxu2 %v5826_v58  ;;  %2585 = vmatpush.msra.mxu3 %v5827_v59  ;;  %v2746_v58 = vld [vmem:[%s5397_s3 + $0x160] sm:$0xff]  ;;  %v2745_v59 = vld [vmem:[%s5397_s3 + $0x158] sm:$0xff] }
 0x953   :  { %2610 = vmatpush.msrb.mxu0 %v5828_v62  ;;  %2629 = vmatpush.msrb.mxu1 %v5829_v63  ;;  %v2742_v62 = vld [vmem:[%s5397_s3 + $0x140] sm:$0xff]  ;;  %v2741_v63 = vld [vmem:[%s5397_s3 + $0x138] sm:$0xff] }
 0x954   :  { %2567 = vmatpush.msra.mxu2 %v5830_v37  ;;  %2586 = vmatpush.msra.mxu3 %v5831_v8  ;;  %v2650_v37 = vld [vmem:[%s5397_s3 + $0xb8] sm:$0x1] }
 0x955   :  { %2611 = vmatpush.msrb.mxu0 %v5832_v51  ;;  %2630 = vmatpush.msrb.mxu1 %v5833_v48  ;;  %v2740_v51 = vld [vmem:[%s5397_s3 + $0x130] sm:$0xff]  ;;  %v2739_v48 = vld [vmem:[%s5397_s3 + $0x128] sm:$0xff] }
 0x956   :  { %2568 = vmatmul.f32.vlgmr.msra.gmra.mxu2 %v2548_v60  ;;  %2612 = vmatmul.f32.vlgmr.msrb.gmra.mxu0 %v2592_v61  ;;  %v2744_v60 = vld [vmem:[%s5397_s3 + $0x150] sm:$0xff]  ;;  %v2743_v61 = vld [vmem:[%s5397_s3 + $0x148] sm:$0xff] }
 0x957   :  { %2587 = vmatpush.msra.mxu3 %v5834_v12  ;;  %2631 = vmatpush.msrb.mxu1 %v5835_v24  ;;  %v2738_v12 = vld [vmem:[%s5397_s3 + $0x120] sm:$0xff]  ;;  %v2737_v24 = vld [vmem:[%s5397_s3 + $0x118] sm:$0xff] }
 0x958   :  { %2588 = vmatmul.f32.vlgmr.msra.gmra.mxu3 %v2549_v50  ;;  %2632 = vmatmul.f32.vlgmr.msrb.gmra.mxu1 %v2593_v28  ;;  %v2675_v28 = vld [vmem:[%s5395_s1] sm:$0x1] }
 0x959   :  { %2663 = vmatpush.msra.mxu0 %v2649_v33  ;;  %2698 = vmatpush.msrb.mxu3 %v2681_v36  ;;  %v2736_v33 = vld [vmem:[%s5397_s3 + $0x110] sm:$0xff] }
 0x95a   :  { %2750 = vmatpush.msrb.mxu2 %v2748_v56 }
 0x95b   :  { %2664 = vmatpush.msra.mxu0 %v2648_v34  ;;  %2699 = vmatpush.msrb.mxu3 %v2680_v6  ;;  %v2735_v34 = vld [vmem:[%s5397_s3 + $0x108] sm:$0xff] }
 0x95c   :  { %2751 = vmatpush.msrb.mxu2 %v2747_v57 }
 0x95d   :  { %2665 = vmatpush.msra.mxu0 %v2647_v53  ;;  %2700 = vmatpush.msrb.mxu3 %v2679_v32  ;;  %v2734_v53 = vld [vmem:[%s5397_s3 + $0x100] sm:$0xff] }
 0x95e   :  { %2752 = vmatpush.msrb.mxu2 %v2746_v58  ;;  %v2771_v32 = vld [vmem:[%s5397_s3 + $0x180] sm:$0xff] }
 0x95f   :  { %2666 = vmatpush.msra.mxu0 %v2646_v19  ;;  %2701 = vmatpush.msrb.mxu3 %v2678_v46  ;;  %v2778_v19 = vld [vmem:[%s5397_s3 + $0x1b8] sm:$0xff] }
 0x960   :  { %2753 = vmatpush.msrb.mxu2 %v2745_v59 }
 0x961   :  { %2667 = vmatpush.msra.mxu0 %v2645_v29  ;;  %2724 = vmatpush.msra.mxu3 %v2677_v47  ;;  %v2777_v29 = vld [vmem:[%s5397_s3 + $0x1b0] sm:$0xff] }
 0x962   :  { %2754 = vmatpush.msrb.mxu2 %v2744_v60 }
 0x963   :  { %2668 = vmatpush.msra.mxu0 %v2644_v52  ;;  %2725 = vmatpush.msra.mxu3 %v2676_v55  ;;  %v2774_v52 = vld [vmem:[%s5397_s3 + $0x198] sm:$0xff] }
 0x964   :  { %2755 = vmatpush.msrb.mxu2 %v2743_v61 }
 0x965   :  { %2669 = vmatpush.msra.mxu0 %v2643_v35 }
 0x966   :  { %2756 = vmatpush.msrb.mxu2 %v2742_v62 }
 0x967   :  { %2670 = vmatpush.msra.mxu0 %v2642_v49 }
 0x968   :  { %2757 = vmatpush.msrb.mxu2 %v2741_v63 }
 0x96a   :  { %2758 = vmatpush.msrb.mxu2 %v2740_v51 }
 0x96c   :  { %2759 = vmatpush.msrb.mxu2 %v2739_v48 }
 0x96e   :  { %2760 = vmatpush.msrb.mxu2 %v2738_v12 }
 0x970   :  { %2761 = vmatpush.msrb.mxu2 %v2737_v24 }
 0x972   :  { %2762 = vmatpush.msrb.mxu2 %v2736_v33 }
 0x974   :  { %2763 = vmatpush.msrb.mxu2 %v2735_v34 }
 0x976   :  { %2764 = vmatpush.msrb.mxu2 %v2734_v53 }
 0x98e   :  { %v2225_v25 = vpop.f32.mrf.mxu0 }
 0x991   :  { %v2245_v54 = vpop.f32.mrf.mxu1 }
 0x992   :  { %v2246_v14 = vadd.f32 %v2245_v54, %v2225_v25  ;;  %v2733_v25 = vld [vmem:[%s5397_s3 + $0xf8] sm:$0xff]  ;;  %v2775_v54 = vld [vmem:[%s5397_s3 + $0x1a0] sm:$0xff] }
 0x993   :  { %v2117_v23 = vpop.f32.mrf.mxu2  ;;  %v2137_v3 = vpop.f32.mrf.mxu3  ;;  %2765 = vmatpush.msrb.mxu2 %v2733_v25 }
 0x994   :  { %v2138_v13 = vadd.f32 %v2137_v3, %v2117_v23  ;;  %v2776_v23 = vld [vmem:[%s5397_s3 + $0x1a8] sm:$0xff] }
 0x9a7   :  { %v2441_v11 = vpop.f32.mrf.mxu0 }
 0x9aa   :  { %v2461_v17 = vpop.f32.mrf.mxu1 }
 0x9ab   :  { %v2462_v1 = vadd.f32 %v2461_v17, %v2441_v11  ;;  %v2730_v11 = vld [vmem:[%s5397_s3 + $0xf0] sm:$0x1] }
 0x9ac   :  { %v2773_v17 = vld [vmem:[%s5397_s3 + $0x190] sm:$0xff] }
 0x9ad   :  { %v2333_v7 = vpop.f32.mrf.mxu2 }
 0x9b0   :  { %v2353_v0 = vpop.f32.mrf.mxu3 }
 0x9b1   :  { %v2525_v4 = vpop.f32.mrf.mxu0  ;;  %v2354_v16 = vadd.f32 %v2353_v0, %v2333_v7  ;;  %v2772_v7 = vld [vmem:[%s5397_s3 + $0x188] sm:$0xff]  ;;  %v2749_v0 = vld [vmem:[%s5397_s3 + $0x178] sm:$0x1] }
 0x9b2   :  { %v2526_v18 = vadd.f32 %v2525_v4, %v2246_v14 }
 0x9b4   :  { %v2545_v5 = vpop.f32.mrf.mxu1 }
 0x9b5   :  { %v2546_v31 = vadd.f32 %v2545_v5, %v2526_v18 }
 0x9b7   :  { %v2481_v9 = vpop.f32.mrf.mxu2 }
 0x9b8   :  { %v2482_v15 = vadd.f32 %v2481_v9, %v2138_v13 }
 0x9ba   :  { %v2501_v10 = vpop.f32.mrf.mxu3 }
 0x9bb   :  { %v2502_v26 = vadd.f32 %v2501_v10, %v2482_v15  ;;  %v2779_v10 = vld [vmem:[%s5397_s3 + $0x1c0] sm:$0x1] }
 0x9bd   :  { %v2636_v40 = vadd.f32 %v2546_v31, %v2502_v26 }
 0x9d3   :  { %v2613_v2 = vpop.f32.mrf.mxu0 }
 0x9d4   :  { %v2614_v20 = vadd.f32 %v2613_v2, %v2462_v1 }
 0x9d5   :  { %v2633_v21 = vpop.f32.mrf.mxu1 }
 0x9d6   :  { %v2634_v38 = vadd.f32 %v2633_v21, %v2614_v20 }
 0x9d9   :  { %v2569_v22 = vpop.f32.mrf.mxu2 }
 0x9da   :  { %v2570_v27 = vadd.f32 %v2569_v22, %v2354_v16 }
 0x9db   :  { %v2589_v30 = vpop.f32.mrf.mxu3 }
 0x9dc   :  { %v2590_v39 = vadd.f32 %v2589_v30, %v2570_v27 }
 0x9de   :  { %v2637_v41 = vadd.f32 %v2634_v38, %v2590_v39 }
 0x9e0   :  { %v2638_v43 = vadd.f32 %v2637_v41, %v2636_v40 }
 0x9e2   :  { %v2640_v44 = vadd.f32 %v2639_v42, %v2638_v43 }
 0x9e4   :  { %v2641_v45 = vmax.f32 %v2640_v44, 0.0 }
 0x9e6   :  { %2888 = vmatmul.msk.f32.vlgmr.msra.gmra.mxu0 %vm2651_vm9, %v2641_v45 }
 0xa63   :  { %v2672_v8 = vpop.f32.mrf.mxu0 }
 0xa64   :  { %v2673_v50 = vadd.f32 %v2672_v8, %v2650_v37 }
 0xa66   :  { %2889 = vmatmul.msk.f32.vlgmr.msrb.gmra.mxu3 %vm2682_vm10, %v2673_v50 }
 0xa67   :  { %2791 = vmatpush.msrb.mxu3 %v2778_v19 }
 0xa69   :  { %2792 = vmatpush.msrb.mxu3 %v2777_v29 }
 0xa6b   :  { %2793 = vmatpush.msrb.mxu3 %v2776_v23 }
 0xa6d   :  { %2794 = vmatpush.msrb.mxu3 %v2775_v54 }
 0xa6e   :  { %2890 = vmatmul.msk.f32.vlgmr.msra.gmra.mxu3 %vm2706_vm11, %v2675_v28 }
 0xa6f   :  { %2795 = vmatpush.msrb.mxu3 %v2774_v52 }
 0xa71   :  { %2796 = vmatpush.msrb.mxu3 %v2773_v17 }
 0xa73   :  { %2797 = vmatpush.msrb.mxu3 %v2772_v7 }
 0xa75   :  { %2798 = vmatpush.msrb.mxu3 %v2771_v32 }
 0xae9   :  { %v2703_v3 = vpop.f32.mrf.mxu3 }
 0xaf1   :  { %v2727_v35 = vpop.f32.mrf.mxu3 }
 0xaf2   :  { %v2728_v49 = vadd.f32 %v2727_v35, %v2703_v3 }
 0xaf4   :  { %v2731_v36 = vadd.f32 %v2730_v11, %v2728_v49 }
 0xaf6   :  { %v2732_v6 = vmax.f32 %v2731_v36, 0.0 }
 0xaf8   :  { %2766 = vmatmul.f32.vlgmr.msrb.gmra.mxu2 %v2732_v6 }
 0xb7b   :  { %v2767_v4 = vpop.f32.mrf.mxu2 }
 0xb7c   :  { %v2768_v5 = vadd.f32 %v2767_v4, %v2749_v0 }
 0xb7e   :  { %v2770_v9 = vmax.f32 %v2768_v5, 0.0 }
 0xb80   :  { %2891 = vmatmul.msk.f32.vlgmr.msrb.gmra.mxu3 %vm2651_vm9, %v2770_v9 }
 0xc03   :  { %v2800_v13 = vpop.f32.mrf.mxu3 }
 0xc04   :  { %v2801_v2 = vadd.f32 %v2800_v13, %v2779_v10 }
 0xc06   :  { %2803 = vst [vmem:[%s5399_s5] sm:$0x1] %v2801_v2 }
 0xc07   :  { %2808 = vsyncmov [#allocation4] }
 0xc0a   :  { %s2809_s6 = vpop.sfrf %2808 }
 0xc0b   :  { %p2892_p0 = scmp.ne.s32.totalorder %s2809_s6, 0 }
 0xc0d   :  { %2813 = shalt.err (%p2892_p0)  }

</bundles_post_ra>
